<compile_context>
chip_gen: v7x
topology: tpu7x:2x2x1
jax: 0.10.0
libtpu: 0.0.40
codegen_flags: <defaults>
</compile_context>

<pallas_src>
import numpy as np

import jax
import jax.numpy as jnp
from jax.experimental import pallas as pl
from jax.experimental.pallas import tpu as pltpu


LEAD = 8  # leading zero-band rows: keeps every per-image data block 8-sublane aligned


def _round_up(x, m):
    return (x + m - 1) // m * m


# ----------------------------------------------------------------------------
# Parameters (PyTorch-layout weights)
# ----------------------------------------------------------------------------
def _init_conv(key, cout, cin, kh, kw, scale=0.1):
    kw_, kb_ = jax.random.split(key)
    w = jax.random.normal(kw_, (cout, cin, kh, kw), jnp.float32) * scale
    b = jax.random.normal(kb_, (cout,), jnp.float32) * scale
    return w, b


def get_conv_params(data_dim):
    return {28: {"strides": [2] * 5}, 32: {"strides": [2] * 5}, 64: {"strides": [2] * 6}}[data_dim]


def init_plain_encoder_params(key, z_dim, num_ch, data_ch, data_dim):
    strides = get_conv_params(data_dim)["strides"]
    n_layers = len(strides)
    keys = jax.random.split(key, 2 + 3 * n_layers)
    params = {"stem": _init_conv(keys[0], num_ch, data_ch, 1, 1)}
    ch = num_ch
    blocks = []
    for i, s in enumerate(strides):
        blk = {
            "conv1": _init_conv(keys[1 + 3 * i], ch, ch, 3, 3),        # in -> hid, stride s
            "conv2": _init_conv(keys[2 + 3 * i], 2 * ch, ch, 3, 3),    # hid -> out
            "skip": _init_conv(keys[3 + 3 * i], 2 * ch, ch, 1, 1),     # in -> out, stride s
            "stride": s,
            "out_act": "silu" if i + 1 < n_layers else None,           # last block: activation=None
        }
        blocks.append(blk)
        ch *= 2
    params["blocks"] = blocks
    params["head"] = _init_conv(keys[1 + 3 * n_layers], 2 * z_dim, ch, 1, 1)
    return params


# ----------------------------------------------------------------------------
# Structured-conv preparation (build time, not in the hot path)
# ----------------------------------------------------------------------------
def _col_select(W, Wo, stride, kw, pad):
    """Width-tap selector; out-of-range taps are dropped == zero padding in W."""
    sel = np.zeros((W, Wo, kw), np.float32)
    for ow in range(Wo):
        for dj in range(kw):
            wi = stride * ow + dj - pad
            if 0 <= wi < W:
                sel[wi, ow, dj] = 1.0
    return sel


def _prep_conv(w, b, H, W, stride, pad, src_lanes, lead_in, hp_in, out_lanes=None):
    """Build the fused-tap structured weight matrix B (kh*src_lanes, out_lanes) + bias.

    B bakes in the width taps / width stride / width zero-padding / conv weights.
    K and N dims are zero-padded to the (128-aligned) source / destination lane
    widths so every MXU operand and every activation store is lane-dense.
    """
    w = np.asarray(w, np.float32)
    b = np.asarray(b, np.float32)
    cout, cin, kh, kw = w.shape
    Ho = (H + 2 * pad - kh) // stride + 1
    Wo = (W + 2 * pad - kw) // stride + 1
    raw_k = W * cin
    raw_out = Wo * cout
    if out_lanes is None:
        out_lanes = _round_up(raw_out, 128)
    selw = _col_select(W, Wo, stride, kw, pad)                          # (W, Wo, kw)
    # B_raw[di, wi*Cin+ci, ow*Cout+co] = sum_dj selw[wi, ow, dj] * w[co, ci, di, dj]
    B_raw = np.einsum("wvd,ocid->iwcvo", selw, w).reshape(kh, raw_k, raw_out)
    B = np.zeros((kh, src_lanes, out_lanes), np.float32)
    B[:, :raw_k, :raw_out] = B_raw
    B = jnp.asarray(B.reshape(kh * src_lanes, out_lanes), dtype=jnp.bfloat16)   # bf16 -> MXU
    bias = np.zeros((1, out_lanes), np.float32)
    bias[0, :raw_out] = np.tile(b, Wo)
    meta = dict(k=kh, pad=pad, stride=stride, Ho=Ho, Wo=Wo,
                lead_in=lead_in, hp_in=hp_in, out_lanes=out_lanes)
    return [B, jnp.asarray(bias)], meta


# ----------------------------------------------------------------------------
# Fused encoder kernel
# ----------------------------------------------------------------------------
def _make_kernel(metas, buf_hps, n_blocks, N):
    n_convs = len(metas)

    def load_taps(src_ref, meta):
        """Per row tap: load exactly the Ho surviving rows per image (stride baked in),
        concatenated over the batch -> list of k bf16 matrices of shape (N*Ho, src_lanes)."""
        taps = []
        for di in range(meta["k"]):
            imgs = []
            for n in range(N):
                start = meta["lead_in"] + n * meta["hp_in"] + di - meta["pad"]  # static
                if meta["stride"] > 1 and meta["Ho"] > 1:
                    sl = src_ref[pl.ds(start, meta["Ho"], stride=meta["stride"]), :]
                else:
                    sl = src_ref[pl.ds(start, meta["Ho"]), :]
                imgs.append(sl)
            tap = imgs[0] if N == 1 else jnp.concatenate(imgs, axis=0)
            taps.append(tap.astype(jnp.bfloat16))
        return taps

    def matmul(taps, B_ref, bias_ref):
        """One fused-tap MXU dot (K = k*src_lanes) + f32 bias."""
        xs = taps[0] if len(taps) == 1 else jnp.concatenate(taps, axis=1)
        return jnp.dot(xs, B_ref[...], preferred_element_type=jnp.float32) + bias_ref[...]

    def store(dst_ref, z, Ho, hp):
        """Write (N*Ho, lanes) result into the padded activation buffer; only the
        border / trailing pad rows are zeroed (interior rows written exactly once)."""
        lanes = dst_ref.shape[1]
        dst_ref[0:LEAD, :] = jnp.zeros((LEAD, lanes), jnp.float32)
        for n in range(N):
            dst_ref[LEAD + n * hp:LEAD + n * hp + Ho, :] = z[n * Ho:(n + 1) * Ho, :]
            dst_ref[LEAD + n * hp + Ho:LEAD + (n + 1) * hp, :] = \
                jnp.zeros((hp - Ho, lanes), jnp.float32)

    def kernel(*refs):
        x_ref = refs[0]
        wr = refs[1:1 + 2 * n_convs]                   # (B, bias) per conv
        out_ref = refs[1 + 2 * n_convs]
        bufs = refs[2 + 2 * n_convs:]                  # VMEM activation buffers

        def conv(idx, taps):
            return matmul(taps, wr[2 * idx], wr[2 * idx + 1])

        # --- stem 1x1 conv: reads the raw input ref directly (no staging buffer)
        z = conv(0, load_taps(x_ref, metas[0]))
        store(bufs[0], z, metas[0]["Ho"], buf_hps[0])
        cur = bufs[0]

        # --- EncoderResBlocks
        # TODO(synk): EncoderResBlock source was not provided; assumed structure:
        #   main = conv3x3(stride s) -> SiLU -> conv3x3 ; skip = conv1x1(stride s);
        #   out  = out_act(main + skip)   (weight_norm / batch_norm disabled here).
        for blk in range(n_blocks):
            i1, i2, isk = 1 + 3 * blk, 2 + 3 * blk, 3 + 3 * blk
            m1, m2 = metas[i1], metas[i2]
            taps1 = load_taps(cur, m1)
            z1 = conv(i1, taps1)                       # conv1 (3x3, stride s)
            z1 = z1 * jax.nn.sigmoid(z1)               # SiLU (f32 epilogue)
            mid = bufs[1 + 2 * blk]
            store(mid, z1, m1["Ho"], buf_hps[1 + 2 * blk])
            zsk = conv(isk, [taps1[1]])                # skip 1x1 s: reuses centre row-tap
            z2 = conv(i2, load_taps(mid, m2))          # conv2 (3x3, stride 1)
            z = z2 + zsk
            if blk + 1 < n_blocks:                     # last block: activation=None
                z = z * jax.nn.sigmoid(z)
            nxt = bufs[2 + 2 * blk]
            store(nxt, z, m2["Ho"], buf_hps[2 + 2 * blk])
            cur = nxt

        # --- head 1x1 conv on the 1x1 feature map -> (N, 2*z_dim)
        out_ref[...] = conv(1 + 3 * n_blocks, load_taps(cur, metas[-1])).astype(out_ref.dtype)

    return kernel


def build_plain_encoder(params, N, z_dim, num_ch, data_ch, data_dim):
    """Prepare structured weights once; return a jitted forward(x) -> (mu, logvar)."""
    n_blocks = len(params["blocks"])

    conv_args, metas, buf_shapes, buf_hps = [], [], [], []

    def add(wb, H, W, stride, pad, src_lanes, lead_in, hp_in, out_lanes=None):
        arrs, meta = _prep_conv(wb[0], wb[1], H, W, stride, pad,
                                src_lanes, lead_in, hp_in, out_lanes)
        conv_args.extend(arrs)
        metas.append(meta)
        return meta

    def add_buf(Ho, lanes):
        hp = _round_up(Ho + 2, 8)                       # sublane-aligned row pitch
        buf_shapes.append((LEAD + N * hp, lanes))
        buf_hps.append(hp)
        return hp

    H = data_dim
    # stem reads the raw input: row pitch = data_dim, no leading band, no padding
    m = add(params["stem"], H, H, 1, 0, data_dim * data_ch, 0, data_dim)
    hp = add_buf(m["Ho"], m["out_lanes"])
    cur_H, cur_lanes, cur_hp = m["Ho"], m["out_lanes"], hp

    for bp in params["blocks"]:
        s = bp["stride"]
        m1 = add(bp["conv1"], cur_H, cur_H, s, 1, cur_lanes, LEAD, cur_hp)
        hp_mid = add_buf(m1["Ho"], m1["out_lanes"])
        m2 = add(bp["conv2"], m1["Ho"], m1["Wo"], 1, 1, m1["out_lanes"], LEAD, hp_mid)
        add(bp["skip"], cur_H, cur_H, s, 0, cur_lanes, LEAD, cur_hp, out_lanes=m2["out_lanes"])
        hp_out = add_buf(m2["Ho"], m2["out_lanes"])
        cur_H, cur_lanes, cur_hp = m2["Ho"], m2["out_lanes"], hp_out

    add(params["head"], cur_H, cur_H, 1, 0, cur_lanes, LEAD, cur_hp, out_lanes=2 * z_dim)

    kernel = _make_kernel(metas, buf_hps, n_blocks, N)

    fused = pl.pallas_call(
        kernel,
        out_shape=jax.ShapeDtypeStruct((N, 2 * z_dim), jnp.float32),
        # No grid: a single invocation, all operands single-buffered in VMEM
        # (~1.2 MB bf16 weights + ~0.3 MB f32 activation scratch at N=2).
        # For large batches: add a leading "parallel" batch-tile grid axis
        # (uses both v7x TensorCores) and set vmem_limit_bytes explicitly
        # (v5e scoped default is 16 MiB, v6e/v7x 32 MiB).
        scratch_shapes=[pltpu.VMEM(sh, jnp.float32) for sh in buf_shapes],
    )

    def forward(x):
        # x: (N, data_ch, data_dim, data_dim), NCHW as in the PyTorch module.
        # Rows = batch-stacked NHWC image rows, lanes = width*channels (channel-minor).
        x2 = x.transpose(0, 2, 3, 1).reshape(N * data_dim, data_dim * data_ch)
        q_param = fused(x2, *conv_args)
        mu, logvar = jnp.split(q_param, 2, axis=1)      # torch.chunk(q_param, 2, dim=1)
        return mu, logvar

    return jax.jit(forward)


# ----------------------------------------------------------------------------
# Pure-JAX reference (same forward graph) for a numerical self-check
# ----------------------------------------------------------------------------
def _conv_ref(x, w, b, stride, pad):
    out = jax.lax.conv_general_dilated(
        x, w, window_strides=(stride, stride),
        padding=[(pad, pad), (pad, pad)],
        dimension_numbers=("NCHW", "OIHW", "NCHW"))
    return out + b.reshape(1, -1, 1, 1)


def plain_encoder_reference(params, x):
    h = _conv_ref(x, *params["stem"], 1, 0)
    for blk in params["blocks"]:
        s = blk["stride"]
        m = _conv_ref(h, *blk["conv1"], s, 1)
        m = m * jax.nn.sigmoid(m)
        sk = _conv_ref(h, *blk["skip"], s, 0)
        h = _conv_ref(m, *blk["conv2"], 1, 1) + sk
        if blk["out_act"] == "silu":
            h = h * jax.nn.sigmoid(h)
    h = _conv_ref(h, *params["head"], 1, 0)
    q = h.reshape(h.shape[0], -1)
    mu, logvar = jnp.split(q, 2, axis=1)
    return mu, logvar


# ----------------------------------------------------------------------------
if __name__ == "__main__":
    z_dim, num_ch, data_ch, data_dim, batch = 8, 4, 3, 32, 2

    key = jax.random.PRNGKey(0)
    kp, kx = jax.random.split(key)
    params = init_plain_encoder_params(kp, z_dim, num_ch, data_ch, data_dim)
    x = jax.random.normal(kx, (batch, data_ch, data_dim, data_dim), jnp.float32)

    forward = build_plain_encoder(params, batch, z_dim, num_ch, data_ch, data_dim)
    mu, logvar = forward(x)
    jax.block_until_ready((mu, logvar))

    assert mu.shape == (batch, z_dim) and logvar.shape == (batch, z_dim)
    assert bool(jnp.all(jnp.isfinite(mu))) and bool(jnp.all(jnp.isfinite(logvar)))

    # Numerical check against the pure-JAX/XLA reference of the same forward graph
    # (loose tolerance: kernel feeds the MXU bf16 weights/activations, f32 accumulate).
    mu_ref, logvar_ref = plain_encoder_reference(params, x)
    np.testing.assert_allclose(np.asarray(mu), np.asarray(mu_ref), rtol=0.1, atol=0.05)
    np.testing.assert_allclose(np.asarray(logvar), np.asarray(logvar_ref), rtol=0.1, atol=0.05)

    print("KERNEL_OK")
</pallas_src>

<mosaic_0001>
module attributes {stable_mosaic.version = 11 : i64} {
  func.func @kernel(%arg0: memref<64x96xf32, #tpu.memory_space<vmem>>, %arg1: memref<96x128xbf16, #tpu.memory_space<vmem>>, %arg2: memref<1x128xf32, #tpu.memory_space<vmem>>, %arg3: memref<384x128xbf16, #tpu.memory_space<vmem>>, %arg4: memref<1x128xf32, #tpu.memory_space<vmem>>, %arg5: memref<384x128xbf16, #tpu.memory_space<vmem>>, %arg6: memref<1x128xf32, #tpu.memory_space<vmem>>, %arg7: memref<128x128xbf16, #tpu.memory_space<vmem>>, %arg8: memref<1x128xf32, #tpu.memory_space<vmem>>, %arg9: memref<384x128xbf16, #tpu.memory_space<vmem>>, %arg10: memref<1x128xf32, #tpu.memory_space<vmem>>, %arg11: memref<384x128xbf16, #tpu.memory_space<vmem>>, %arg12: memref<1x128xf32, #tpu.memory_space<vmem>>, %arg13: memref<128x128xbf16, #tpu.memory_space<vmem>>, %arg14: memref<1x128xf32, #tpu.memory_space<vmem>>, %arg15: memref<384x128xbf16, #tpu.memory_space<vmem>>, %arg16: memref<1x128xf32, #tpu.memory_space<vmem>>, %arg17: memref<384x128xbf16, #tpu.memory_space<vmem>>, %arg18: memref<1x128xf32, #tpu.memory_space<vmem>>, %arg19: memref<128x128xbf16, #tpu.memory_space<vmem>>, %arg20: memref<1x128xf32, #tpu.memory_space<vmem>>, %arg21: memref<384x128xbf16, #tpu.memory_space<vmem>>, %arg22: memref<1x128xf32, #tpu.memory_space<vmem>>, %arg23: memref<384x128xbf16, #tpu.memory_space<vmem>>, %arg24: memref<1x128xf32, #tpu.memory_space<vmem>>, %arg25: memref<128x128xbf16, #tpu.memory_space<vmem>>, %arg26: memref<1x128xf32, #tpu.memory_space<vmem>>, %arg27: memref<384x128xbf16, #tpu.memory_space<vmem>>, %arg28: memref<1x128xf32, #tpu.memory_space<vmem>>, %arg29: memref<384x128xbf16, #tpu.memory_space<vmem>>, %arg30: memref<1x128xf32, #tpu.memory_space<vmem>>, %arg31: memref<128x128xbf16, #tpu.memory_space<vmem>>, %arg32: memref<1x128xf32, #tpu.memory_space<vmem>>, %arg33: memref<128x16xbf16, #tpu.memory_space<vmem>>, %arg34: memref<1x16xf32, #tpu.memory_space<vmem>>, %arg35: memref<2x16xf32, #tpu.memory_space<vmem>>, %arg36: memref<88x128xf32, #tpu.memory_space<vmem>>, %arg37: memref<56x128xf32, #tpu.memory_space<vmem>>, %arg38: memref<56x128xf32, #tpu.memory_space<vmem>>, %arg39: memref<40x128xf32, #tpu.memory_space<vmem>>, %arg40: memref<40x128xf32, #tpu.memory_space<vmem>>, %arg41: memref<24x128xf32, #tpu.memory_space<vmem>>, %arg42: memref<24x128xf32, #tpu.memory_space<vmem>>, %arg43: memref<24x128xf32, #tpu.memory_space<vmem>>, %arg44: memref<24x128xf32, #tpu.memory_space<vmem>>, %arg45: memref<24x128xf32, #tpu.memory_space<vmem>>, %arg46: memref<24x128xf32, #tpu.memory_space<vmem>>) attributes {dimension_semantics = [], scalar_prefetch = 0 : i64, scratch_operands = 11 : i64, tpu.core_type = #tpu.core_type<tc>} {
    %c0 = arith.constant 0 : index
    %c0_0 = arith.constant 0 : index
    %0 = vector.load %arg0[%c0, %c0_0] : memref<64x96xf32, #tpu.memory_space<vmem>>, vector<32x96xf32>
    %c32 = arith.constant 32 : index
    %c0_1 = arith.constant 0 : index
    %1 = vector.load %arg0[%c32, %c0_1] : memref<64x96xf32, #tpu.memory_space<vmem>>, vector<32x96xf32>
    %2 = tpu.concatenate %0, %1 in 0 : vector<32x96xf32>, vector<32x96xf32> -> vector<64x96xf32>
    %3 = arith.truncf %2 : vector<64x96xf32> to vector<64x96xbf16>
    %c0_2 = arith.constant 0 : index
    %c0_3 = arith.constant 0 : index
    %4 = vector.load %arg1[%c0_2, %c0_3] : memref<96x128xbf16, #tpu.memory_space<vmem>>, vector<96x128xbf16>
    %cst = arith.constant dense<0.000000e+00> : vector<64x128xf32>
    %5 = tpu.matmul %3, %4, %cst {dimension_numbers = #tpu.dot_dimension_numbers<[1], [0], [0], [1], [0, 0, 1, 1], [], []>} : vector<64x96xbf16>, vector<96x128xbf16>, vector<64x128xf32> -> vector<64x128xf32>
    %c0_4 = arith.constant 0 : index
    %c0_5 = arith.constant 0 : index
    %6 = vector.load %arg2[%c0_4, %c0_5] : memref<1x128xf32, #tpu.memory_space<vmem>>, vector<1x128xf32>
    %7 = vector.broadcast %6 : vector<1x128xf32> to vector<64x128xf32>
    %8 = arith.addf %5, %7 : vector<64x128xf32>
    %cst_6 = arith.constant 0.000000e+00 : f32
    %9 = vector.broadcast %cst_6 : f32 to vector<8x128xf32>
    %c0_7 = arith.constant 0 : index
    %c0_8 = arith.constant 0 : index
    %10 = vector.load %arg36[%c0_7, %c0_8] : memref<88x128xf32, #tpu.memory_space<vmem>>, vector<8x128xf32>
    tpu.vector_store %arg36[%c0_7, %c0_8], %9 {strides = array<i32>} : memref<88x128xf32, #tpu.memory_space<vmem>>, vector<8x128xf32>,
    %11 = vector.extract_strided_slice %8 {offsets = [0, 0], sizes = [32, 128], strides = [1, 1]} : vector<64x128xf32> to vector<32x128xf32>
    %c8 = arith.constant 8 : index
    %c0_9 = arith.constant 0 : index
    %12 = vector.load %arg36[%c8, %c0_9] : memref<88x128xf32, #tpu.memory_space<vmem>>, vector<32x128xf32>
    tpu.vector_store %arg36[%c8, %c0_9], %11 {strides = array<i32>} : memref<88x128xf32, #tpu.memory_space<vmem>>, vector<32x128xf32>,
    %cst_10 = arith.constant 0.000000e+00 : f32
    %13 = vector.broadcast %cst_10 : f32 to vector<8x128xf32>
    %c40 = arith.constant 40 : index
    %c0_11 = arith.constant 0 : index
    %14 = vector.load %arg36[%c40, %c0_11] : memref<88x128xf32, #tpu.memory_space<vmem>>, vector<8x128xf32>
    tpu.vector_store %arg36[%c40, %c0_11], %13 {strides = array<i32>} : memref<88x128xf32, #tpu.memory_space<vmem>>, vector<8x128xf32>,
    %15 = vector.extract_strided_slice %8 {offsets = [32, 0], sizes = [32, 128], strides = [1, 1]} : vector<64x128xf32> to vector<32x128xf32>
    %c48 = arith.constant 48 : index
    %c0_12 = arith.constant 0 : index
    %16 = vector.load %arg36[%c48, %c0_12] : memref<88x128xf32, #tpu.memory_space<vmem>>, vector<32x128xf32>
    tpu.vector_store %arg36[%c48, %c0_12], %15 {strides = array<i32>} : memref<88x128xf32, #tpu.memory_space<vmem>>, vector<32x128xf32>,
    %cst_13 = arith.constant 0.000000e+00 : f32
    %17 = vector.broadcast %cst_13 : f32 to vector<8x128xf32>
    %c80 = arith.constant 80 : index
    %c0_14 = arith.constant 0 : index
    %18 = vector.load %arg36[%c80, %c0_14] : memref<88x128xf32, #tpu.memory_space<vmem>>, vector<8x128xf32>
    tpu.vector_store %arg36[%c80, %c0_14], %17 {strides = array<i32>} : memref<88x128xf32, #tpu.memory_space<vmem>>, vector<8x128xf32>,
    %c7 = arith.constant 7 : index
    %c0_15 = arith.constant 0 : index
    %19 = tpu.strided_load %arg36[%c7, %c0_15] {strides = array<i32: 2, 1>} : memref<88x128xf32, #tpu.memory_space<vmem>>, vector<16x128xf32>
    %c47 = arith.constant 47 : index
    %c0_16 = arith.constant 0 : index
    %20 = tpu.strided_load %arg36[%c47, %c0_16] {strides = array<i32: 2, 1>} : memref<88x128xf32, #tpu.memory_space<vmem>>, vector<16x128xf32>
    %21 = tpu.concatenate %19, %20 in 0 : vector<16x128xf32>, vector<16x128xf32> -> vector<32x128xf32>
    %22 = arith.truncf %21 : vector<32x128xf32> to vector<32x128xbf16>
    %c8_17 = arith.constant 8 : index
    %c0_18 = arith.constant 0 : index
    %23 = tpu.strided_load %arg36[%c8_17, %c0_18] {strides = array<i32: 2, 1>} : memref<88x128xf32, #tpu.memory_space<vmem>>, vector<16x128xf32>
    %c48_19 = arith.constant 48 : index
    %c0_20 = arith.constant 0 : index
    %24 = tpu.strided_load %arg36[%c48_19, %c0_20] {strides = array<i32: 2, 1>} : memref<88x128xf32, #tpu.memory_space<vmem>>, vector<16x128xf32>
    %25 = tpu.concatenate %23, %24 in 0 : vector<16x128xf32>, vector<16x128xf32> -> vector<32x128xf32>
    %26 = arith.truncf %25 : vector<32x128xf32> to vector<32x128xbf16>
    %c9 = arith.constant 9 : index
    %c0_21 = arith.constant 0 : index
    %27 = tpu.strided_load %arg36[%c9, %c0_21] {strides = array<i32: 2, 1>} : memref<88x128xf32, #tpu.memory_space<vmem>>, vector<16x128xf32>
    %c49 = arith.constant 49 : index
    %c0_22 = arith.constant 0 : index
    %28 = tpu.strided_load %arg36[%c49, %c0_22] {strides = array<i32: 2, 1>} : memref<88x128xf32, #tpu.memory_space<vmem>>, vector<16x128xf32>
    %29 = tpu.concatenate %27, %28 in 0 : vector<16x128xf32>, vector<16x128xf32> -> vector<32x128xf32>
    %30 = arith.truncf %29 : vector<32x128xf32> to vector<32x128xbf16>
    %31 = tpu.concatenate %22, %26, %30 in 1 : vector<32x128xbf16>, vector<32x128xbf16>, vector<32x128xbf16> -> vector<32x384xbf16>
    %c0_23 = arith.constant 0 : index
    %c0_24 = arith.constant 0 : index
    %32 = vector.load %arg3[%c0_23, %c0_24] : memref<384x128xbf16, #tpu.memory_space<vmem>>, vector<384x128xbf16>
    %cst_25 = arith.constant dense<0.000000e+00> : vector<32x128xf32>
    %33 = tpu.matmul %31, %32, %cst_25 {dimension_numbers = #tpu.dot_dimension_numbers<[1], [0], [0], [1], [0, 0, 1, 1], [], []>} : vector<32x384xbf16>, vector<384x128xbf16>, vector<32x128xf32> -> vector<32x128xf32>
    %c0_26 = arith.constant 0 : index
    %c0_27 = arith.constant 0 : index
    %34 = vector.load %arg4[%c0_26, %c0_27] : memref<1x128xf32, #tpu.memory_space<vmem>>, vector<1x128xf32>
    %35 = vector.broadcast %34 : vector<1x128xf32> to vector<32x128xf32>
    %36 = arith.addf %33, %35 : vector<32x128xf32>
    %37 = arith.negf %36 : vector<32x128xf32>
    %38 = math.exp %37 : vector<32x128xf32>
    %cst_28 = arith.constant 1.000000e+00 : f32
    %39 = vector.broadcast %cst_28 : f32 to vector<32x128xf32>
    %40 = arith.addf %39, %38 : vector<32x128xf32>
    %41 = arith.divf %39, %40 : vector<32x128xf32>
    %42 = arith.mulf %36, %41 : vector<32x128xf32>
    %cst_29 = arith.constant 0.000000e+00 : f32
    %43 = vector.broadcast %cst_29 : f32 to vector<8x128xf32>
    %c0_30 = arith.constant 0 : index
    %c0_31 = arith.constant 0 : index
    %44 = vector.load %arg37[%c0_30, %c0_31] : memref<56x128xf32, #tpu.memory_space<vmem>>, vector<8x128xf32>
    tpu.vector_store %arg37[%c0_30, %c0_31], %43 {strides = array<i32>} : memref<56x128xf32, #tpu.memory_space<vmem>>, vector<8x128xf32>,
    %45 = vector.extract_strided_slice %42 {offsets = [0, 0], sizes = [16, 128], strides = [1, 1]} : vector<32x128xf32> to vector<16x128xf32>
    %c8_32 = arith.constant 8 : index
    %c0_33 = arith.constant 0 : index
    %46 = vector.load %arg37[%c8_32, %c0_33] : memref<56x128xf32, #tpu.memory_space<vmem>>, vector<16x128xf32>
    tpu.vector_store %arg37[%c8_32, %c0_33], %45 {strides = array<i32>} : memref<56x128xf32, #tpu.memory_space<vmem>>, vector<16x128xf32>,
    %cst_34 = arith.constant 0.000000e+00 : f32
    %47 = vector.broadcast %cst_34 : f32 to vector<8x128xf32>
    %c24 = arith.constant 24 : index
    %c0_35 = arith.constant 0 : index
    %48 = vector.load %arg37[%c24, %c0_35] : memref<56x128xf32, #tpu.memory_space<vmem>>, vector<8x128xf32>
    tpu.vector_store %arg37[%c24, %c0_35], %47 {strides = array<i32>} : memref<56x128xf32, #tpu.memory_space<vmem>>, vector<8x128xf32>,
    %49 = vector.extract_strided_slice %42 {offsets = [16, 0], sizes = [16, 128], strides = [1, 1]} : vector<32x128xf32> to vector<16x128xf32>
    %c32_36 = arith.constant 32 : index
    %c0_37 = arith.constant 0 : index
    %50 = vector.load %arg37[%c32_36, %c0_37] : memref<56x128xf32, #tpu.memory_space<vmem>>, vector<16x128xf32>
    tpu.vector_store %arg37[%c32_36, %c0_37], %49 {strides = array<i32>} : memref<56x128xf32, #tpu.memory_space<vmem>>, vector<16x128xf32>,
    %cst_38 = arith.constant 0.000000e+00 : f32
    %51 = vector.broadcast %cst_38 : f32 to vector<8x128xf32>
    %c48_39 = arith.constant 48 : index
    %c0_40 = arith.constant 0 : index
    %52 = vector.load %arg37[%c48_39, %c0_40] : memref<56x128xf32, #tpu.memory_space<vmem>>, vector<8x128xf32>
    tpu.vector_store %arg37[%c48_39, %c0_40], %51 {strides = array<i32>} : memref<56x128xf32, #tpu.memory_space<vmem>>, vector<8x128xf32>,
    %c0_41 = arith.constant 0 : index
    %c0_42 = arith.constant 0 : index
    %53 = vector.load %arg7[%c0_41, %c0_42] : memref<128x128xbf16, #tpu.memory_space<vmem>>, vector<128x128xbf16>
    %cst_43 = arith.constant dense<0.000000e+00> : vector<32x128xf32>
    %54 = tpu.matmul %26, %53, %cst_43 {dimension_numbers = #tpu.dot_dimension_numbers<[1], [0], [0], [1], [0, 0, 1, 1], [], []>} : vector<32x128xbf16>, vector<128x128xbf16>, vector<32x128xf32> -> vector<32x128xf32>
    %c0_44 = arith.constant 0 : index
    %c0_45 = arith.constant 0 : index
    %55 = vector.load %arg8[%c0_44, %c0_45] : memref<1x128xf32, #tpu.memory_space<vmem>>, vector<1x128xf32>
    %56 = vector.broadcast %55 : vector<1x128xf32> to vector<32x128xf32>
    %57 = arith.addf %54, %56 : vector<32x128xf32>
    %c7_46 = arith.constant 7 : index
    %c0_47 = arith.constant 0 : index
    %58 = vector.load %arg37[%c7_46, %c0_47] : memref<56x128xf32, #tpu.memory_space<vmem>>, vector<16x128xf32>
    %c31 = arith.constant 31 : index
    %c0_48 = arith.constant 0 : index
    %59 = vector.load %arg37[%c31, %c0_48] : memref<56x128xf32, #tpu.memory_space<vmem>>, vector<16x128xf32>
    %60 = tpu.concatenate %58, %59 in 0 : vector<16x128xf32>, vector<16x128xf32> -> vector<32x128xf32>
    %61 = arith.truncf %60 : vector<32x128xf32> to vector<32x128xbf16>
    %c8_49 = arith.constant 8 : index
    %c0_50 = arith.constant 0 : index
    %62 = vector.load %arg37[%c8_49, %c0_50] : memref<56x128xf32, #tpu.memory_space<vmem>>, vector<16x128xf32>
    %c32_51 = arith.constant 32 : index
    %c0_52 = arith.constant 0 : index
    %63 = vector.load %arg37[%c32_51, %c0_52] : memref<56x128xf32, #tpu.memory_space<vmem>>, vector<16x128xf32>
    %64 = tpu.concatenate %62, %63 in 0 : vector<16x128xf32>, vector<16x128xf32> -> vector<32x128xf32>
    %65 = arith.truncf %64 : vector<32x128xf32> to vector<32x128xbf16>
    %c9_53 = arith.constant 9 : index
    %c0_54 = arith.constant 0 : index
    %66 = vector.load %arg37[%c9_53, %c0_54] : memref<56x128xf32, #tpu.memory_space<vmem>>, vector<16x128xf32>
    %c33 = arith.constant 33 : index
    %c0_55 = arith.constant 0 : index
    %67 = vector.load %arg37[%c33, %c0_55] : memref<56x128xf32, #tpu.memory_space<vmem>>, vector<16x128xf32>
    %68 = tpu.concatenate %66, %67 in 0 : vector<16x128xf32>, vector<16x128xf32> -> vector<32x128xf32>
    %69 = arith.truncf %68 : vector<32x128xf32> to vector<32x128xbf16>
    %70 = tpu.concatenate %61, %65, %69 in 1 : vector<32x128xbf16>, vector<32x128xbf16>, vector<32x128xbf16> -> vector<32x384xbf16>
    %c0_56 = arith.constant 0 : index
    %c0_57 = arith.constant 0 : index
    %71 = vector.load %arg5[%c0_56, %c0_57] : memref<384x128xbf16, #tpu.memory_space<vmem>>, vector<384x128xbf16>
    %cst_58 = arith.constant dense<0.000000e+00> : vector<32x128xf32>
    %72 = tpu.matmul %70, %71, %cst_58 {dimension_numbers = #tpu.dot_dimension_numbers<[1], [0], [0], [1], [0, 0, 1, 1], [], []>} : vector<32x384xbf16>, vector<384x128xbf16>, vector<32x128xf32> -> vector<32x128xf32>
    %c0_59 = arith.constant 0 : index
    %c0_60 = arith.constant 0 : index
    %73 = vector.load %arg6[%c0_59, %c0_60] : memref<1x128xf32, #tpu.memory_space<vmem>>, vector<1x128xf32>
    %74 = vector.broadcast %73 : vector<1x128xf32> to vector<32x128xf32>
    %75 = arith.addf %72, %74 : vector<32x128xf32>
    %76 = arith.addf %75, %57 : vector<32x128xf32>
    %77 = arith.negf %76 : vector<32x128xf32>
    %78 = math.exp %77 : vector<32x128xf32>
    %cst_61 = arith.constant 1.000000e+00 : f32
    %79 = vector.broadcast %cst_61 : f32 to vector<32x128xf32>
    %80 = arith.addf %79, %78 : vector<32x128xf32>
    %81 = arith.divf %79, %80 : vector<32x128xf32>
    %82 = arith.mulf %76, %81 : vector<32x128xf32>
    %cst_62 = arith.constant 0.000000e+00 : f32
    %83 = vector.broadcast %cst_62 : f32 to vector<8x128xf32>
    %c0_63 = arith.constant 0 : index
    %c0_64 = arith.constant 0 : index
    %84 = vector.load %arg38[%c0_63, %c0_64] : memref<56x128xf32, #tpu.memory_space<vmem>>, vector<8x128xf32>
    tpu.vector_store %arg38[%c0_63, %c0_64], %83 {strides = array<i32>} : memref<56x128xf32, #tpu.memory_space<vmem>>, vector<8x128xf32>,
    %85 = vector.extract_strided_slice %82 {offsets = [0, 0], sizes = [16, 128], strides = [1, 1]} : vector<32x128xf32> to vector<16x128xf32>
    %c8_65 = arith.constant 8 : index
    %c0_66 = arith.constant 0 : index
    %86 = vector.load %arg38[%c8_65, %c0_66] : memref<56x128xf32, #tpu.memory_space<vmem>>, vector<16x128xf32>
    tpu.vector_store %arg38[%c8_65, %c0_66], %85 {strides = array<i32>} : memref<56x128xf32, #tpu.memory_space<vmem>>, vector<16x128xf32>,
    %cst_67 = arith.constant 0.000000e+00 : f32
    %87 = vector.broadcast %cst_67 : f32 to vector<8x128xf32>
    %c24_68 = arith.constant 24 : index
    %c0_69 = arith.constant 0 : index
    %88 = vector.load %arg38[%c24_68, %c0_69] : memref<56x128xf32, #tpu.memory_space<vmem>>, vector<8x128xf32>
    tpu.vector_store %arg38[%c24_68, %c0_69], %87 {strides = array<i32>} : memref<56x128xf32, #tpu.memory_space<vmem>>, vector<8x128xf32>,
    %89 = vector.extract_strided_slice %82 {offsets = [16, 0], sizes = [16, 128], strides = [1, 1]} : vector<32x128xf32> to vector<16x128xf32>
    %c32_70 = arith.constant 32 : index
    %c0_71 = arith.constant 0 : index
    %90 = vector.load %arg38[%c32_70, %c0_71] : memref<56x128xf32, #tpu.memory_space<vmem>>, vector<16x128xf32>
    tpu.vector_store %arg38[%c32_70, %c0_71], %89 {strides = array<i32>} : memref<56x128xf32, #tpu.memory_space<vmem>>, vector<16x128xf32>,
    %cst_72 = arith.constant 0.000000e+00 : f32
    %91 = vector.broadcast %cst_72 : f32 to vector<8x128xf32>
    %c48_73 = arith.constant 48 : index
    %c0_74 = arith.constant 0 : index
    %92 = vector.load %arg38[%c48_73, %c0_74] : memref<56x128xf32, #tpu.memory_space<vmem>>, vector<8x128xf32>
    tpu.vector_store %arg38[%c48_73, %c0_74], %91 {strides = array<i32>} : memref<56x128xf32, #tpu.memory_space<vmem>>, vector<8x128xf32>,
    %c7_75 = arith.constant 7 : index
    %c0_76 = arith.constant 0 : index
    %93 = tpu.strided_load %arg38[%c7_75, %c0_76] {strides = array<i32: 2, 1>} : memref<56x128xf32, #tpu.memory_space<vmem>>, vector<8x128xf32>
    %c31_77 = arith.constant 31 : index
    %c0_78 = arith.constant 0 : index
    %94 = tpu.strided_load %arg38[%c31_77, %c0_78] {strides = array<i32: 2, 1>} : memref<56x128xf32, #tpu.memory_space<vmem>>, vector<8x128xf32>
    %95 = tpu.concatenate %93, %94 in 0 : vector<8x128xf32>, vector<8x128xf32> -> vector<16x128xf32>
    %96 = arith.truncf %95 : vector<16x128xf32> to vector<16x128xbf16>
    %c8_79 = arith.constant 8 : index
    %c0_80 = arith.constant 0 : index
    %97 = tpu.strided_load %arg38[%c8_79, %c0_80] {strides = array<i32: 2, 1>} : memref<56x128xf32, #tpu.memory_space<vmem>>, vector<8x128xf32>
    %c32_81 = arith.constant 32 : index
    %c0_82 = arith.constant 0 : index
    %98 = tpu.strided_load %arg38[%c32_81, %c0_82] {strides = array<i32: 2, 1>} : memref<56x128xf32, #tpu.memory_space<vmem>>, vector<8x128xf32>
    %99 = tpu.concatenate %97, %98 in 0 : vector<8x128xf32>, vector<8x128xf32> -> vector<16x128xf32>
    %100 = arith.truncf %99 : vector<16x128xf32> to vector<16x128xbf16>
    %c9_83 = arith.constant 9 : index
    %c0_84 = arith.constant 0 : index
    %101 = tpu.strided_load %arg38[%c9_83, %c0_84] {strides = array<i32: 2, 1>} : memref<56x128xf32, #tpu.memory_space<vmem>>, vector<8x128xf32>
    %c33_85 = arith.constant 33 : index
    %c0_86 = arith.constant 0 : index
    %102 = tpu.strided_load %arg38[%c33_85, %c0_86] {strides = array<i32: 2, 1>} : memref<56x128xf32, #tpu.memory_space<vmem>>, vector<8x128xf32>
    %103 = tpu.concatenate %101, %102 in 0 : vector<8x128xf32>, vector<8x128xf32> -> vector<16x128xf32>
    %104 = arith.truncf %103 : vector<16x128xf32> to vector<16x128xbf16>
    %105 = tpu.concatenate %96, %100, %104 in 1 : vector<16x128xbf16>, vector<16x128xbf16>, vector<16x128xbf16> -> vector<16x384xbf16>
    %c0_87 = arith.constant 0 : index
    %c0_88 = arith.constant 0 : index
    %106 = vector.load %arg9[%c0_87, %c0_88] : memref<384x128xbf16, #tpu.memory_space<vmem>>, vector<384x128xbf16>
    %cst_89 = arith.constant dense<0.000000e+00> : vector<16x128xf32>
    %107 = tpu.matmul %105, %106, %cst_89 {dimension_numbers = #tpu.dot_dimension_numbers<[1], [0], [0], [1], [0, 0, 1, 1], [], []>} : vector<16x384xbf16>, vector<384x128xbf16>, vector<16x128xf32> -> vector<16x128xf32>
    %c0_90 = arith.constant 0 : index
    %c0_91 = arith.constant 0 : index
    %108 = vector.load %arg10[%c0_90, %c0_91] : memref<1x128xf32, #tpu.memory_space<vmem>>, vector<1x128xf32>
    %109 = vector.broadcast %108 : vector<1x128xf32> to vector<16x128xf32>
    %110 = arith.addf %107, %109 : vector<16x128xf32>
    %111 = arith.negf %110 : vector<16x128xf32>
    %112 = math.exp %111 : vector<16x128xf32>
    %cst_92 = arith.constant 1.000000e+00 : f32
    %113 = vector.broadcast %cst_92 : f32 to vector<16x128xf32>
    %114 = arith.addf %113, %112 : vector<16x128xf32>
    %115 = arith.divf %113, %114 : vector<16x128xf32>
    %116 = arith.mulf %110, %115 : vector<16x128xf32>
    %cst_93 = arith.constant 0.000000e+00 : f32
    %117 = vector.broadcast %cst_93 : f32 to vector<8x128xf32>
    %c0_94 = arith.constant 0 : index
    %c0_95 = arith.constant 0 : index
    %118 = vector.load %arg39[%c0_94, %c0_95] : memref<40x128xf32, #tpu.memory_space<vmem>>, vector<8x128xf32>
    tpu.vector_store %arg39[%c0_94, %c0_95], %117 {strides = array<i32>} : memref<40x128xf32, #tpu.memory_space<vmem>>, vector<8x128xf32>,
    %119 = vector.extract_strided_slice %116 {offsets = [0, 0], sizes = [8, 128], strides = [1, 1]} : vector<16x128xf32> to vector<8x128xf32>
    %c8_96 = arith.constant 8 : index
    %c0_97 = arith.constant 0 : index
    %120 = vector.load %arg39[%c8_96, %c0_97] : memref<40x128xf32, #tpu.memory_space<vmem>>, vector<8x128xf32>
    tpu.vector_store %arg39[%c8_96, %c0_97], %119 {strides = array<i32>} : memref<40x128xf32, #tpu.memory_space<vmem>>, vector<8x128xf32>,
    %cst_98 = arith.constant 0.000000e+00 : f32
    %121 = vector.broadcast %cst_98 : f32 to vector<8x128xf32>
    %c16 = arith.constant 16 : index
    %c0_99 = arith.constant 0 : index
    %122 = vector.load %arg39[%c16, %c0_99] : memref<40x128xf32, #tpu.memory_space<vmem>>, vector<8x128xf32>
    tpu.vector_store %arg39[%c16, %c0_99], %121 {strides = array<i32>} : memref<40x128xf32, #tpu.memory_space<vmem>>, vector<8x128xf32>,
    %123 = vector.extract_strided_slice %116 {offsets = [8, 0], sizes = [8, 128], strides = [1, 1]} : vector<16x128xf32> to vector<8x128xf32>
    %c24_100 = arith.constant 24 : index
    %c0_101 = arith.constant 0 : index
    %124 = vector.load %arg39[%c24_100, %c0_101] : memref<40x128xf32, #tpu.memory_space<vmem>>, vector<8x128xf32>
    tpu.vector_store %arg39[%c24_100, %c0_101], %123 {strides = array<i32>} : memref<40x128xf32, #tpu.memory_space<vmem>>, vector<8x128xf32>,
    %cst_102 = arith.constant 0.000000e+00 : f32
    %125 = vector.broadcast %cst_102 : f32 to vector<8x128xf32>
    %c32_103 = arith.constant 32 : index
    %c0_104 = arith.constant 0 : index
    %126 = vector.load %arg39[%c32_103, %c0_104] : memref<40x128xf32, #tpu.memory_space<vmem>>, vector<8x128xf32>
    tpu.vector_store %arg39[%c32_103, %c0_104], %125 {strides = array<i32>} : memref<40x128xf32, #tpu.memory_space<vmem>>, vector<8x128xf32>,
    %c0_105 = arith.constant 0 : index
    %c0_106 = arith.constant 0 : index
    %127 = vector.load %arg13[%c0_105, %c0_106] : memref<128x128xbf16, #tpu.memory_space<vmem>>, vector<128x128xbf16>
    %cst_107 = arith.constant dense<0.000000e+00> : vector<16x128xf32>
    %128 = tpu.matmul %100, %127, %cst_107 {dimension_numbers = #tpu.dot_dimension_numbers<[1], [0], [0], [1], [0, 0, 1, 1], [], []>} : vector<16x128xbf16>, vector<128x128xbf16>, vector<16x128xf32> -> vector<16x128xf32>
    %c0_108 = arith.constant 0 : index
    %c0_109 = arith.constant 0 : index
    %129 = vector.load %arg14[%c0_108, %c0_109] : memref<1x128xf32, #tpu.memory_space<vmem>>, vector<1x128xf32>
    %130 = vector.broadcast %129 : vector<1x128xf32> to vector<16x128xf32>
    %131 = arith.addf %128, %130 : vector<16x128xf32>
    %c7_110 = arith.constant 7 : index
    %c0_111 = arith.constant 0 : index
    %132 = vector.load %arg39[%c7_110, %c0_111] : memref<40x128xf32, #tpu.memory_space<vmem>>, vector<8x128xf32>
    %c23 = arith.constant 23 : index
    %c0_112 = arith.constant 0 : index
    %133 = vector.load %arg39[%c23, %c0_112] : memref<40x128xf32, #tpu.memory_space<vmem>>, vector<8x128xf32>
    %134 = tpu.concatenate %132, %133 in 0 : vector<8x128xf32>, vector<8x128xf32> -> vector<16x128xf32>
    %135 = arith.truncf %134 : vector<16x128xf32> to vector<16x128xbf16>
    %c8_113 = arith.constant 8 : index
    %c0_114 = arith.constant 0 : index
    %136 = vector.load %arg39[%c8_113, %c0_114] : memref<40x128xf32, #tpu.memory_space<vmem>>, vector<8x128xf32>
    %c24_115 = arith.constant 24 : index
    %c0_116 = arith.constant 0 : index
    %137 = vector.load %arg39[%c24_115, %c0_116] : memref<40x128xf32, #tpu.memory_space<vmem>>, vector<8x128xf32>
    %138 = tpu.concatenate %136, %137 in 0 : vector<8x128xf32>, vector<8x128xf32> -> vector<16x128xf32>
    %139 = arith.truncf %138 : vector<16x128xf32> to vector<16x128xbf16>
    %c9_117 = arith.constant 9 : index
    %c0_118 = arith.constant 0 : index
    %140 = vector.load %arg39[%c9_117, %c0_118] : memref<40x128xf32, #tpu.memory_space<vmem>>, vector<8x128xf32>
    %c25 = arith.constant 25 : index
    %c0_119 = arith.constant 0 : index
    %141 = vector.load %arg39[%c25, %c0_119] : memref<40x128xf32, #tpu.memory_space<vmem>>, vector<8x128xf32>
    %142 = tpu.concatenate %140, %141 in 0 : vector<8x128xf32>, vector<8x128xf32> -> vector<16x128xf32>
    %143 = arith.truncf %142 : vector<16x128xf32> to vector<16x128xbf16>
    %144 = tpu.concatenate %135, %139, %143 in 1 : vector<16x128xbf16>, vector<16x128xbf16>, vector<16x128xbf16> -> vector<16x384xbf16>
    %c0_120 = arith.constant 0 : index
    %c0_121 = arith.constant 0 : index
    %145 = vector.load %arg11[%c0_120, %c0_121] : memref<384x128xbf16, #tpu.memory_space<vmem>>, vector<384x128xbf16>
    %cst_122 = arith.constant dense<0.000000e+00> : vector<16x128xf32>
    %146 = tpu.matmul %144, %145, %cst_122 {dimension_numbers = #tpu.dot_dimension_numbers<[1], [0], [0], [1], [0, 0, 1, 1], [], []>} : vector<16x384xbf16>, vector<384x128xbf16>, vector<16x128xf32> -> vector<16x128xf32>
    %c0_123 = arith.constant 0 : index
    %c0_124 = arith.constant 0 : index
    %147 = vector.load %arg12[%c0_123, %c0_124] : memref<1x128xf32, #tpu.memory_space<vmem>>, vector<1x128xf32>
    %148 = vector.broadcast %147 : vector<1x128xf32> to vector<16x128xf32>
    %149 = arith.addf %146, %148 : vector<16x128xf32>
    %150 = arith.addf %149, %131 : vector<16x128xf32>
    %151 = arith.negf %150 : vector<16x128xf32>
    %152 = math.exp %151 : vector<16x128xf32>
    %cst_125 = arith.constant 1.000000e+00 : f32
    %153 = vector.broadcast %cst_125 : f32 to vector<16x128xf32>
    %154 = arith.addf %153, %152 : vector<16x128xf32>
    %155 = arith.divf %153, %154 : vector<16x128xf32>
    %156 = arith.mulf %150, %155 : vector<16x128xf32>
    %cst_126 = arith.constant 0.000000e+00 : f32
    %157 = vector.broadcast %cst_126 : f32 to vector<8x128xf32>
    %c0_127 = arith.constant 0 : index
    %c0_128 = arith.constant 0 : index
    %158 = vector.load %arg40[%c0_127, %c0_128] : memref<40x128xf32, #tpu.memory_space<vmem>>, vector<8x128xf32>
    tpu.vector_store %arg40[%c0_127, %c0_128], %157 {strides = array<i32>} : memref<40x128xf32, #tpu.memory_space<vmem>>, vector<8x128xf32>,
    %159 = vector.extract_strided_slice %156 {offsets = [0, 0], sizes = [8, 128], strides = [1, 1]} : vector<16x128xf32> to vector<8x128xf32>
    %c8_129 = arith.constant 8 : index
    %c0_130 = arith.constant 0 : index
    %160 = vector.load %arg40[%c8_129, %c0_130] : memref<40x128xf32, #tpu.memory_space<vmem>>, vector<8x128xf32>
    tpu.vector_store %arg40[%c8_129, %c0_130], %159 {strides = array<i32>} : memref<40x128xf32, #tpu.memory_space<vmem>>, vector<8x128xf32>,
    %cst_131 = arith.constant 0.000000e+00 : f32
    %161 = vector.broadcast %cst_131 : f32 to vector<8x128xf32>
    %c16_132 = arith.constant 16 : index
    %c0_133 = arith.constant 0 : index
    %162 = vector.load %arg40[%c16_132, %c0_133] : memref<40x128xf32, #tpu.memory_space<vmem>>, vector<8x128xf32>
    tpu.vector_store %arg40[%c16_132, %c0_133], %161 {strides = array<i32>} : memref<40x128xf32, #tpu.memory_space<vmem>>, vector<8x128xf32>,
    %163 = vector.extract_strided_slice %156 {offsets = [8, 0], sizes = [8, 128], strides = [1, 1]} : vector<16x128xf32> to vector<8x128xf32>
    %c24_134 = arith.constant 24 : index
    %c0_135 = arith.constant 0 : index
    %164 = vector.load %arg40[%c24_134, %c0_135] : memref<40x128xf32, #tpu.memory_space<vmem>>, vector<8x128xf32>
    tpu.vector_store %arg40[%c24_134, %c0_135], %163 {strides = array<i32>} : memref<40x128xf32, #tpu.memory_space<vmem>>, vector<8x128xf32>,
    %cst_136 = arith.constant 0.000000e+00 : f32
    %165 = vector.broadcast %cst_136 : f32 to vector<8x128xf32>
    %c32_137 = arith.constant 32 : index
    %c0_138 = arith.constant 0 : index
    %166 = vector.load %arg40[%c32_137, %c0_138] : memref<40x128xf32, #tpu.memory_space<vmem>>, vector<8x128xf32>
    tpu.vector_store %arg40[%c32_137, %c0_138], %165 {strides = array<i32>} : memref<40x128xf32, #tpu.memory_space<vmem>>, vector<8x128xf32>,
    %c7_139 = arith.constant 7 : index
    %c0_140 = arith.constant 0 : index
    %167 = tpu.strided_load %arg40[%c7_139, %c0_140] {strides = array<i32: 2, 1>} : memref<40x128xf32, #tpu.memory_space<vmem>>, vector<4x128xf32>
    %c23_141 = arith.constant 23 : index
    %c0_142 = arith.constant 0 : index
    %168 = tpu.strided_load %arg40[%c23_141, %c0_142] {strides = array<i32: 2, 1>} : memref<40x128xf32, #tpu.memory_space<vmem>>, vector<4x128xf32>
    %169 = tpu.concatenate %167, %168 in 0 : vector<4x128xf32>, vector<4x128xf32> -> vector<8x128xf32>
    %170 = arith.truncf %169 : vector<8x128xf32> to vector<8x128xbf16>
    %c8_143 = arith.constant 8 : index
    %c0_144 = arith.constant 0 : index
    %171 = tpu.strided_load %arg40[%c8_143, %c0_144] {strides = array<i32: 2, 1>} : memref<40x128xf32, #tpu.memory_space<vmem>>, vector<4x128xf32>
    %c24_145 = arith.constant 24 : index
    %c0_146 = arith.constant 0 : index
    %172 = tpu.strided_load %arg40[%c24_145, %c0_146] {strides = array<i32: 2, 1>} : memref<40x128xf32, #tpu.memory_space<vmem>>, vector<4x128xf32>
    %173 = tpu.concatenate %171, %172 in 0 : vector<4x128xf32>, vector<4x128xf32> -> vector<8x128xf32>
    %174 = arith.truncf %173 : vector<8x128xf32> to vector<8x128xbf16>
    %c9_147 = arith.constant 9 : index
    %c0_148 = arith.constant 0 : index
    %175 = tpu.strided_load %arg40[%c9_147, %c0_148] {strides = array<i32: 2, 1>} : memref<40x128xf32, #tpu.memory_space<vmem>>, vector<4x128xf32>
    %c25_149 = arith.constant 25 : index
    %c0_150 = arith.constant 0 : index
    %176 = tpu.strided_load %arg40[%c25_149, %c0_150] {strides = array<i32: 2, 1>} : memref<40x128xf32, #tpu.memory_space<vmem>>, vector<4x128xf32>
    %177 = tpu.concatenate %175, %176 in 0 : vector<4x128xf32>, vector<4x128xf32> -> vector<8x128xf32>
    %178 = arith.truncf %177 : vector<8x128xf32> to vector<8x128xbf16>
    %179 = tpu.concatenate %170, %174, %178 in 1 : vector<8x128xbf16>, vector<8x128xbf16>, vector<8x128xbf16> -> vector<8x384xbf16>
    %c0_151 = arith.constant 0 : index
    %c0_152 = arith.constant 0 : index
    %180 = vector.load %arg15[%c0_151, %c0_152] : memref<384x128xbf16, #tpu.memory_space<vmem>>, vector<384x128xbf16>
    %cst_153 = arith.constant dense<0.000000e+00> : vector<8x128xf32>
    %181 = tpu.matmul %179, %180, %cst_153 {dimension_numbers = #tpu.dot_dimension_numbers<[1], [0], [0], [1], [0, 0, 1, 1], [], []>} : vector<8x384xbf16>, vector<384x128xbf16>, vector<8x128xf32> -> vector<8x128xf32>
    %c0_154 = arith.constant 0 : index
    %c0_155 = arith.constant 0 : index
    %182 = vector.load %arg16[%c0_154, %c0_155] : memref<1x128xf32, #tpu.memory_space<vmem>>, vector<1x128xf32>
    %183 = vector.broadcast %182 : vector<1x128xf32> to vector<8x128xf32>
    %184 = arith.addf %181, %183 : vector<8x128xf32>
    %185 = arith.negf %184 : vector<8x128xf32>
    %186 = math.exp %185 : vector<8x128xf32>
    %cst_156 = arith.constant 1.000000e+00 : f32
    %187 = vector.broadcast %cst_156 : f32 to vector<8x128xf32>
    %188 = arith.addf %187, %186 : vector<8x128xf32>
    %189 = arith.divf %187, %188 : vector<8x128xf32>
    %190 = arith.mulf %184, %189 : vector<8x128xf32>
    %cst_157 = arith.constant 0.000000e+00 : f32
    %191 = vector.broadcast %cst_157 : f32 to vector<8x128xf32>
    %c0_158 = arith.constant 0 : index
    %c0_159 = arith.constant 0 : index
    %192 = vector.load %arg41[%c0_158, %c0_159] : memref<24x128xf32, #tpu.memory_space<vmem>>, vector<8x128xf32>
    tpu.vector_store %arg41[%c0_158, %c0_159], %191 {strides = array<i32>} : memref<24x128xf32, #tpu.memory_space<vmem>>, vector<8x128xf32>,
    %193 = vector.extract_strided_slice %190 {offsets = [0, 0], sizes = [4, 128], strides = [1, 1]} : vector<8x128xf32> to vector<4x128xf32>
    %c8_160 = arith.constant 8 : index
    %c0_161 = arith.constant 0 : index
    %194 = vector.load %arg41[%c8_160, %c0_161] : memref<24x128xf32, #tpu.memory_space<vmem>>, vector<4x128xf32>
    tpu.vector_store %arg41[%c8_160, %c0_161], %193 {strides = array<i32>} : memref<24x128xf32, #tpu.memory_space<vmem>>, vector<4x128xf32>,
    %cst_162 = arith.constant 0.000000e+00 : f32
    %195 = vector.broadcast %cst_162 : f32 to vector<4x128xf32>
    %c12 = arith.constant 12 : index
    %c0_163 = arith.constant 0 : index
    %196 = vector.load %arg41[%c12, %c0_163] : memref<24x128xf32, #tpu.memory_space<vmem>>, vector<4x128xf32>
    tpu.vector_store %arg41[%c12, %c0_163], %195 {strides = array<i32>} : memref<24x128xf32, #tpu.memory_space<vmem>>, vector<4x128xf32>,
    %197 = vector.extract_strided_slice %190 {offsets = [4, 0], sizes = [4, 128], strides = [1, 1]} : vector<8x128xf32> to vector<4x128xf32>
    %c16_164 = arith.constant 16 : index
    %c0_165 = arith.constant 0 : index
    %198 = vector.load %arg41[%c16_164, %c0_165] : memref<24x128xf32, #tpu.memory_space<vmem>>, vector<4x128xf32>
    tpu.vector_store %arg41[%c16_164, %c0_165], %197 {strides = array<i32>} : memref<24x128xf32, #tpu.memory_space<vmem>>, vector<4x128xf32>,
    %cst_166 = arith.constant 0.000000e+00 : f32
    %199 = vector.broadcast %cst_166 : f32 to vector<4x128xf32>
    %c20 = arith.constant 20 : index
    %c0_167 = arith.constant 0 : index
    %200 = vector.load %arg41[%c20, %c0_167] : memref<24x128xf32, #tpu.memory_space<vmem>>, vector<4x128xf32>
    tpu.vector_store %arg41[%c20, %c0_167], %199 {strides = array<i32>} : memref<24x128xf32, #tpu.memory_space<vmem>>, vector<4x128xf32>,
    %c0_168 = arith.constant 0 : index
    %c0_169 = arith.constant 0 : index
    %201 = vector.load %arg19[%c0_168, %c0_169] : memref<128x128xbf16, #tpu.memory_space<vmem>>, vector<128x128xbf16>
    %cst_170 = arith.constant dense<0.000000e+00> : vector<8x128xf32>
    %202 = tpu.matmul %174, %201, %cst_170 {dimension_numbers = #tpu.dot_dimension_numbers<[1], [0], [0], [1], [0, 0, 1, 1], [], []>} : vector<8x128xbf16>, vector<128x128xbf16>, vector<8x128xf32> -> vector<8x128xf32>
    %c0_171 = arith.constant 0 : index
    %c0_172 = arith.constant 0 : index
    %203 = vector.load %arg20[%c0_171, %c0_172] : memref<1x128xf32, #tpu.memory_space<vmem>>, vector<1x128xf32>
    %204 = vector.broadcast %203 : vector<1x128xf32> to vector<8x128xf32>
    %205 = arith.addf %202, %204 : vector<8x128xf32>
    %c7_173 = arith.constant 7 : index
    %c0_174 = arith.constant 0 : index
    %206 = vector.load %arg41[%c7_173, %c0_174] : memref<24x128xf32, #tpu.memory_space<vmem>>, vector<4x128xf32>
    %c15 = arith.constant 15 : index
    %c0_175 = arith.constant 0 : index
    %207 = vector.load %arg41[%c15, %c0_175] : memref<24x128xf32, #tpu.memory_space<vmem>>, vector<4x128xf32>
    %208 = tpu.concatenate %206, %207 in 0 : vector<4x128xf32>, vector<4x128xf32> -> vector<8x128xf32>
    %209 = arith.truncf %208 : vector<8x128xf32> to vector<8x128xbf16>
    %c8_176 = arith.constant 8 : index
    %c0_177 = arith.constant 0 : index
    %210 = vector.load %arg41[%c8_176, %c0_177] : memref<24x128xf32, #tpu.memory_space<vmem>>, vector<4x128xf32>
    %c16_178 = arith.constant 16 : index
    %c0_179 = arith.constant 0 : index
    %211 = vector.load %arg41[%c16_178, %c0_179] : memref<24x128xf32, #tpu.memory_space<vmem>>, vector<4x128xf32>
    %212 = tpu.concatenate %210, %211 in 0 : vector<4x128xf32>, vector<4x128xf32> -> vector<8x128xf32>
    %213 = arith.truncf %212 : vector<8x128xf32> to vector<8x128xbf16>
    %c9_180 = arith.constant 9 : index
    %c0_181 = arith.constant 0 : index
    %214 = vector.load %arg41[%c9_180, %c0_181] : memref<24x128xf32, #tpu.memory_space<vmem>>, vector<4x128xf32>
    %c17 = arith.constant 17 : index
    %c0_182 = arith.constant 0 : index
    %215 = vector.load %arg41[%c17, %c0_182] : memref<24x128xf32, #tpu.memory_space<vmem>>, vector<4x128xf32>
    %216 = tpu.concatenate %214, %215 in 0 : vector<4x128xf32>, vector<4x128xf32> -> vector<8x128xf32>
    %217 = arith.truncf %216 : vector<8x128xf32> to vector<8x128xbf16>
    %218 = tpu.concatenate %209, %213, %217 in 1 : vector<8x128xbf16>, vector<8x128xbf16>, vector<8x128xbf16> -> vector<8x384xbf16>
    %c0_183 = arith.constant 0 : index
    %c0_184 = arith.constant 0 : index
    %219 = vector.load %arg17[%c0_183, %c0_184] : memref<384x128xbf16, #tpu.memory_space<vmem>>, vector<384x128xbf16>
    %cst_185 = arith.constant dense<0.000000e+00> : vector<8x128xf32>
    %220 = tpu.matmul %218, %219, %cst_185 {dimension_numbers = #tpu.dot_dimension_numbers<[1], [0], [0], [1], [0, 0, 1, 1], [], []>} : vector<8x384xbf16>, vector<384x128xbf16>, vector<8x128xf32> -> vector<8x128xf32>
    %c0_186 = arith.constant 0 : index
    %c0_187 = arith.constant 0 : index
    %221 = vector.load %arg18[%c0_186, %c0_187] : memref<1x128xf32, #tpu.memory_space<vmem>>, vector<1x128xf32>
    %222 = vector.broadcast %221 : vector<1x128xf32> to vector<8x128xf32>
    %223 = arith.addf %220, %222 : vector<8x128xf32>
    %224 = arith.addf %223, %205 : vector<8x128xf32>
    %225 = arith.negf %224 : vector<8x128xf32>
    %226 = math.exp %225 : vector<8x128xf32>
    %cst_188 = arith.constant 1.000000e+00 : f32
    %227 = vector.broadcast %cst_188 : f32 to vector<8x128xf32>
    %228 = arith.addf %227, %226 : vector<8x128xf32>
    %229 = arith.divf %227, %228 : vector<8x128xf32>
    %230 = arith.mulf %224, %229 : vector<8x128xf32>
    %cst_189 = arith.constant 0.000000e+00 : f32
    %231 = vector.broadcast %cst_189 : f32 to vector<8x128xf32>
    %c0_190 = arith.constant 0 : index
    %c0_191 = arith.constant 0 : index
    %232 = vector.load %arg42[%c0_190, %c0_191] : memref<24x128xf32, #tpu.memory_space<vmem>>, vector<8x128xf32>
    tpu.vector_store %arg42[%c0_190, %c0_191], %231 {strides = array<i32>} : memref<24x128xf32, #tpu.memory_space<vmem>>, vector<8x128xf32>,
    %233 = vector.extract_strided_slice %230 {offsets = [0, 0], sizes = [4, 128], strides = [1, 1]} : vector<8x128xf32> to vector<4x128xf32>
    %c8_192 = arith.constant 8 : index
    %c0_193 = arith.constant 0 : index
    %234 = vector.load %arg42[%c8_192, %c0_193] : memref<24x128xf32, #tpu.memory_space<vmem>>, vector<4x128xf32>
    tpu.vector_store %arg42[%c8_192, %c0_193], %233 {strides = array<i32>} : memref<24x128xf32, #tpu.memory_space<vmem>>, vector<4x128xf32>,
    %cst_194 = arith.constant 0.000000e+00 : f32
    %235 = vector.broadcast %cst_194 : f32 to vector<4x128xf32>
    %c12_195 = arith.constant 12 : index
    %c0_196 = arith.constant 0 : index
    %236 = vector.load %arg42[%c12_195, %c0_196] : memref<24x128xf32, #tpu.memory_space<vmem>>, vector<4x128xf32>
    tpu.vector_store %arg42[%c12_195, %c0_196], %235 {strides = array<i32>} : memref<24x128xf32, #tpu.memory_space<vmem>>, vector<4x128xf32>,
    %237 = vector.extract_strided_slice %230 {offsets = [4, 0], sizes = [4, 128], strides = [1, 1]} : vector<8x128xf32> to vector<4x128xf32>
    %c16_197 = arith.constant 16 : index
    %c0_198 = arith.constant 0 : index
    %238 = vector.load %arg42[%c16_197, %c0_198] : memref<24x128xf32, #tpu.memory_space<vmem>>, vector<4x128xf32>
    tpu.vector_store %arg42[%c16_197, %c0_198], %237 {strides = array<i32>} : memref<24x128xf32, #tpu.memory_space<vmem>>, vector<4x128xf32>,
    %cst_199 = arith.constant 0.000000e+00 : f32
    %239 = vector.broadcast %cst_199 : f32 to vector<4x128xf32>
    %c20_200 = arith.constant 20 : index
    %c0_201 = arith.constant 0 : index
    %240 = vector.load %arg42[%c20_200, %c0_201] : memref<24x128xf32, #tpu.memory_space<vmem>>, vector<4x128xf32>
    tpu.vector_store %arg42[%c20_200, %c0_201], %239 {strides = array<i32>} : memref<24x128xf32, #tpu.memory_space<vmem>>, vector<4x128xf32>,
    %c7_202 = arith.constant 7 : index
    %c0_203 = arith.constant 0 : index
    %241 = tpu.strided_load %arg42[%c7_202, %c0_203] {strides = array<i32: 2, 1>} : memref<24x128xf32, #tpu.memory_space<vmem>>, vector<2x128xf32>
    %c15_204 = arith.constant 15 : index
    %c0_205 = arith.constant 0 : index
    %242 = tpu.strided_load %arg42[%c15_204, %c0_205] {strides = array<i32: 2, 1>} : memref<24x128xf32, #tpu.memory_space<vmem>>, vector<2x128xf32>
    %243 = tpu.concatenate %241, %242 in 0 : vector<2x128xf32>, vector<2x128xf32> -> vector<4x128xf32>
    %244 = arith.truncf %243 : vector<4x128xf32> to vector<4x128xbf16>
    %c8_206 = arith.constant 8 : index
    %c0_207 = arith.constant 0 : index
    %245 = tpu.strided_load %arg42[%c8_206, %c0_207] {strides = array<i32: 2, 1>} : memref<24x128xf32, #tpu.memory_space<vmem>>, vector<2x128xf32>
    %c16_208 = arith.constant 16 : index
    %c0_209 = arith.constant 0 : index
    %246 = tpu.strided_load %arg42[%c16_208, %c0_209] {strides = array<i32: 2, 1>} : memref<24x128xf32, #tpu.memory_space<vmem>>, vector<2x128xf32>
    %247 = tpu.concatenate %245, %246 in 0 : vector<2x128xf32>, vector<2x128xf32> -> vector<4x128xf32>
    %248 = arith.truncf %247 : vector<4x128xf32> to vector<4x128xbf16>
    %c9_210 = arith.constant 9 : index
    %c0_211 = arith.constant 0 : index
    %249 = tpu.strided_load %arg42[%c9_210, %c0_211] {strides = array<i32: 2, 1>} : memref<24x128xf32, #tpu.memory_space<vmem>>, vector<2x128xf32>
    %c17_212 = arith.constant 17 : index
    %c0_213 = arith.constant 0 : index
    %250 = tpu.strided_load %arg42[%c17_212, %c0_213] {strides = array<i32: 2, 1>} : memref<24x128xf32, #tpu.memory_space<vmem>>, vector<2x128xf32>
    %251 = tpu.concatenate %249, %250 in 0 : vector<2x128xf32>, vector<2x128xf32> -> vector<4x128xf32>
    %252 = arith.truncf %251 : vector<4x128xf32> to vector<4x128xbf16>
    %253 = tpu.concatenate %244, %248, %252 in 1 : vector<4x128xbf16>, vector<4x128xbf16>, vector<4x128xbf16> -> vector<4x384xbf16>
    %c0_214 = arith.constant 0 : index
    %c0_215 = arith.constant 0 : index
    %254 = vector.load %arg21[%c0_214, %c0_215] : memref<384x128xbf16, #tpu.memory_space<vmem>>, vector<384x128xbf16>
    %cst_216 = arith.constant dense<0.000000e+00> : vector<4x128xf32>
    %255 = tpu.matmul %253, %254, %cst_216 {dimension_numbers = #tpu.dot_dimension_numbers<[1], [0], [0], [1], [0, 0, 1, 1], [], []>} : vector<4x384xbf16>, vector<384x128xbf16>, vector<4x128xf32> -> vector<4x128xf32>
    %c0_217 = arith.constant 0 : index
    %c0_218 = arith.constant 0 : index
    %256 = vector.load %arg22[%c0_217, %c0_218] : memref<1x128xf32, #tpu.memory_space<vmem>>, vector<1x128xf32>
    %257 = vector.broadcast %256 : vector<1x128xf32> to vector<4x128xf32>
    %258 = arith.addf %255, %257 : vector<4x128xf32>
    %259 = arith.negf %258 : vector<4x128xf32>
    %260 = math.exp %259 : vector<4x128xf32>
    %cst_219 = arith.constant 1.000000e+00 : f32
    %261 = vector.broadcast %cst_219 : f32 to vector<4x128xf32>
    %262 = arith.addf %261, %260 : vector<4x128xf32>
    %263 = arith.divf %261, %262 : vector<4x128xf32>
    %264 = arith.mulf %258, %263 : vector<4x128xf32>
    %cst_220 = arith.constant 0.000000e+00 : f32
    %265 = vector.broadcast %cst_220 : f32 to vector<8x128xf32>
    %c0_221 = arith.constant 0 : index
    %c0_222 = arith.constant 0 : index
    %266 = vector.load %arg43[%c0_221, %c0_222] : memref<24x128xf32, #tpu.memory_space<vmem>>, vector<8x128xf32>
    tpu.vector_store %arg43[%c0_221, %c0_222], %265 {strides = array<i32>} : memref<24x128xf32, #tpu.memory_space<vmem>>, vector<8x128xf32>,
    %267 = vector.extract_strided_slice %264 {offsets = [0, 0], sizes = [2, 128], strides = [1, 1]} : vector<4x128xf32> to vector<2x128xf32>
    %c8_223 = arith.constant 8 : index
    %c0_224 = arith.constant 0 : index
    %268 = vector.load %arg43[%c8_223, %c0_224] : memref<24x128xf32, #tpu.memory_space<vmem>>, vector<2x128xf32>
    tpu.vector_store %arg43[%c8_223, %c0_224], %267 {strides = array<i32>} : memref<24x128xf32, #tpu.memory_space<vmem>>, vector<2x128xf32>,
    %cst_225 = arith.constant 0.000000e+00 : f32
    %269 = vector.broadcast %cst_225 : f32 to vector<6x128xf32>
    %c10 = arith.constant 10 : index
    %c0_226 = arith.constant 0 : index
    %270 = vector.load %arg43[%c10, %c0_226] : memref<24x128xf32, #tpu.memory_space<vmem>>, vector<6x128xf32>
    tpu.vector_store %arg43[%c10, %c0_226], %269 {strides = array<i32>} : memref<24x128xf32, #tpu.memory_space<vmem>>, vector<6x128xf32>,
    %271 = vector.extract_strided_slice %264 {offsets = [2, 0], sizes = [2, 128], strides = [1, 1]} : vector<4x128xf32> to vector<2x128xf32>
    %c16_227 = arith.constant 16 : index
    %c0_228 = arith.constant 0 : index
    %272 = vector.load %arg43[%c16_227, %c0_228] : memref<24x128xf32, #tpu.memory_space<vmem>>, vector<2x128xf32>
    tpu.vector_store %arg43[%c16_227, %c0_228], %271 {strides = array<i32>} : memref<24x128xf32, #tpu.memory_space<vmem>>, vector<2x128xf32>,
    %cst_229 = arith.constant 0.000000e+00 : f32
    %273 = vector.broadcast %cst_229 : f32 to vector<6x128xf32>
    %c18 = arith.constant 18 : index
    %c0_230 = arith.constant 0 : index
    %274 = vector.load %arg43[%c18, %c0_230] : memref<24x128xf32, #tpu.memory_space<vmem>>, vector<6x128xf32>
    tpu.vector_store %arg43[%c18, %c0_230], %273 {strides = array<i32>} : memref<24x128xf32, #tpu.memory_space<vmem>>, vector<6x128xf32>,
    %c0_231 = arith.constant 0 : index
    %c0_232 = arith.constant 0 : index
    %275 = vector.load %arg25[%c0_231, %c0_232] : memref<128x128xbf16, #tpu.memory_space<vmem>>, vector<128x128xbf16>
    %cst_233 = arith.constant dense<0.000000e+00> : vector<4x128xf32>
    %276 = tpu.matmul %248, %275, %cst_233 {dimension_numbers = #tpu.dot_dimension_numbers<[1], [0], [0], [1], [0, 0, 1, 1], [], []>} : vector<4x128xbf16>, vector<128x128xbf16>, vector<4x128xf32> -> vector<4x128xf32>
    %c0_234 = arith.constant 0 : index
    %c0_235 = arith.constant 0 : index
    %277 = vector.load %arg26[%c0_234, %c0_235] : memref<1x128xf32, #tpu.memory_space<vmem>>, vector<1x128xf32>
    %278 = vector.broadcast %277 : vector<1x128xf32> to vector<4x128xf32>
    %279 = arith.addf %276, %278 : vector<4x128xf32>
    %c7_236 = arith.constant 7 : index
    %c0_237 = arith.constant 0 : index
    %280 = vector.load %arg43[%c7_236, %c0_237] : memref<24x128xf32, #tpu.memory_space<vmem>>, vector<2x128xf32>
    %c15_238 = arith.constant 15 : index
    %c0_239 = arith.constant 0 : index
    %281 = vector.load %arg43[%c15_238, %c0_239] : memref<24x128xf32, #tpu.memory_space<vmem>>, vector<2x128xf32>
    %282 = tpu.concatenate %280, %281 in 0 : vector<2x128xf32>, vector<2x128xf32> -> vector<4x128xf32>
    %283 = arith.truncf %282 : vector<4x128xf32> to vector<4x128xbf16>
    %c8_240 = arith.constant 8 : index
    %c0_241 = arith.constant 0 : index
    %284 = vector.load %arg43[%c8_240, %c0_241] : memref<24x128xf32, #tpu.memory_space<vmem>>, vector<2x128xf32>
    %c16_242 = arith.constant 16 : index
    %c0_243 = arith.constant 0 : index
    %285 = vector.load %arg43[%c16_242, %c0_243] : memref<24x128xf32, #tpu.memory_space<vmem>>, vector<2x128xf32>
    %286 = tpu.concatenate %284, %285 in 0 : vector<2x128xf32>, vector<2x128xf32> -> vector<4x128xf32>
    %287 = arith.truncf %286 : vector<4x128xf32> to vector<4x128xbf16>
    %c9_244 = arith.constant 9 : index
    %c0_245 = arith.constant 0 : index
    %288 = vector.load %arg43[%c9_244, %c0_245] : memref<24x128xf32, #tpu.memory_space<vmem>>, vector<2x128xf32>
    %c17_246 = arith.constant 17 : index
    %c0_247 = arith.constant 0 : index
    %289 = vector.load %arg43[%c17_246, %c0_247] : memref<24x128xf32, #tpu.memory_space<vmem>>, vector<2x128xf32>
    %290 = tpu.concatenate %288, %289 in 0 : vector<2x128xf32>, vector<2x128xf32> -> vector<4x128xf32>
    %291 = arith.truncf %290 : vector<4x128xf32> to vector<4x128xbf16>
    %292 = tpu.concatenate %283, %287, %291 in 1 : vector<4x128xbf16>, vector<4x128xbf16>, vector<4x128xbf16> -> vector<4x384xbf16>
    %c0_248 = arith.constant 0 : index
    %c0_249 = arith.constant 0 : index
    %293 = vector.load %arg23[%c0_248, %c0_249] : memref<384x128xbf16, #tpu.memory_space<vmem>>, vector<384x128xbf16>
    %cst_250 = arith.constant dense<0.000000e+00> : vector<4x128xf32>
    %294 = tpu.matmul %292, %293, %cst_250 {dimension_numbers = #tpu.dot_dimension_numbers<[1], [0], [0], [1], [0, 0, 1, 1], [], []>} : vector<4x384xbf16>, vector<384x128xbf16>, vector<4x128xf32> -> vector<4x128xf32>
    %c0_251 = arith.constant 0 : index
    %c0_252 = arith.constant 0 : index
    %295 = vector.load %arg24[%c0_251, %c0_252] : memref<1x128xf32, #tpu.memory_space<vmem>>, vector<1x128xf32>
    %296 = vector.broadcast %295 : vector<1x128xf32> to vector<4x128xf32>
    %297 = arith.addf %294, %296 : vector<4x128xf32>
    %298 = arith.addf %297, %279 : vector<4x128xf32>
    %299 = arith.negf %298 : vector<4x128xf32>
    %300 = math.exp %299 : vector<4x128xf32>
    %cst_253 = arith.constant 1.000000e+00 : f32
    %301 = vector.broadcast %cst_253 : f32 to vector<4x128xf32>
    %302 = arith.addf %301, %300 : vector<4x128xf32>
    %303 = arith.divf %301, %302 : vector<4x128xf32>
    %304 = arith.mulf %298, %303 : vector<4x128xf32>
    %cst_254 = arith.constant 0.000000e+00 : f32
    %305 = vector.broadcast %cst_254 : f32 to vector<8x128xf32>
    %c0_255 = arith.constant 0 : index
    %c0_256 = arith.constant 0 : index
    %306 = vector.load %arg44[%c0_255, %c0_256] : memref<24x128xf32, #tpu.memory_space<vmem>>, vector<8x128xf32>
    tpu.vector_store %arg44[%c0_255, %c0_256], %305 {strides = array<i32>} : memref<24x128xf32, #tpu.memory_space<vmem>>, vector<8x128xf32>,
    %307 = vector.extract_strided_slice %304 {offsets = [0, 0], sizes = [2, 128], strides = [1, 1]} : vector<4x128xf32> to vector<2x128xf32>
    %c8_257 = arith.constant 8 : index
    %c0_258 = arith.constant 0 : index
    %308 = vector.load %arg44[%c8_257, %c0_258] : memref<24x128xf32, #tpu.memory_space<vmem>>, vector<2x128xf32>
    tpu.vector_store %arg44[%c8_257, %c0_258], %307 {strides = array<i32>} : memref<24x128xf32, #tpu.memory_space<vmem>>, vector<2x128xf32>,
    %cst_259 = arith.constant 0.000000e+00 : f32
    %309 = vector.broadcast %cst_259 : f32 to vector<6x128xf32>
    %c10_260 = arith.constant 10 : index
    %c0_261 = arith.constant 0 : index
    %310 = vector.load %arg44[%c10_260, %c0_261] : memref<24x128xf32, #tpu.memory_space<vmem>>, vector<6x128xf32>
    tpu.vector_store %arg44[%c10_260, %c0_261], %309 {strides = array<i32>} : memref<24x128xf32, #tpu.memory_space<vmem>>, vector<6x128xf32>,
    %311 = vector.extract_strided_slice %304 {offsets = [2, 0], sizes = [2, 128], strides = [1, 1]} : vector<4x128xf32> to vector<2x128xf32>
    %c16_262 = arith.constant 16 : index
    %c0_263 = arith.constant 0 : index
    %312 = vector.load %arg44[%c16_262, %c0_263] : memref<24x128xf32, #tpu.memory_space<vmem>>, vector<2x128xf32>
    tpu.vector_store %arg44[%c16_262, %c0_263], %311 {strides = array<i32>} : memref<24x128xf32, #tpu.memory_space<vmem>>, vector<2x128xf32>,
    %cst_264 = arith.constant 0.000000e+00 : f32
    %313 = vector.broadcast %cst_264 : f32 to vector<6x128xf32>
    %c18_265 = arith.constant 18 : index
    %c0_266 = arith.constant 0 : index
    %314 = vector.load %arg44[%c18_265, %c0_266] : memref<24x128xf32, #tpu.memory_space<vmem>>, vector<6x128xf32>
    tpu.vector_store %arg44[%c18_265, %c0_266], %313 {strides = array<i32>} : memref<24x128xf32, #tpu.memory_space<vmem>>, vector<6x128xf32>,
    %c7_267 = arith.constant 7 : index
    %c0_268 = arith.constant 0 : index
    %315 = vector.load %arg44[%c7_267, %c0_268] : memref<24x128xf32, #tpu.memory_space<vmem>>, vector<1x128xf32>
    %c15_269 = arith.constant 15 : index
    %c0_270 = arith.constant 0 : index
    %316 = vector.load %arg44[%c15_269, %c0_270] : memref<24x128xf32, #tpu.memory_space<vmem>>, vector<1x128xf32>
    %317 = tpu.concatenate %315, %316 in 0 : vector<1x128xf32>, vector<1x128xf32> -> vector<2x128xf32>
    %318 = arith.truncf %317 : vector<2x128xf32> to vector<2x128xbf16>
    %c8_271 = arith.constant 8 : index
    %c0_272 = arith.constant 0 : index
    %319 = vector.load %arg44[%c8_271, %c0_272] : memref<24x128xf32, #tpu.memory_space<vmem>>, vector<1x128xf32>
    %c16_273 = arith.constant 16 : index
    %c0_274 = arith.constant 0 : index
    %320 = vector.load %arg44[%c16_273, %c0_274] : memref<24x128xf32, #tpu.memory_space<vmem>>, vector<1x128xf32>
    %321 = tpu.concatenate %319, %320 in 0 : vector<1x128xf32>, vector<1x128xf32> -> vector<2x128xf32>
    %322 = arith.truncf %321 : vector<2x128xf32> to vector<2x128xbf16>
    %c9_275 = arith.constant 9 : index
    %c0_276 = arith.constant 0 : index
    %323 = vector.load %arg44[%c9_275, %c0_276] : memref<24x128xf32, #tpu.memory_space<vmem>>, vector<1x128xf32>
    %c17_277 = arith.constant 17 : index
    %c0_278 = arith.constant 0 : index
    %324 = vector.load %arg44[%c17_277, %c0_278] : memref<24x128xf32, #tpu.memory_space<vmem>>, vector<1x128xf32>
    %325 = tpu.concatenate %323, %324 in 0 : vector<1x128xf32>, vector<1x128xf32> -> vector<2x128xf32>
    %326 = arith.truncf %325 : vector<2x128xf32> to vector<2x128xbf16>
    %327 = tpu.concatenate %318, %322, %326 in 1 : vector<2x128xbf16>, vector<2x128xbf16>, vector<2x128xbf16> -> vector<2x384xbf16>
    %c0_279 = arith.constant 0 : index
    %c0_280 = arith.constant 0 : index
    %328 = vector.load %arg27[%c0_279, %c0_280] : memref<384x128xbf16, #tpu.memory_space<vmem>>, vector<384x128xbf16>
    %cst_281 = arith.constant dense<0.000000e+00> : vector<2x128xf32>
    %329 = tpu.matmul %327, %328, %cst_281 {dimension_numbers = #tpu.dot_dimension_numbers<[1], [0], [0], [1], [0, 0, 1, 1], [], []>} : vector<2x384xbf16>, vector<384x128xbf16>, vector<2x128xf32> -> vector<2x128xf32>
    %c0_282 = arith.constant 0 : index
    %c0_283 = arith.constant 0 : index
    %330 = vector.load %arg28[%c0_282, %c0_283] : memref<1x128xf32, #tpu.memory_space<vmem>>, vector<1x128xf32>
    %331 = vector.broadcast %330 : vector<1x128xf32> to vector<2x128xf32>
    %332 = arith.addf %329, %331 : vector<2x128xf32>
    %333 = arith.negf %332 : vector<2x128xf32>
    %334 = math.exp %333 : vector<2x128xf32>
    %cst_284 = arith.constant 1.000000e+00 : f32
    %335 = vector.broadcast %cst_284 : f32 to vector<2x128xf32>
    %336 = arith.addf %335, %334 : vector<2x128xf32>
    %337 = arith.divf %335, %336 : vector<2x128xf32>
    %338 = arith.mulf %332, %337 : vector<2x128xf32>
    %cst_285 = arith.constant 0.000000e+00 : f32
    %339 = vector.broadcast %cst_285 : f32 to vector<8x128xf32>
    %c0_286 = arith.constant 0 : index
    %c0_287 = arith.constant 0 : index
    %340 = vector.load %arg45[%c0_286, %c0_287] : memref<24x128xf32, #tpu.memory_space<vmem>>, vector<8x128xf32>
    tpu.vector_store %arg45[%c0_286, %c0_287], %339 {strides = array<i32>} : memref<24x128xf32, #tpu.memory_space<vmem>>, vector<8x128xf32>,
    %341 = vector.extract_strided_slice %338 {offsets = [0, 0], sizes = [1, 128], strides = [1, 1]} : vector<2x128xf32> to vector<1x128xf32>
    %c8_288 = arith.constant 8 : index
    %c0_289 = arith.constant 0 : index
    %342 = vector.load %arg45[%c8_288, %c0_289] : memref<24x128xf32, #tpu.memory_space<vmem>>, vector<1x128xf32>
    tpu.vector_store %arg45[%c8_288, %c0_289], %341 {strides = array<i32>} : memref<24x128xf32, #tpu.memory_space<vmem>>, vector<1x128xf32>,
    %cst_290 = arith.constant 0.000000e+00 : f32
    %343 = vector.broadcast %cst_290 : f32 to vector<7x128xf32>
    %c9_291 = arith.constant 9 : index
    %c0_292 = arith.constant 0 : index
    %344 = vector.load %arg45[%c9_291, %c0_292] : memref<24x128xf32, #tpu.memory_space<vmem>>, vector<7x128xf32>
    tpu.vector_store %arg45[%c9_291, %c0_292], %343 {strides = array<i32>} : memref<24x128xf32, #tpu.memory_space<vmem>>, vector<7x128xf32>,
    %345 = vector.extract_strided_slice %338 {offsets = [1, 0], sizes = [1, 128], strides = [1, 1]} : vector<2x128xf32> to vector<1x128xf32>
    %c16_293 = arith.constant 16 : index
    %c0_294 = arith.constant 0 : index
    %346 = vector.load %arg45[%c16_293, %c0_294] : memref<24x128xf32, #tpu.memory_space<vmem>>, vector<1x128xf32>
    tpu.vector_store %arg45[%c16_293, %c0_294], %345 {strides = array<i32>} : memref<24x128xf32, #tpu.memory_space<vmem>>, vector<1x128xf32>,
    %cst_295 = arith.constant 0.000000e+00 : f32
    %347 = vector.broadcast %cst_295 : f32 to vector<7x128xf32>
    %c17_296 = arith.constant 17 : index
    %c0_297 = arith.constant 0 : index
    %348 = vector.load %arg45[%c17_296, %c0_297] : memref<24x128xf32, #tpu.memory_space<vmem>>, vector<7x128xf32>
    tpu.vector_store %arg45[%c17_296, %c0_297], %347 {strides = array<i32>} : memref<24x128xf32, #tpu.memory_space<vmem>>, vector<7x128xf32>,
    %c0_298 = arith.constant 0 : index
    %c0_299 = arith.constant 0 : index
    %349 = vector.load %arg31[%c0_298, %c0_299] : memref<128x128xbf16, #tpu.memory_space<vmem>>, vector<128x128xbf16>
    %cst_300 = arith.constant dense<0.000000e+00> : vector<2x128xf32>
    %350 = tpu.matmul %322, %349, %cst_300 {dimension_numbers = #tpu.dot_dimension_numbers<[1], [0], [0], [1], [0, 0, 1, 1], [], []>} : vector<2x128xbf16>, vector<128x128xbf16>, vector<2x128xf32> -> vector<2x128xf32>
    %c0_301 = arith.constant 0 : index
    %c0_302 = arith.constant 0 : index
    %351 = vector.load %arg32[%c0_301, %c0_302] : memref<1x128xf32, #tpu.memory_space<vmem>>, vector<1x128xf32>
    %352 = vector.broadcast %351 : vector<1x128xf32> to vector<2x128xf32>
    %353 = arith.addf %350, %352 : vector<2x128xf32>
    %c7_303 = arith.constant 7 : index
    %c0_304 = arith.constant 0 : index
    %354 = vector.load %arg45[%c7_303, %c0_304] : memref<24x128xf32, #tpu.memory_space<vmem>>, vector<1x128xf32>
    %c15_305 = arith.constant 15 : index
    %c0_306 = arith.constant 0 : index
    %355 = vector.load %arg45[%c15_305, %c0_306] : memref<24x128xf32, #tpu.memory_space<vmem>>, vector<1x128xf32>
    %356 = tpu.concatenate %354, %355 in 0 : vector<1x128xf32>, vector<1x128xf32> -> vector<2x128xf32>
    %357 = arith.truncf %356 : vector<2x128xf32> to vector<2x128xbf16>
    %c8_307 = arith.constant 8 : index
    %c0_308 = arith.constant 0 : index
    %358 = vector.load %arg45[%c8_307, %c0_308] : memref<24x128xf32, #tpu.memory_space<vmem>>, vector<1x128xf32>
    %c16_309 = arith.constant 16 : index
    %c0_310 = arith.constant 0 : index
    %359 = vector.load %arg45[%c16_309, %c0_310] : memref<24x128xf32, #tpu.memory_space<vmem>>, vector<1x128xf32>
    %360 = tpu.concatenate %358, %359 in 0 : vector<1x128xf32>, vector<1x128xf32> -> vector<2x128xf32>
    %361 = arith.truncf %360 : vector<2x128xf32> to vector<2x128xbf16>
    %c9_311 = arith.constant 9 : index
    %c0_312 = arith.constant 0 : index
    %362 = vector.load %arg45[%c9_311, %c0_312] : memref<24x128xf32, #tpu.memory_space<vmem>>, vector<1x128xf32>
    %c17_313 = arith.constant 17 : index
    %c0_314 = arith.constant 0 : index
    %363 = vector.load %arg45[%c17_313, %c0_314] : memref<24x128xf32, #tpu.memory_space<vmem>>, vector<1x128xf32>
    %364 = tpu.concatenate %362, %363 in 0 : vector<1x128xf32>, vector<1x128xf32> -> vector<2x128xf32>
    %365 = arith.truncf %364 : vector<2x128xf32> to vector<2x128xbf16>
    %366 = tpu.concatenate %357, %361, %365 in 1 : vector<2x128xbf16>, vector<2x128xbf16>, vector<2x128xbf16> -> vector<2x384xbf16>
    %c0_315 = arith.constant 0 : index
    %c0_316 = arith.constant 0 : index
    %367 = vector.load %arg29[%c0_315, %c0_316] : memref<384x128xbf16, #tpu.memory_space<vmem>>, vector<384x128xbf16>
    %cst_317 = arith.constant dense<0.000000e+00> : vector<2x128xf32>
    %368 = tpu.matmul %366, %367, %cst_317 {dimension_numbers = #tpu.dot_dimension_numbers<[1], [0], [0], [1], [0, 0, 1, 1], [], []>} : vector<2x384xbf16>, vector<384x128xbf16>, vector<2x128xf32> -> vector<2x128xf32>
    %c0_318 = arith.constant 0 : index
    %c0_319 = arith.constant 0 : index
    %369 = vector.load %arg30[%c0_318, %c0_319] : memref<1x128xf32, #tpu.memory_space<vmem>>, vector<1x128xf32>
    %370 = vector.broadcast %369 : vector<1x128xf32> to vector<2x128xf32>
    %371 = arith.addf %368, %370 : vector<2x128xf32>
    %372 = arith.addf %371, %353 : vector<2x128xf32>
    %cst_320 = arith.constant 0.000000e+00 : f32
    %373 = vector.broadcast %cst_320 : f32 to vector<8x128xf32>
    %c0_321 = arith.constant 0 : index
    %c0_322 = arith.constant 0 : index
    %374 = vector.load %arg46[%c0_321, %c0_322] : memref<24x128xf32, #tpu.memory_space<vmem>>, vector<8x128xf32>
    tpu.vector_store %arg46[%c0_321, %c0_322], %373 {strides = array<i32>} : memref<24x128xf32, #tpu.memory_space<vmem>>, vector<8x128xf32>,
    %375 = vector.extract_strided_slice %372 {offsets = [0, 0], sizes = [1, 128], strides = [1, 1]} : vector<2x128xf32> to vector<1x128xf32>
    %c8_323 = arith.constant 8 : index
    %c0_324 = arith.constant 0 : index
    %376 = vector.load %arg46[%c8_323, %c0_324] : memref<24x128xf32, #tpu.memory_space<vmem>>, vector<1x128xf32>
    tpu.vector_store %arg46[%c8_323, %c0_324], %375 {strides = array<i32>} : memref<24x128xf32, #tpu.memory_space<vmem>>, vector<1x128xf32>,
    %cst_325 = arith.constant 0.000000e+00 : f32
    %377 = vector.broadcast %cst_325 : f32 to vector<7x128xf32>
    %c9_326 = arith.constant 9 : index
    %c0_327 = arith.constant 0 : index
    %378 = vector.load %arg46[%c9_326, %c0_327] : memref<24x128xf32, #tpu.memory_space<vmem>>, vector<7x128xf32>
    tpu.vector_store %arg46[%c9_326, %c0_327], %377 {strides = array<i32>} : memref<24x128xf32, #tpu.memory_space<vmem>>, vector<7x128xf32>,
    %379 = vector.extract_strided_slice %372 {offsets = [1, 0], sizes = [1, 128], strides = [1, 1]} : vector<2x128xf32> to vector<1x128xf32>
    %c16_328 = arith.constant 16 : index
    %c0_329 = arith.constant 0 : index
    %380 = vector.load %arg46[%c16_328, %c0_329] : memref<24x128xf32, #tpu.memory_space<vmem>>, vector<1x128xf32>
    tpu.vector_store %arg46[%c16_328, %c0_329], %379 {strides = array<i32>} : memref<24x128xf32, #tpu.memory_space<vmem>>, vector<1x128xf32>,
    %cst_330 = arith.constant 0.000000e+00 : f32
    %381 = vector.broadcast %cst_330 : f32 to vector<7x128xf32>
    %c17_331 = arith.constant 17 : index
    %c0_332 = arith.constant 0 : index
    %382 = vector.load %arg46[%c17_331, %c0_332] : memref<24x128xf32, #tpu.memory_space<vmem>>, vector<7x128xf32>
    tpu.vector_store %arg46[%c17_331, %c0_332], %381 {strides = array<i32>} : memref<24x128xf32, #tpu.memory_space<vmem>>, vector<7x128xf32>,
    %c8_333 = arith.constant 8 : index
    %c0_334 = arith.constant 0 : index
    %383 = vector.load %arg46[%c8_333, %c0_334] : memref<24x128xf32, #tpu.memory_space<vmem>>, vector<1x128xf32>
    %c16_335 = arith.constant 16 : index
    %c0_336 = arith.constant 0 : index
    %384 = vector.load %arg46[%c16_335, %c0_336] : memref<24x128xf32, #tpu.memory_space<vmem>>, vector<1x128xf32>
    %385 = tpu.concatenate %383, %384 in 0 : vector<1x128xf32>, vector<1x128xf32> -> vector<2x128xf32>
    %386 = arith.truncf %385 : vector<2x128xf32> to vector<2x128xbf16>
    %c0_337 = arith.constant 0 : index
    %c0_338 = arith.constant 0 : index
    %387 = vector.load %arg33[%c0_337, %c0_338] : memref<128x16xbf16, #tpu.memory_space<vmem>>, vector<128x16xbf16>
    %cst_339 = arith.constant dense<0.000000e+00> : vector<2x16xf32>
    %388 = tpu.matmul %386, %387, %cst_339 {dimension_numbers = #tpu.dot_dimension_numbers<[1], [0], [0], [1], [0, 0, 1, 1], [], []>} : vector<2x128xbf16>, vector<128x16xbf16>, vector<2x16xf32> -> vector<2x16xf32>
    %c0_340 = arith.constant 0 : index
    %c0_341 = arith.constant 0 : index
    %389 = vector.load %arg34[%c0_340, %c0_341] : memref<1x16xf32, #tpu.memory_space<vmem>>, vector<1x16xf32>
    %390 = vector.broadcast %389 : vector<1x16xf32> to vector<2x16xf32>
    %391 = arith.addf %388, %390 : vector<2x16xf32>
    %c0_342 = arith.constant 0 : index
    %c0_343 = arith.constant 0 : index
    %392 = vector.load %arg35[%c0_342, %c0_343] : memref<2x16xf32, #tpu.memory_space<vmem>>, vector<2x16xf32>
    tpu.vector_store %arg35[%c0_342, %c0_343], %391 {strides = array<i32>} : memref<2x16xf32, #tpu.memory_space<vmem>>, vector<2x16xf32>,
    return
  }
}

</mosaic_0001>

<bundles_post_ra>
// kernel: forward.1
= control target key start
LH: loop header
LB: loop body
LE: loop exit
PB: predicated region body
PF: predicated region fallthrough
CT: control target
= control target key end

     0   :  { %s6751_s6 = smov 1   ;;  %s6752_s10 = smov 2   ;;  %s7472_s0 = inlined_call_operand.smem [shape: u32[36], index: -1, kind: input, shape index: {}] }
   0x1   :  { %s6825_s5 = sld [smem:[%s7472_s0]]   ;;  %s6753_s14 = smov 3  }
   0x2   :  { %s6830_s9 = sld [smem:[%s7472_s0 + %s6751_s6]]   ;;  %s6754_s18 = smov 4  }
   0x3   :  { %s6835_s13 = sld [smem:[%s7472_s0 + %s6752_s10]]   ;;  %s6755_s22 = smov 5  }
   0x4   :  { %s6840_s17 = sld [smem:[%s7472_s0 + %s6753_s14]]   ;;  %s6756_s26 = smov 6  }
   0x5   :  { %s6845_s21 = sld [smem:[%s7472_s0 + %s6754_s18]]   ;;  %s6757_s30 = smov 7  }
   0x6   :  { %s6850_s25 = sld [smem:[%s7472_s0 + %s6755_s22]]   ;;  %s6758_s4 = smov 8  }
   0x7   :  { %7491 = sst [smem:[#allocation68_spill]] %s6825_s5  ;;  %s6759_s10 = smov 9  }
   0x8   :  { %s6855_s29 = sld [smem:[%s7472_s0 + %s6756_s26]]   ;;  %s6760_s15 = smov 10  }
   0x9   :  { %s6860_s3 = sld [smem:[%s7472_s0 + %s6757_s30]]   ;;  %s6761_s20 = smov 11  }
   0xa   :  { %7492 = sst [smem:[#allocation69_spill]] %s6840_s17  ;;  %s6762_s26 = smov 12  }
   0xb   :  { %s6865_s8 = sld [smem:[%s7472_s0 + %s6758_s4]]   ;;  %s6763_s1 = smov 13  }
   0xc   :  { %7493 = sst [smem:[#allocation70_spill]] %s6850_s25  ;;  %s6764_s7 = smov 14  }
   0xd   :  { %s6870_s14 = sld [smem:[%s7472_s0 + %s6759_s10]]   ;;  %s6766_s22 = smov 16  }
   0xe   :  { %s6875_s19 = sld [smem:[%s7472_s0 + %s6760_s15]]   ;;  %s6765_s15 = smov 15  }
   0xf   :  { %7494 = sst [smem:[#allocation71_spill]] %s6860_s3  ;;  %s6767_s28 = smov 17  }
  0x10   :  { %s6880_s24 = sld [smem:[%s7472_s0 + %s6761_s20]]  }
  0x11   :  { %s6885_s30 = sld [smem:[%s7472_s0 + %s6762_s26]]  }
  0x12   :  { %s6890_s6 = sld [smem:[%s7472_s0 + %s6763_s1]]  }
  0x13   :  { %7495 = sst [smem:[#allocation72_spill]] %s6870_s14 }
  0x14   :  { %s6895_s12 = sld [smem:[%s7472_s0 + %s6764_s7]]   ;;  %s6768_s7 = smov 18  }
  0x15   :  { %s6900_s20 = sld [smem:[%s7472_s0 + %s6765_s15]]   ;;  %s6769_s15 = smov 19  }
  0x16   :  { %7496 = sst [smem:[#allocation73_spill]] %s6880_s24 }
  0x17   :  { %s6905_s27 = sld [smem:[%s7472_s0 + %s6766_s22]]   ;;  %s6770_s22 = smov 20  }
  0x18   :  { %7497 = sst [smem:[#allocation74_spill]] %s6890_s6 }
  0x19   :  { %s6910_s4 = sld [smem:[%s7472_s0 + %s6767_s28]]   ;;  %s6771_s28 = smov 21  }
  0x1a   :  { %s6915_s5 = sld [smem:[%s7472_s0 + %s6768_s7]]   ;;  %s6772_s7 = smov 22  }
  0x1b   :  { %7498 = sst [smem:[#allocation75_spill]] %s6900_s20 }
  0x1c   :  { %s6920_s20 = sld [smem:[%s7472_s0 + %s6769_s15]]   ;;  %s6773_s15 = smov 23  }
  0x1d   :  { %s6925_s6 = sld [smem:[%s7472_s0 + %s6770_s22]]   ;;  %s6774_s22 = smov 24  }
  0x1e   :  { %s6940_s24 = sld [smem:[%s7472_s0 + %s6773_s15]]   ;;  %s6777_s15 = smov 27  }
  0x1f   :  { %7499 = sst [smem:[#allocation76_spill]] %s6910_s4 }
  0x20   :  { %7500 = sst [smem:[#allocation77_spill]] %s6915_s5 }
  0x21   :  { %s6930_s4 = sld [smem:[%s7472_s0 + %s6771_s28]]   ;;  %s6775_s28 = smov 25  }
  0x22   :  { %s6935_s5 = sld [smem:[%s7472_s0 + %s6772_s7]]   ;;  %s6776_s7 = smov 26  }
  0x23   :  { %7501 = sst [smem:[#allocation78_spill]] %s6925_s6 }
  0x24   :  { %7503 = sst [smem:[#allocation80_spill]] %s6940_s24 }
  0x25   :  { %s6945_s6 = sld [smem:[%s7472_s0 + %s6774_s22]]   ;;  %s6778_s22 = smov 28  }
  0x26   :  { %s6955_s14 = sld [smem:[%s7472_s0 + %s6776_s7]]   ;;  %s6780_s7 = smov 30  }
  0x27   :  { %7502 = sst [smem:[#allocation79_spill]] %s6930_s4 }
  0x28   :  { %s6950_s4 = sld [smem:[%s7472_s0 + %s6775_s28]]   ;;  %s6779_s28 = smov 29  }
  0x29   :  { %s6960_s24 = sld [smem:[%s7472_s0 + %s6777_s15]]   ;;  %s6781_s15 = smov 31  }
  0x2a   :  { %s6970_s3 = sld [smem:[%s7472_s0 + %s6779_s28]]   ;;  %s6783_s28 = smov 33  }
  0x2b   :  { %7504 = sst [smem:[#allocation81_spill]] %s6945_s6 }
  0x2c   :  { %7505 = sst [smem:[#allocation82_spill]] %s6955_s14 }
  0x2d   :  { %s6965_s6 = sld [smem:[%s7472_s0 + %s6778_s22]]   ;;  %s6782_s22 = smov 32  }
  0x2e   :  { %s6975_s14 = sld [smem:[%s7472_s0 + %s6780_s7]]   ;;  %s6784_s7 = smov 34  }
  0x2f   :  { %7506 = sst [smem:[#allocation83_spill]] %s6960_s24 }
  0x30   :  { %7507 = sst [smem:[#allocation84_spill]] %s6970_s3 }
  0x31   :  { %s6980_s24 = sld [smem:[%s7472_s0 + %s6781_s15]]   ;;  %s6785_s15 = smov 35  }
  0x32   :  { %s6985_s25 = sld [smem:[%s7472_s0 + %s6782_s22]]  }
  0x33   :  { %s6990_s3 = sld [smem:[%s7472_s0 + %s6783_s28]]  }
  0x34   :  { %7508 = sst [smem:[#allocation85_spill]] %s6975_s14 }
  0x35   :  { %s6995_s14 = sld [smem:[%s7472_s0 + %s6784_s7]]  }
  0x36   :  { %s7000_s17 = sld [smem:[%s7472_s0 + %s6785_s15]]  }
  0x37   :  { %76 = vsyncpa [#allocation14], 0 }
  0x38   :  { %77 = vsyncpa [#allocation16], 0 }
  0x39   :  { %78 = vsyncpa [#allocation19], 0 }
  0x3a   :  { %79 = vsyncpa [#allocation22], 0 }
  0x3b   :  { %80 = vsyncpa [#allocation25], 0 }
  0x3c   :  { %81 = vsyncpa [#allocation28], 0 }
  0x3d   :  { %82 = vsyncpa [#allocation31], 0 }
  0x3e   :  { %83 = vsyncpa [#allocation34], 0 }
  0x3f   :  { %84 = vsyncpa [#allocation37], 0 }
  0x40   :  { %85 = vsyncpa [#allocation40], 0 }
  0x41   :  { %86 = vsyncpa [#allocation43], 0 }
  0x42   :  { %87 = vsyncpa [#allocation46], 0 }
  0x43   :  { %88 = vsyncpa [#allocation49], 0 }
  0x44   :  { %89 = vsyncpa [#allocation52], 0  ;;  %s6786_s22 = smov [#allocation15]   ;;  %s6787_s23 = smov [#allocation18]  }
  0x45   :  { %s110_s0 = sshll.u32 %s6786_s22, 4  ;;  %s132_s26 = sshll.u32 %s6787_s23, 4  ;;  %s111_s0 = int_to_ptr.vmem [resolvable:$true] %s110_s0  ;;  %s133_s26 = int_to_ptr.vmem [resolvable:$true] %s132_s26 }
  0x46   :  { %s6129_s28 = scalar_lea.hbm %s6835_s13, 16 }
  0x47   :  { %p6130_p0 = scmp.ne.s32.totalorder %s6835_s13, %s6129_s28  ;;  %p6133_p1 = scmp.lt.u32.totalorder %s6129_s28, %s6835_s13 }
  0x49   :  { %p6135_p2 = pnand %p6133_p1, %p6130_p0 }
  0x4b   :  { %6138 = shalt.err (!%p6135_p2)
}
  0x4c   :  { %s6139_s1 = scalar_lea.vmem %s111_s0, 16  ;;  %s6143_s2 = scalar_lea.vmem %s111_s0, 32 }
  0x4d   :  { %p6140_p3 = scmp.ne.s32.totalorder %s111_s0, %s6139_s1  ;;  %p6144_p4 = scmp.lt.s32.totalorder %s111_s0, %s111_s0 }
  0x4e   :  { %p6145_p5 = scmp.lt.s32.totalorder %s6143_s2, %s6139_s1 }
  0x50   :  { %p6146_p6 = por %p6145_p5, %p6144_p4 }
  0x52   :  { %p6147_p7 = pnand %p6146_p6, %p6140_p3 }
  0x54   :  { %6150 = shalt.err (!%p6147_p7)
}
  0x55   :  { %113 = dma.hbm_to_vmem [thread:$0]  %s6835_s13, 16, %s111_s0, [#allocation16]  }
  0x56   :  { %s6151_s7 = scalar_lea.hbm %s6845_s21, 16 }
  0x57   :  { %p6152_p8 = scmp.ne.s32.totalorder %s6845_s21, %s6151_s7  ;;  %p6155_p9 = scmp.lt.u32.totalorder %s6151_s7, %s6845_s21 }
  0x59   :  { %p6157_p10 = pnand %p6155_p9, %p6152_p8 }
  0x5b   :  { %6160 = shalt.err (!%p6157_p10)
}
  0x5c   :  { %s6161_s10 = scalar_lea.vmem %s133_s26, 16  ;;  %s6165_s11 = scalar_lea.vmem %s133_s26, 32 }
  0x5d   :  { %p6162_p11 = scmp.ne.s32.totalorder %s133_s26, %s6161_s10  ;;  %p6166_p12 = scmp.lt.s32.totalorder %s133_s26, %s133_s26 }
  0x5e   :  { %p6167_p13 = scmp.lt.s32.totalorder %s6165_s11, %s6161_s10 }
  0x60   :  { %p6168_p0 = por %p6167_p13, %p6166_p12 }
  0x62   :  { %p6169_p1 = pnand %p6168_p0, %p6162_p11 }
  0x64   :  { %6172 = shalt.err (!%p6169_p1)
}
  0x65   :  { %135 = dma.hbm_to_vmem [thread:$0]  %s6845_s21, 16, %s133_s26, [#allocation19]  }
  0x66   :  { %s6788_s15 = smov [#allocation21]   ;;  %s6789_s16 = smov [#allocation24]  }
  0x67   :  { %s154_s13 = sshll.u32 %s6788_s15, 4  ;;  %s176_s18 = sshll.u32 %s6789_s16, 4  ;;  %s155_s13 = int_to_ptr.vmem [resolvable:$true] %s154_s13  ;;  %s177_s18 = int_to_ptr.vmem [resolvable:$true] %s176_s18 }
  0x68   :  { %s6173_s22 = scalar_lea.hbm %s6855_s29, 16 }
  0x69   :  { %p6174_p2 = scmp.ne.s32.totalorder %s6855_s29, %s6173_s22  ;;  %p6177_p3 = scmp.lt.u32.totalorder %s6173_s22, %s6855_s29 }
  0x6b   :  { %p6179_p4 = pnand %p6177_p3, %p6174_p2 }
  0x6d   :  { %6182 = shalt.err (!%p6179_p4)
}
  0x6e   :  { %s6183_s0 = scalar_lea.vmem %s155_s13, 16  ;;  %s6187_s23 = scalar_lea.vmem %s155_s13, 32 }
  0x6f   :  { %p6184_p5 = scmp.ne.s32.totalorder %s155_s13, %s6183_s0  ;;  %p6188_p6 = scmp.lt.s32.totalorder %s155_s13, %s155_s13 }
  0x70   :  { %p6189_p7 = scmp.lt.s32.totalorder %s6187_s23, %s6183_s0 }
  0x72   :  { %p6190_p8 = por %p6189_p7, %p6188_p6 }
  0x74   :  { %p6191_p9 = pnand %p6190_p8, %p6184_p5 }
  0x76   :  { %6194 = shalt.err (!%p6191_p9)
}
  0x77   :  { %157 = dma.hbm_to_vmem [thread:$0]  %s6855_s29, 16, %s155_s13, [#allocation22]  }
  0x78   :  { %s6195_s21 = scalar_lea.hbm %s6865_s8, 16 }
  0x79   :  { %p6196_p10 = scmp.ne.s32.totalorder %s6865_s8, %s6195_s21  ;;  %p6199_p11 = scmp.lt.u32.totalorder %s6195_s21, %s6865_s8 }
  0x7b   :  { %p6201_p12 = pnand %p6199_p11, %p6196_p10 }
  0x7d   :  { %6204 = shalt.err (!%p6201_p12)
}
  0x7e   :  { %s6205_s26 = scalar_lea.vmem %s177_s18, 16  ;;  %s6209_s28 = scalar_lea.vmem %s177_s18, 32 }
  0x7f   :  { %p6206_p13 = scmp.ne.s32.totalorder %s177_s18, %s6205_s26  ;;  %p6210_p0 = scmp.lt.s32.totalorder %s177_s18, %s177_s18 }
  0x80   :  { %p6211_p1 = scmp.lt.s32.totalorder %s6209_s28, %s6205_s26 }
  0x82   :  { %p6212_p2 = por %p6211_p1, %p6210_p0 }
  0x84   :  { %p6213_p3 = pnand %p6212_p2, %p6206_p13 }
  0x86   :  { %6216 = shalt.err (!%p6213_p3)
}
  0x87   :  { %179 = dma.hbm_to_vmem [thread:$0]  %s6865_s8, 16, %s177_s18, [#allocation25]  }
  0x88   :  { %s6790_s1 = smov [#allocation27]   ;;  %s6791_s2 = smov [#allocation30]  }
  0x89   :  { %s198_s29 = sshll.u32 %s6790_s1, 4  ;;  %s220_s7 = sshll.u32 %s6791_s2, 4  ;;  %s199_s29 = int_to_ptr.vmem [resolvable:$true] %s198_s29  ;;  %s221_s7 = int_to_ptr.vmem [resolvable:$true] %s220_s7 }
  0x8a   :  { %s6217_s10 = scalar_lea.hbm %s6875_s19, 16 }
  0x8b   :  { %p6218_p4 = scmp.ne.s32.totalorder %s6875_s19, %s6217_s10  ;;  %p6221_p5 = scmp.lt.u32.totalorder %s6217_s10, %s6875_s19 }
  0x8d   :  { %p6223_p6 = pnand %p6221_p5, %p6218_p4 }
  0x8f   :  { %6226 = shalt.err (!%p6223_p6)
}
  0x90   :  { %s6227_s11 = scalar_lea.vmem %s199_s29, 16  ;;  %s6231_s15 = scalar_lea.vmem %s199_s29, 32 }
  0x91   :  { %p6228_p7 = scmp.ne.s32.totalorder %s199_s29, %s6227_s11  ;;  %p6232_p8 = scmp.lt.s32.totalorder %s199_s29, %s199_s29 }
  0x92   :  { %p6233_p9 = scmp.lt.s32.totalorder %s6231_s15, %s6227_s11 }
  0x94   :  { %p6234_p10 = por %p6233_p9, %p6232_p8 }
  0x96   :  { %p6235_p11 = pnand %p6234_p10, %p6228_p7 }
  0x98   :  { %6238 = shalt.err (!%p6235_p11)
}
  0x99   :  { %201 = dma.hbm_to_vmem [thread:$0]  %s6875_s19, 16, %s199_s29, [#allocation28]  }
  0x9a   :  { %s6239_s8 = scalar_lea.hbm %s6885_s30, 16 }
  0x9b   :  { %p6240_p12 = scmp.ne.s32.totalorder %s6885_s30, %s6239_s8  ;;  %p6243_p13 = scmp.lt.u32.totalorder %s6239_s8, %s6885_s30 }
  0x9d   :  { %p6245_p0 = pnand %p6243_p13, %p6240_p12 }
  0x9f   :  { %6248 = shalt.err (!%p6245_p0)
}
  0xa0   :  { %s6249_s13 = scalar_lea.vmem %s221_s7, 16  ;;  %s6253_s16 = scalar_lea.vmem %s221_s7, 32 }
  0xa1   :  { %p6250_p1 = scmp.ne.s32.totalorder %s221_s7, %s6249_s13  ;;  %p6254_p2 = scmp.lt.s32.totalorder %s221_s7, %s221_s7 }
  0xa2   :  { %p6255_p3 = scmp.lt.s32.totalorder %s6253_s16, %s6249_s13 }
  0xa4   :  { %p6256_p4 = por %p6255_p3, %p6254_p2 }
  0xa6   :  { %p6257_p5 = pnand %p6256_p4, %p6250_p1 }
  0xa8   :  { %6260 = shalt.err (!%p6257_p5)
}
  0xa9   :  { %223 = dma.hbm_to_vmem [thread:$0]  %s6885_s30, 16, %s221_s7, [#allocation31]  }
  0xaa   :  { %s6792_s18 = smov [#allocation33]   ;;  %s6793_s22 = smov [#allocation36]  }
  0xab   :  { %s242_s19 = sshll.u32 %s6792_s18, 4  ;;  %s264_s0 = sshll.u32 %s6793_s22, 4  ;;  %s243_s19 = int_to_ptr.vmem [resolvable:$true] %s242_s19  ;;  %s265_s0 = int_to_ptr.vmem [resolvable:$true] %s264_s0 }
  0xac   :  { %s6261_s23 = scalar_lea.hbm %s6895_s12, 16 }
  0xad   :  { %p6262_p6 = scmp.ne.s32.totalorder %s6895_s12, %s6261_s23  ;;  %p6265_p7 = scmp.lt.u32.totalorder %s6261_s23, %s6895_s12 }
  0xaf   :  { %p6267_p8 = pnand %p6265_p7, %p6262_p6 }
  0xb1   :  { %6270 = shalt.err (!%p6267_p8)
}
  0xb2   :  { %s6271_s21 = scalar_lea.vmem %s243_s19, 16  ;;  %s6275_s26 = scalar_lea.vmem %s243_s19, 32 }
  0xb3   :  { %p6272_p9 = scmp.ne.s32.totalorder %s243_s19, %s6271_s21  ;;  %p6276_p10 = scmp.lt.s32.totalorder %s243_s19, %s243_s19 }
  0xb4   :  { %p6277_p11 = scmp.lt.s32.totalorder %s6275_s26, %s6271_s21 }
  0xb6   :  { %p6278_p12 = por %p6277_p11, %p6276_p10 }
  0xb8   :  { %p6279_p13 = pnand %p6278_p12, %p6272_p9 }
  0xba   :  { %6282 = shalt.err (!%p6279_p13)
}
  0xbb   :  { %245 = dma.hbm_to_vmem [thread:$0]  %s6895_s12, 16, %s243_s19, [#allocation34]  }
  0xbc   :  { %s6283_s30 = scalar_lea.hbm %s6905_s27, 16 }
  0xbd   :  { %p6284_p0 = scmp.ne.s32.totalorder %s6905_s27, %s6283_s30  ;;  %p6287_p1 = scmp.lt.u32.totalorder %s6283_s30, %s6905_s27 }
  0xbf   :  { %p6289_p2 = pnand %p6287_p1, %p6284_p0 }
  0xc1   :  { %6292 = shalt.err (!%p6289_p2)
}
  0xc2   :  { %s6293_s28 = scalar_lea.vmem %s265_s0, 16  ;;  %s6297_s1 = scalar_lea.vmem %s265_s0, 32 }
  0xc3   :  { %p6294_p3 = scmp.ne.s32.totalorder %s265_s0, %s6293_s28  ;;  %p6298_p4 = scmp.lt.s32.totalorder %s265_s0, %s265_s0 }
  0xc4   :  { %p6299_p5 = scmp.lt.s32.totalorder %s6297_s1, %s6293_s28 }
  0xc6   :  { %p6300_p6 = por %p6299_p5, %p6298_p4 }
  0xc8   :  { %p6301_p7 = pnand %p6300_p6, %p6294_p3 }
  0xca   :  { %6304 = shalt.err (!%p6301_p7)
}
  0xcb   :  { %267 = dma.hbm_to_vmem [thread:$0]  %s6905_s27, 16, %s265_s0, [#allocation37]  }
  0xcc   :  { %s6794_s29 = smov [#allocation39]   ;;  %s6795_s2 = smov [#allocation42]  }
  0xcd   :  { %s285_s12 = sshll.u32 %s6794_s29, 4  ;;  %s310_s7 = sshll.u32 %s6795_s2, 4  ;;  %s286_s12 = int_to_ptr.vmem [resolvable:$true] %s285_s12  ;;  %s7034_s7 = int_to_ptr.vmem [resolvable:$true] %s310_s7 }
  0xce   :  { %s6305_s10 = scalar_lea.hbm %s6920_s20, 1024 }
  0xcf   :  { %p6306_p8 = scmp.ne.s32.totalorder %s6920_s20, %s6305_s10  ;;  %p6309_p9 = scmp.lt.u32.totalorder %s6305_s10, %s6920_s20 }
  0xd1   :  { %p6311_p10 = pnand %p6309_p9, %p6306_p8 }
  0xd3   :  { %6314 = shalt.err (!%p6311_p10)
}
  0xd4   :  { %s6315_s11 = scalar_lea.vmem %s286_s12, 1024  ;;  %p6320_p12 = scmp.lt.s32.totalorder %s286_s12, %s286_s12 }
  0xd5   :  { %p6316_p11 = scmp.ne.s32.totalorder %s286_s12, %s6315_s11  ;;  %p6321_p13 = scmp.lt.s32.totalorder %s6315_s11, %s6315_s11 }
  0xd7   :  { %p6322_p0 = por %p6321_p13, %p6320_p12 }
  0xd9   :  { %p6323_p1 = pnand %p6322_p0, %p6316_p11 }
  0xdb   :  { %6326 = shalt.err (!%p6323_p1)
}
  0xdc   :  { %s6796_s27 = smov 64   ;;  %s6797_s15 = smov 4  }
  0xdd   :  { %291 = dma.hbm_to_vmem [thread:$0]  %s6920_s20, 1024, %s286_s12, [#allocation40], %s6796_s27, %s6796_s27, %s6797_s15  }
  0xde   :  { %s6327_s8 = scalar_lea.hbm %s6935_s5, 16 }
  0xdf   :  { %p6328_p2 = scmp.ne.s32.totalorder %s6935_s5, %s6327_s8  ;;  %p6331_p3 = scmp.lt.u32.totalorder %s6327_s8, %s6935_s5 }
  0xe1   :  { %p6333_p4 = pnand %p6331_p3, %p6328_p2 }
  0xe3   :  { %6336 = shalt.err (!%p6333_p4)
}
  0xe4   :  { %s6337_s13 = scalar_lea.vmem %s7034_s7, 16  ;;  %s6341_s16 = scalar_lea.vmem %s7034_s7, 32 }
  0xe5   :  { %p6338_p5 = scmp.ne.s32.totalorder %s7034_s7, %s6337_s13  ;;  %p6342_p6 = scmp.lt.s32.totalorder %s7034_s7, %s7034_s7 }
  0xe6   :  { %p6343_p7 = scmp.lt.s32.totalorder %s6341_s16, %s6337_s13 }
  0xe8   :  { %p6344_p8 = por %p6343_p7, %p6342_p6 }
  0xea   :  { %p6345_p9 = pnand %p6344_p8, %p6338_p5 }
  0xec   :  { %6348 = shalt.err (!%p6345_p9)
}
  0xed   :  { %313 = dma.hbm_to_vmem [thread:$0]  %s6935_s5, 16, %s7034_s7, [#allocation43]  }
  0xee   :  { %s6798_s20 = smov [#allocation45]   ;;  %s6799_s19 = smov [#allocation48]  }
  0xef   :  { %s331_s18 = sshll.u32 %s6798_s20, 4  ;;  %s356_s22 = sshll.u32 %s6799_s19, 4  ;;  %s332_s18 = int_to_ptr.vmem [resolvable:$true] %s331_s18  ;;  %s357_s22 = int_to_ptr.vmem [resolvable:$true] %s356_s22 }
  0xf0   :  { %s6349_s0 = scalar_lea.hbm %s6950_s4, 1024 }
  0xf1   :  { %p6350_p10 = scmp.ne.s32.totalorder %s6950_s4, %s6349_s0  ;;  %p6353_p11 = scmp.lt.u32.totalorder %s6349_s0, %s6950_s4 }
  0xf3   :  { %p6355_p12 = pnand %p6353_p11, %p6350_p10 }
  0xf5   :  { %6358 = shalt.err (!%p6355_p12)
}
  0xf6   :  { %s6359_s23 = scalar_lea.vmem %s332_s18, 1024  ;;  %p6364_p0 = scmp.lt.s32.totalorder %s332_s18, %s332_s18 }
  0xf7   :  { %p6360_p13 = scmp.ne.s32.totalorder %s332_s18, %s6359_s23  ;;  %p6365_p1 = scmp.lt.s32.totalorder %s6359_s23, %s6359_s23 }
  0xf9   :  { %p6366_p2 = por %p6365_p1, %p6364_p0 }
  0xfb   :  { %p6367_p3 = pnand %p6366_p2, %p6360_p13 }
  0xfd   :  { %6370 = shalt.err (!%p6367_p3)
}
  0xfe   :  { %337 = dma.hbm_to_vmem [thread:$0]  %s6950_s4, 1024, %s332_s18, [#allocation46], %s6796_s27, %s6796_s27, %s6797_s15  }
  0xff   :  { %s6371_s5 = scalar_lea.hbm %s6965_s6, 16 }
 0x100   :  { %p6372_p4 = scmp.ne.s32.totalorder %s6965_s6, %s6371_s5  ;;  %p6375_p5 = scmp.lt.u32.totalorder %s6371_s5, %s6965_s6 }
 0x102   :  { %p6377_p6 = pnand %p6375_p5, %p6372_p4 }
 0x104   :  { %6380 = shalt.err (!%p6377_p6)
}
 0x105   :  { %s6381_s21 = scalar_lea.vmem %s357_s22, 16  ;;  %s6385_s26 = scalar_lea.vmem %s357_s22, 32 }
 0x106   :  { %p6382_p7 = scmp.ne.s32.totalorder %s357_s22, %s6381_s21  ;;  %p6386_p8 = scmp.lt.s32.totalorder %s357_s22, %s357_s22 }
 0x107   :  { %p6387_p9 = scmp.lt.s32.totalorder %s6385_s26, %s6381_s21 }
 0x109   :  { %p6388_p10 = por %p6387_p9, %p6386_p8 }
 0x10b   :  { %p6389_p11 = pnand %p6388_p10, %p6382_p7 }
 0x10d   :  { %6392 = shalt.err (!%p6389_p11)
}
 0x10e   :  { %359 = dma.hbm_to_vmem [thread:$0]  %s6965_s6, 16, %s357_s22, [#allocation49]  }
 0x10f   :  { %s6800_s30 = smov [#allocation51]   ;;  %s6801_s28 = smov [#allocation13]  }
 0x110   :  { %s377_s4 = sshll.u32 %s6800_s30, 4  ;;  %s97_s1 = sshll.u32 %s6801_s28, 4  ;;  %s378_s4 = int_to_ptr.vmem [resolvable:$true] %s377_s4  ;;  %s7064_s1 = int_to_ptr.vmem [resolvable:$true] %s97_s1 }
 0x111   :  { %s6393_s29 = scalar_lea.hbm %s6980_s24, 1024 }
 0x112   :  { %p6394_p12 = scmp.ne.s32.totalorder %s6980_s24, %s6393_s29  ;;  %p6397_p13 = scmp.lt.u32.totalorder %s6393_s29, %s6980_s24 }
 0x114   :  { %p6399_p0 = pnand %p6397_p13, %p6394_p12 }
 0x116   :  { %6402 = shalt.err (!%p6399_p0)
}
 0x117   :  { %s6403_s12 = scalar_lea.vmem %s378_s4, 1024  ;;  %p6408_p2 = scmp.lt.s32.totalorder %s378_s4, %s378_s4 }
 0x118   :  { %p6404_p1 = scmp.ne.s32.totalorder %s378_s4, %s6403_s12  ;;  %p6409_p3 = scmp.lt.s32.totalorder %s6403_s12, %s6403_s12 }
 0x11a   :  { %p6410_p4 = por %p6409_p3, %p6408_p2 }
 0x11c   :  { %p6411_p5 = pnand %p6410_p4, %p6404_p1 }
 0x11e   :  { %6414 = shalt.err (!%p6411_p5)
}
 0x11f   :  { %383 = dma.hbm_to_vmem [thread:$0]  %s6980_s24, 1024, %s378_s4, [#allocation52], %s6796_s27, %s6796_s27, %s6797_s15  }
 0x120   :  { %s6415_s6 = scalar_lea.hbm %s6830_s9, 768 }
 0x121   :  { %p6416_p6 = scmp.ne.s32.totalorder %s6830_s9, %s6415_s6  ;;  %p6419_p7 = scmp.lt.u32.totalorder %s6415_s6, %s6830_s9 }
 0x123   :  { %p6421_p8 = pnand %p6419_p7, %p6416_p6 }
 0x125   :  { %6424 = shalt.err (!%p6421_p8)
}
 0x126   :  { %s6425_s2 = scalar_lea.vmem %s7064_s1, 768  ;;  %p6430_p10 = scmp.lt.s32.totalorder %s7064_s1, %s7064_s1 }
 0x127   :  { %p6426_p9 = scmp.ne.s32.totalorder %s7064_s1, %s6425_s2  ;;  %p6431_p11 = scmp.lt.s32.totalorder %s6425_s2, %s6425_s2 }
 0x129   :  { %p6432_p12 = por %p6431_p11, %p6430_p10 }
 0x12b   :  { %p6433_p13 = pnand %p6432_p12, %p6426_p9 }
 0x12d   :  { %6436 = shalt.err (!%p6433_p13)
}
 0x12e   :  { %s7509_s24 = sld [smem:[#allocation69_spill]]  ;;  %s6802_s7 = smov [#allocation17]  }
 0x12f   :  { %103 = dma.hbm_to_vmem [thread:$0]  %s6830_s9, 768, %s7064_s1, [#allocation14], %s6796_s27, %s6796_s27, %s6797_s15  }
 0x130   :  { %s119_s10 = sshll.u32 %s6802_s7, 4  ;;  %s6803_s11 = smov [#allocation20]   ;;  %s120_s10 = int_to_ptr.vmem [resolvable:$true] %s119_s10 }
 0x131   :  { %s141_s8 = sshll.u32 %s6803_s11, 4  ;;  %s7085_s8 = int_to_ptr.vmem [resolvable:$true] %s141_s8 }
 0x134   :  { %s6437_s13 = scalar_lea.hbm %s7509_s24, 3072 }
 0x135   :  { %p6438_p0 = scmp.ne.s32.totalorder %s7509_s24, %s6437_s13  ;;  %p6441_p1 = scmp.lt.u32.totalorder %s6437_s13, %s7509_s24 }
 0x137   :  { %p6443_p2 = pnand %p6441_p1, %p6438_p0 }
 0x139   :  { %6446 = shalt.err (!%p6443_p2)
}
 0x13a   :  { %s6447_s16 = scalar_lea.vmem %s120_s10, 3072  ;;  %p6452_p4 = scmp.lt.s32.totalorder %s120_s10, %s120_s10 }
 0x13b   :  { %p6448_p3 = scmp.ne.s32.totalorder %s120_s10, %s6447_s16  ;;  %p6453_p5 = scmp.lt.s32.totalorder %s6447_s16, %s6447_s16 }
 0x13d   :  { %p6454_p6 = por %p6453_p5, %p6452_p4 }
 0x13f   :  { %p6455_p7 = pnand %p6454_p6, %p6448_p3 }
 0x141   :  { %6458 = shalt.err (!%p6455_p7)
}
 0x142   :  { %s7510_s9 = sld [smem:[#allocation70_spill]] }
 0x143   :  { %125 = dma.hbm_to_vmem [thread:$0]  %s7509_s24, 3072, %s120_s10, [#allocation16], %s6796_s27, %s6796_s27, %s6797_s15  }
 0x148   :  { %s6459_s20 = scalar_lea.hbm %s7510_s9, 3072 }
 0x149   :  { %p6460_p8 = scmp.ne.s32.totalorder %s7510_s9, %s6459_s20  ;;  %p6463_p9 = scmp.lt.u32.totalorder %s6459_s20, %s7510_s9 }
 0x14b   :  { %p6465_p10 = pnand %p6463_p9, %p6460_p8 }
 0x14d   :  { %6468 = shalt.err (!%p6465_p10)
}
 0x14e   :  { %s6469_s18 = scalar_lea.vmem %s7085_s8, 3072  ;;  %p6474_p12 = scmp.lt.s32.totalorder %s7085_s8, %s7085_s8 }
 0x14f   :  { %p6470_p11 = scmp.ne.s32.totalorder %s7085_s8, %s6469_s18  ;;  %p6475_p13 = scmp.lt.s32.totalorder %s6469_s18, %s6469_s18 }
 0x151   :  { %p6476_p0 = por %p6475_p13, %p6474_p12 }
 0x153   :  { %p6477_p1 = pnand %p6476_p0, %p6470_p11 }
 0x155   :  { %6480 = shalt.err (!%p6477_p1)
}
 0x156   :  { %s7511_s19 = sld [smem:[#allocation71_spill]]  ;;  %s6804_s22 = smov [#allocation23]  }
 0x157   :  { %147 = dma.hbm_to_vmem [thread:$0]  %s7510_s9, 3072, %s7085_s8, [#allocation19], %s6796_s27, %s6796_s27, %s6797_s15  }
 0x158   :  { %s163_s0 = sshll.u32 %s6804_s22, 4  ;;  %s6805_s23 = smov [#allocation26]   ;;  %s164_s0 = int_to_ptr.vmem [resolvable:$true] %s163_s0 }
 0x159   :  { %s185_s5 = sshll.u32 %s6805_s23, 4  ;;  %s7106_s5 = int_to_ptr.vmem [resolvable:$true] %s185_s5 }
 0x15c   :  { %s6481_s21 = scalar_lea.hbm %s7511_s19, 1024 }
 0x15d   :  { %p6482_p2 = scmp.ne.s32.totalorder %s7511_s19, %s6481_s21  ;;  %p6485_p3 = scmp.lt.u32.totalorder %s6481_s21, %s7511_s19 }
 0x15f   :  { %p6487_p4 = pnand %p6485_p3, %p6482_p2 }
 0x161   :  { %6490 = shalt.err (!%p6487_p4)
}
 0x162   :  { %s6491_s26 = scalar_lea.vmem %s164_s0, 1024  ;;  %p6496_p6 = scmp.lt.s32.totalorder %s164_s0, %s164_s0 }
 0x163   :  { %p6492_p5 = scmp.ne.s32.totalorder %s164_s0, %s6491_s26  ;;  %p6497_p7 = scmp.lt.s32.totalorder %s6491_s26, %s6491_s26 }
 0x165   :  { %p6498_p8 = por %p6497_p7, %p6496_p6 }
 0x167   :  { %p6499_p9 = pnand %p6498_p8, %p6492_p5 }
 0x169   :  { %6502 = shalt.err (!%p6499_p9)
}
 0x16a   :  { %s7512_s30 = sld [smem:[#allocation72_spill]] }
 0x16b   :  { %169 = dma.hbm_to_vmem [thread:$0]  %s7511_s19, 1024, %s164_s0, [#allocation22], %s6796_s27, %s6796_s27, %s6797_s15  }
 0x170   :  { %s6503_s4 = scalar_lea.hbm %s7512_s30, 3072 }
 0x171   :  { %p6504_p10 = scmp.ne.s32.totalorder %s7512_s30, %s6503_s4  ;;  %p6507_p11 = scmp.lt.u32.totalorder %s6503_s4, %s7512_s30 }
 0x173   :  { %p6509_p12 = pnand %p6507_p11, %p6504_p10 }
 0x175   :  { %6512 = shalt.err (!%p6509_p12)
}
 0x176   :  { %s6513_s28 = scalar_lea.vmem %s7106_s5, 3072  ;;  %p6518_p0 = scmp.lt.s32.totalorder %s7106_s5, %s7106_s5 }
 0x177   :  { %p6514_p13 = scmp.ne.s32.totalorder %s7106_s5, %s6513_s28  ;;  %p6519_p1 = scmp.lt.s32.totalorder %s6513_s28, %s6513_s28 }
 0x179   :  { %p6520_p2 = por %p6519_p1, %p6518_p0 }
 0x17b   :  { %p6521_p3 = pnand %p6520_p2, %p6514_p13 }
 0x17d   :  { %6524 = shalt.err (!%p6521_p3)
}
 0x17e   :  { %s7513_s1 = sld [smem:[#allocation73_spill]]  ;;  %s6806_s29 = smov [#allocation29]  }
 0x17f   :  { %191 = dma.hbm_to_vmem [thread:$0]  %s7512_s30, 3072, %s7106_s5, [#allocation25], %s6796_s27, %s6796_s27, %s6797_s15  }
 0x180   :  { %s207_s12 = sshll.u32 %s6806_s29, 4  ;;  %s6807_s6 = smov [#allocation32]   ;;  %s208_s12 = int_to_ptr.vmem [resolvable:$true] %s207_s12 }
 0x181   :  { %s229_s2 = sshll.u32 %s6807_s6, 4  ;;  %s7127_s2 = int_to_ptr.vmem [resolvable:$true] %s229_s2 }
 0x184   :  { %s6525_s24 = scalar_lea.hbm %s7513_s1, 3072 }
 0x185   :  { %p6526_p4 = scmp.ne.s32.totalorder %s7513_s1, %s6525_s24  ;;  %p6529_p5 = scmp.lt.u32.totalorder %s6525_s24, %s7513_s1 }
 0x187   :  { %p6531_p6 = pnand %p6529_p5, %p6526_p4 }
 0x189   :  { %6534 = shalt.err (!%p6531_p6)
}
 0x18a   :  { %s6535_s7 = scalar_lea.vmem %s208_s12, 3072  ;;  %p6540_p8 = scmp.lt.s32.totalorder %s208_s12, %s208_s12 }
 0x18b   :  { %p6536_p7 = scmp.ne.s32.totalorder %s208_s12, %s6535_s7  ;;  %p6541_p9 = scmp.lt.s32.totalorder %s6535_s7, %s6535_s7 }
 0x18d   :  { %p6542_p10 = por %p6541_p9, %p6540_p8 }
 0x18f   :  { %p6543_p11 = pnand %p6542_p10, %p6536_p7 }
 0x191   :  { %6546 = shalt.err (!%p6543_p11)
}
 0x192   :  { %s7514_s10 = sld [smem:[#allocation74_spill]] }
 0x193   :  { %213 = dma.hbm_to_vmem [thread:$0]  %s7513_s1, 3072, %s208_s12, [#allocation28], %s6796_s27, %s6796_s27, %s6797_s15  }
 0x198   :  { %s6547_s11 = scalar_lea.hbm %s7514_s10, 1024 }
 0x199   :  { %p6548_p12 = scmp.ne.s32.totalorder %s7514_s10, %s6547_s11  ;;  %p6551_p13 = scmp.lt.u32.totalorder %s6547_s11, %s7514_s10 }
 0x19b   :  { %p6553_p0 = pnand %p6551_p13, %p6548_p12 }
 0x19d   :  { %6556 = shalt.err (!%p6553_p0)
}
 0x19e   :  { %s6557_s8 = scalar_lea.vmem %s7127_s2, 1024  ;;  %p6562_p2 = scmp.lt.s32.totalorder %s7127_s2, %s7127_s2 }
 0x19f   :  { %p6558_p1 = scmp.ne.s32.totalorder %s7127_s2, %s6557_s8  ;;  %p6563_p3 = scmp.lt.s32.totalorder %s6557_s8, %s6557_s8 }
 0x1a1   :  { %p6564_p4 = por %p6563_p3, %p6562_p2 }
 0x1a3   :  { %p6565_p5 = pnand %p6564_p4, %p6558_p1 }
 0x1a5   :  { %6568 = shalt.err (!%p6565_p5)
}
 0x1a6   :  { %s7515_s13 = sld [smem:[#allocation75_spill]]  ;;  %s6808_s16 = smov [#allocation35]  }
 0x1a7   :  { %235 = dma.hbm_to_vmem [thread:$0]  %s7514_s10, 1024, %s7127_s2, [#allocation31], %s6796_s27, %s6796_s27, %s6797_s15  }
 0x1a8   :  { %s251_s9 = sshll.u32 %s6808_s16, 4  ;;  %s6809_s20 = smov [#allocation38]   ;;  %s252_s9 = int_to_ptr.vmem [resolvable:$true] %s251_s9 }
 0x1a9   :  { %s276_s18 = sshll.u32 %s6809_s20, 4  ;;  %s277_s18 = int_to_ptr.vmem [resolvable:$true] %s276_s18 }
 0x1ac   :  { %s6569_s19 = scalar_lea.hbm %s7515_s13, 3072 }
 0x1ad   :  { %p6570_p6 = scmp.ne.s32.totalorder %s7515_s13, %s6569_s19  ;;  %p6573_p7 = scmp.lt.u32.totalorder %s6569_s19, %s7515_s13 }
 0x1af   :  { %p6575_p8 = pnand %p6573_p7, %p6570_p6 }
 0x1b1   :  { %6578 = shalt.err (!%p6575_p8)
}
 0x1b2   :  { %s6579_s22 = scalar_lea.vmem %s252_s9, 3072  ;;  %p6584_p10 = scmp.lt.s32.totalorder %s252_s9, %s252_s9 }
 0x1b3   :  { %p6580_p9 = scmp.ne.s32.totalorder %s252_s9, %s6579_s22  ;;  %p6585_p11 = scmp.lt.s32.totalorder %s6579_s22, %s6579_s22 }
 0x1b5   :  { %p6586_p12 = por %p6585_p11, %p6584_p10 }
 0x1b7   :  { %p6587_p13 = pnand %p6586_p12, %p6580_p9 }
 0x1b9   :  { %6590 = shalt.err (!%p6587_p13)
}
 0x1ba   :  { %s7516_s0 = sld [smem:[#allocation77_spill]] }
 0x1bb   :  { %257 = dma.hbm_to_vmem [thread:$0]  %s7515_s13, 3072, %s252_s9, [#allocation34], %s6796_s27, %s6796_s27, %s6797_s15  }
 0x1c0   :  { %s6591_s23 = scalar_lea.hbm %s7516_s0, 16 }
 0x1c1   :  { %p6592_p0 = scmp.ne.s32.totalorder %s7516_s0, %s6591_s23  ;;  %p6595_p1 = scmp.lt.u32.totalorder %s6591_s23, %s7516_s0 }
 0x1c3   :  { %p6597_p2 = pnand %p6595_p1, %p6592_p0 }
 0x1c5   :  { %6600 = shalt.err (!%p6597_p2)
}
 0x1c6   :  { %s6601_s5 = scalar_lea.vmem %s277_s18, 16  ;;  %s6605_s21 = scalar_lea.vmem %s277_s18, 32 }
 0x1c7   :  { %p6602_p3 = scmp.ne.s32.totalorder %s277_s18, %s6601_s5  ;;  %p6606_p4 = scmp.lt.s32.totalorder %s277_s18, %s277_s18 }
 0x1c8   :  { %p6607_p5 = scmp.lt.s32.totalorder %s6605_s21, %s6601_s5 }
 0x1ca   :  { %p6608_p6 = por %p6607_p5, %p6606_p4 }
 0x1cc   :  { %p6609_p7 = pnand %p6608_p6, %p6602_p3 }
 0x1ce   :  { %6612 = shalt.err (!%p6609_p7)
}
 0x1cf   :  { %s7517_s26 = sld [smem:[#allocation78_spill]]  ;;  %s6810_s30 = smov [#allocation41]  }
 0x1d0   :  { %279 = dma.hbm_to_vmem [thread:$0]  %s7516_s0, 16, %s277_s18, [#allocation37]  }
 0x1d1   :  { %s298_s27 = sshll.u32 %s6810_s30, 4  ;;  %s6811_s15 = smov [#allocation44]   ;;  %s299_s27 = int_to_ptr.vmem [resolvable:$true] %s298_s27 }
 0x1d2   :  { %s322_s4 = sshll.u32 %s6811_s15, 4  ;;  %s323_s4 = int_to_ptr.vmem [resolvable:$true] %s322_s4 }
 0x1d5   :  { %s6613_s28 = scalar_lea.hbm %s7517_s26, 16 }
 0x1d6   :  { %p6614_p8 = scmp.ne.s32.totalorder %s7517_s26, %s6613_s28  ;;  %p6617_p9 = scmp.lt.u32.totalorder %s6613_s28, %s7517_s26 }
 0x1d8   :  { %p6619_p10 = pnand %p6617_p9, %p6614_p8 }
 0x1da   :  { %6622 = shalt.err (!%p6619_p10)
}
 0x1db   :  { %s6623_s1 = scalar_lea.vmem %s299_s27, 16  ;;  %s6627_s29 = scalar_lea.vmem %s299_s27, 32 }
 0x1dc   :  { %p6624_p11 = scmp.ne.s32.totalorder %s299_s27, %s6623_s1  ;;  %p6628_p12 = scmp.lt.s32.totalorder %s299_s27, %s299_s27 }
 0x1dd   :  { %p6629_p13 = scmp.lt.s32.totalorder %s6627_s29, %s6623_s1 }
 0x1df   :  { %p6630_p0 = por %p6629_p13, %p6628_p12 }
 0x1e1   :  { %p6631_p1 = pnand %p6630_p0, %p6624_p11 }
 0x1e3   :  { %6634 = shalt.err (!%p6631_p1)
}
 0x1e4   :  { %s7518_s12 = sld [smem:[#allocation81_spill]] }
 0x1e5   :  { %301 = dma.hbm_to_vmem [thread:$0]  %s7517_s26, 16, %s299_s27, [#allocation40]  }
 0x1ea   :  { %s6635_s6 = scalar_lea.hbm %s7518_s12, 16 }
 0x1eb   :  { %p6636_p2 = scmp.ne.s32.totalorder %s7518_s12, %s6635_s6  ;;  %p6639_p3 = scmp.lt.u32.totalorder %s6635_s6, %s7518_s12 }
 0x1ed   :  { %p6641_p4 = pnand %p6639_p3, %p6636_p2 }
 0x1ef   :  { %6644 = shalt.err (!%p6641_p4)
}
 0x1f0   :  { %s6645_s2 = scalar_lea.vmem %s323_s4, 16  ;;  %s6649_s24 = scalar_lea.vmem %s323_s4, 32 }
 0x1f1   :  { %p6646_p5 = scmp.ne.s32.totalorder %s323_s4, %s6645_s2  ;;  %p6650_p6 = scmp.lt.s32.totalorder %s323_s4, %s323_s4 }
 0x1f2   :  { %p6651_p7 = scmp.lt.s32.totalorder %s6649_s24, %s6645_s2 }
 0x1f4   :  { %p6652_p8 = por %p6651_p7, %p6650_p6 }
 0x1f6   :  { %p6653_p9 = pnand %p6652_p8, %p6646_p5 }
 0x1f8   :  { %6656 = shalt.err (!%p6653_p9)
}
 0x1f9   :  { %s7519_s7 = sld [smem:[#allocation82_spill]]  ;;  %s6812_s10 = smov [#allocation47]  }
 0x1fa   :  { %325 = dma.hbm_to_vmem [thread:$0]  %s7518_s12, 16, %s323_s4, [#allocation43]  }
 0x1fb   :  { %s344_s11 = sshll.u32 %s6812_s10, 4  ;;  %s6813_s8 = smov [#allocation50]   ;;  %s345_s11 = int_to_ptr.vmem [resolvable:$true] %s344_s11 }
 0x1fc   :  { %s368_s13 = sshll.u32 %s6813_s8, 4  ;;  %s369_s13 = int_to_ptr.vmem [resolvable:$true] %s368_s13 }
 0x1ff   :  { %s6657_s16 = scalar_lea.hbm %s7519_s7, 16 }
 0x200   :  { %p6658_p10 = scmp.ne.s32.totalorder %s7519_s7, %s6657_s16  ;;  %p6661_p11 = scmp.lt.u32.totalorder %s6657_s16, %s7519_s7 }
 0x202   :  { %p6663_p12 = pnand %p6661_p11, %p6658_p10 }
 0x204   :  { %6666 = shalt.err (!%p6663_p12)
}
 0x205   :  { %s6667_s9 = scalar_lea.vmem %s345_s11, 16  ;;  %s6671_s20 = scalar_lea.vmem %s345_s11, 32 }
 0x206   :  { %p6668_p13 = scmp.ne.s32.totalorder %s345_s11, %s6667_s9  ;;  %p6672_p0 = scmp.lt.s32.totalorder %s345_s11, %s345_s11 }
 0x207   :  { %p6673_p1 = scmp.lt.s32.totalorder %s6671_s20, %s6667_s9 }
 0x209   :  { %p6674_p2 = por %p6673_p1, %p6672_p0 }
 0x20b   :  { %p6675_p3 = pnand %p6674_p2, %p6668_p13 }
 0x20d   :  { %6678 = shalt.err (!%p6675_p3)
}
 0x20e   :  { %s7520_s18 = sld [smem:[#allocation85_spill]] }
 0x20f   :  { %347 = dma.hbm_to_vmem [thread:$0]  %s7519_s7, 16, %s345_s11, [#allocation46]  }
 0x214   :  { %s6679_s19 = scalar_lea.hbm %s7520_s18, 16 }
 0x215   :  { %p6680_p4 = scmp.ne.s32.totalorder %s7520_s18, %s6679_s19  ;;  %p6683_p5 = scmp.lt.u32.totalorder %s6679_s19, %s7520_s18 }
 0x217   :  { %p6685_p6 = pnand %p6683_p5, %p6680_p4 }
 0x219   :  { %6688 = shalt.err (!%p6685_p6)
}
 0x21a   :  { %s6689_s22 = scalar_lea.vmem %s369_s13, 16  ;;  %s6693_s0 = scalar_lea.vmem %s369_s13, 32 }
 0x21b   :  { %p6690_p7 = scmp.ne.s32.totalorder %s369_s13, %s6689_s22  ;;  %p6694_p8 = scmp.lt.s32.totalorder %s369_s13, %s369_s13 }
 0x21c   :  { %p6695_p9 = scmp.lt.s32.totalorder %s6693_s0, %s6689_s22 }
 0x21e   :  { %p6696_p10 = por %p6695_p9, %p6694_p8 }
 0x220   :  { %p6697_p11 = pnand %p6696_p10, %p6690_p7 }
 0x222   :  { %6700 = shalt.err (!%p6697_p11)
}
 0x223   :  { %371 = dma.hbm_to_vmem [thread:$0]  %s7520_s18, 16, %s369_s13, [#allocation49]  }
 0x224   :  { %s6814_s23 = smov [#allocation53]   ;;  %s6701_s21 = scalar_lea.hbm %s6985_s25, 16 }
 0x225   :  { %s390_s5 = sshll.u32 %s6814_s23, 4  ;;  %p6702_p12 = scmp.ne.s32.totalorder %s6985_s25, %s6701_s21  ;;  %s391_s5 = int_to_ptr.vmem [resolvable:$true] %s390_s5 }
 0x226   :  { %p6705_p13 = scmp.lt.u32.totalorder %s6701_s21, %s6985_s25 }
 0x228   :  { %p6707_p0 = pnand %p6705_p13, %p6702_p12 }
 0x22a   :  { %6710 = shalt.err (!%p6707_p0)
}
 0x22b   :  { %s6711_s26 = scalar_lea.vmem %s391_s5, 16  ;;  %s6715_s30 = scalar_lea.vmem %s391_s5, 32 }
 0x22c   :  { %p6712_p1 = scmp.ne.s32.totalorder %s391_s5, %s6711_s26  ;;  %p6716_p2 = scmp.lt.s32.totalorder %s391_s5, %s391_s5 }
 0x22d   :  { %p6717_p3 = scmp.lt.s32.totalorder %s6715_s30, %s6711_s26 }
 0x22f   :  { %p6718_p4 = por %p6717_p3, %p6716_p2 }
 0x231   :  { %p6719_p5 = pnand %p6718_p4, %p6712_p1 }
 0x233   :  { %6722 = shalt.err (!%p6719_p5)
}
 0x234   :  { %393 = dma.hbm_to_vmem [thread:$0]  %s6985_s25, 16, %s391_s5, [#allocation52]  }
 0x235   :  { %6723 = dma.done.wait [#allocation14], 768  }
 0x236   :  { %6724 = vsyncadd [#allocation14], 4294966528 }
 0x237   :  { %6725 = dma.done.wait [#allocation16], 3088  }
 0x238   :  { %6726 = vsyncadd [#allocation16], 4294964208 }
 0x239   :  { %6727 = dma.done.wait [#allocation19], 3088  }
 0x23a   :  { %6728 = vsyncadd [#allocation19], 4294964208 }
 0x23b   :  { %6729 = dma.done.wait [#allocation22], 1040  }
 0x23c   :  { %6730 = vsyncadd [#allocation22], 4294966256 }
 0x23d   :  { %6731 = dma.done.wait [#allocation25], 3088  }
 0x23e   :  { %6732 = vsyncadd [#allocation25], 4294964208 }
 0x23f   :  { %6733 = dma.done.wait [#allocation28], 3088  }
 0x240   :  { %6734 = vsyncadd [#allocation28], 4294964208 }
 0x241   :  { %6735 = dma.done.wait [#allocation31], 1040  }
 0x242   :  { %6736 = vsyncadd [#allocation31], 4294966256 }
 0x243   :  { %6737 = dma.done.wait [#allocation34], 3088  }
 0x244   :  { %6738 = vsyncadd [#allocation34], 4294964208 }
 0x245   :  { %6739 = dma.done.wait [#allocation37], 32  }
 0x246   :  { %6740 = vsyncadd [#allocation37], 4294967264 }
 0x247   :  { %6741 = dma.done.wait [#allocation40], 1040  }
 0x248   :  { %6742 = vsyncadd [#allocation40], 4294966256 }
 0x249   :  { %6743 = dma.done.wait [#allocation43], 32  }
 0x24a   :  { %6744 = vsyncadd [#allocation43], 4294967264 }
 0x24b   :  { %6745 = dma.done.wait [#allocation46], 1040  }
 0x24c   :  { %6746 = vsyncadd [#allocation46], 4294966256 }
 0x24d   :  { %6747 = dma.done.wait [#allocation49], 32  }
 0x24e   :  { %6748 = vsyncadd [#allocation49], 4294967264 }
 0x24f   :  { %6749 = dma.done.wait [#allocation52], 1040  }
 0x250   :  { %6750 = vsyncadd [#allocation52], 4294966256  ;;  %v6815_v0 = vmov 0.0   ;;  %s7521_s25 = sld [smem:[#allocation68_spill]]  ;;  %v5764_v1 = vld [vmem:[#allocation13] sm:$0xff]   ;;  %v5765_v2 = vld [vmem:[#allocation13 + $0x8] sm:$0xff]  }
 0x251   :  { %635 = vst [vmem:[#allocation2 + $0x50] sm:$0xff] %v6815_v0  ;;  %625 = vst [vmem:[#allocation2] sm:$0xff] %v6815_v0  ;;  %5320 = vmatprep.subr.bf16.mxu0 %v5764_v1  ;;  %v5766_v3 = vld [vmem:[#allocation13 + $0x10] sm:$0xff]   ;;  %vm547_vm0 = vcmask 785408   ;;  %v5767_v7 = vld [vmem:[#allocation13 + $0x18] sm:$0xff]   ;;  %vm6816_vm1 = vmmov 0  }
 0x252   :  { %630 = vst [vmem:[#allocation2 + $0x28] sm:$0xff] %v6815_v0  ;;  %991 = vst [vmem:[#allocation3] sm:$0xff] %v6815_v0  ;;  %5321 = vmatpush3.bf16.msra.mxu0 %v5764_v1  ;;  %v5770_v8 = vld [vmem:[#allocation17 + $0x40] sm:$0xff]   ;;  %v5768_v9 = vld [vmem:[#allocation13 + $0x20] sm:$0xff]   ;;  %vm2217_vm2 = vcmask 1043456   ;;  %s7522_s27 = sld [smem:[#allocation76_spill]] }
 0x253   :  { %994 = vst [vmem:[#allocation3 + $0x18] sm:$0xff] %v6815_v0  ;;  %997 = vst [vmem:[#allocation3 + $0x30] sm:$0xff] %v6815_v0  ;;  %5322 = vmatprep.subr.bf16.mxu0 %v5765_v2  ;;  %v5771_v10 = vld [vmem:[#allocation17] sm:$0xff]   ;;  %4941 = vmatprep.subr.bf16.mxu1 %v5770_v8  ;;  %v5772_v11 = vld [vmem:[#allocation17 + $0x48] sm:$0xff]   ;;  %s7523_s15 = sld [smem:[#allocation79_spill]]  ;;  %vm2960_vm3 = vcmask 1041408  }
 0x254   :  { %1465 = vst [vmem:[#allocation4] sm:$0xff] %v6815_v0  ;;  %1468 = vst [vmem:[#allocation4 + $0x18] sm:$0xff] %v6815_v0  ;;  %4942 = vmatpush3.bf16.msra.mxu1 %v5771_v10  ;;  %v5773_v12 = vld [vmem:[#allocation17 + $0x8] sm:$0xff]   ;;  %v5774_v13 = vld [vmem:[#allocation17 + $0x50] sm:$0xff]   ;;  %s7524_s4 = sld [smem:[#allocation80_spill]]  ;;  %s7525_s28 = sld [smem:[#allocation83_spill]] }
 0x255   :  { %1782 = vst [vmem:[#allocation5] sm:$0xff] %v6815_v0  ;;  %1784 = vst [vmem:[#allocation5 + $0x10] sm:$0xff] %v6815_v0  ;;  %4943 = vmatprep.subr.bf16.mxu1 %v5772_v11  ;;  %v5769_v14 = vld [vmem:[#allocation13 + $0x28] sm:$0xff]   ;;  %v5775_v21 = vld [vmem:[#allocation17 + $0x80] sm:$0xff]   ;;  %vm3701_vm4 = vcmask 1040384   ;;  %s7526_s1 = sld [smem:[#allocation84_spill]] }
 0x256   :  { %1786 = vst [vmem:[#allocation5 + $0x20] sm:$0xff] %v6815_v0  ;;  %2205 = vst [vmem:[#allocation6] sm:$0xff] %v6815_v0  ;;  %v480_v4 = vld [vmem:[%s7521_s25] sm:$0xff]  ;;  %v481_v5 = vld [vmem:[%s7521_s25 + $0x8] sm:$0xff]  ;;  %5323 = vmatpush3.bf16.msra.mxu0 %v5765_v2  ;;  %vm4544_vm5 = vcmask 123904  }
 0x257   :  { %2207 = vst [vmem:[#allocation6 + $0x10] sm:$0xff] %v6815_v0  ;;  %2524 = vst [vmem:[#allocation7] sm:$0xff] %v6815_v0  ;;  %v488_v6 = vpack.c.bf16 %v481_v5, %v480_v4  ;;  %5324 = vmatprep.subr.bf16.mxu0 %v5766_v3  ;;  %v5776_v15 = vld [vmem:[#allocation17 + $0x10] sm:$0xff]   ;;  %v483_v17 = vld [vmem:[%s7521_s25 + $0x18] sm:$0xff] }
 0x258   :  { %2526 = vst [vmem:[#allocation7 + $0xc] sm:$0xf] %v6815_v0  ;;  %2528 = vst [vmem:[#allocation7 + $0x14] sm:$0xf] %v6815_v0  ;;  %4944 = vmatpush3.bf16.msra.mxu1 %v5773_v12  ;;  %v482_v16 = vld [vmem:[%s7521_s25 + $0x10] sm:$0xff]  ;;  %v484_v19 = vld [vmem:[%s7521_s25 + $0x20] sm:$0xff] }
 0x259   :  { %2948 = vst [vmem:[#allocation8] sm:$0xff] %v6815_v0  ;;  %2950 = vst [vmem:[#allocation8 + $0xc] sm:$0xf] %v6815_v0  ;;  %5332 = vmatprep.mubr.msk.bf16.mxu0 %vm547_vm0, %v488_v6  ;;  %4945 = vmatprep.subr.bf16.mxu1 %v5774_v13  ;;  %v5777_v18 = vld [vmem:[#allocation17 + $0x58] sm:$0xff]   ;;  %v485_v20 = vld [vmem:[%s7521_s25 + $0x28] sm:$0xff]  ;;  %v489_v23 = vpack.c.bf16 %v483_v17, %v482_v16 }
 0x25a   :  { %3267 = vst [vmem:[#allocation9] sm:$0xff] %v6815_v0  ;;  %3269 = vst [vmem:[#allocation9 + $0xa] sm:$0x3f] %v6815_v0  ;;  %5325 = vmatpush3.bf16.msra.mxu0 %v5766_v3  ;;  %v5779_v22 = vld [vmem:[#allocation17 + $0x18] sm:$0xff]   ;;  %v5778_v24 = vld [vmem:[#allocation17 + $0x88] sm:$0xff]   ;;  %v490_v25 = vpack.c.bf16 %v485_v20, %v484_v19 }
 0x25b   :  { %3271 = vst [vmem:[#allocation9 + $0x12] sm:$0x3f] %v6815_v0  ;;  %3691 = vst [vmem:[#allocation10] sm:$0xff] %v6815_v0  ;;  %5326 = vmatprep.subr.bf16.mxu0 %v5767_v7  ;;  %v486_v26 = vld [vmem:[%s7521_s25 + $0x30] sm:$0xff]  ;;  %v487_v27 = vld [vmem:[%s7521_s25 + $0x38] sm:$0xff] }
 0x25c   :  { %3693 = vst [vmem:[#allocation10 + $0xa] sm:$0x3f] %v6815_v0  ;;  %4004 = vst [vmem:[#allocation11] sm:$0xff] %v6815_v0  ;;  %4946 = vmatpush3.bf16.msra.mxu1 %v5776_v15  ;;  %v491_v28 = vpack.c.bf16 %v487_v27, %v486_v26  ;;  %v5780_v29 = vld [vmem:[#allocation17 + $0x60] sm:$0xff]   ;;  %v5781_v30 = vld [vmem:[#allocation17 + $0x90] sm:$0xff]  }
 0x25d   :  { %4006 = vst [vmem:[#allocation11 + $0x9] sm:$0x7f] %v6815_v0  ;;  %4008 = vst [vmem:[#allocation11 + $0x11] sm:$0x7f] %v6815_v0  ;;  %4947 = vmatprep.subr.bf16.mxu1 %v5777_v18  ;;  %v5782_v31 = vld [vmem:[#allocation17 + $0x20] sm:$0xff]   ;;  %v5783_v32 = vld [vmem:[#allocation17 + $0x68] sm:$0xff]  }
 0x25e   :  { %5327 = vmatpush3.bf16.msra.mxu0 %v5767_v7  ;;  %v5784_v33 = vld [vmem:[#allocation17 + $0x98] sm:$0xff]   ;;  %v5785_v34 = vld [vmem:[#allocation17 + $0x28] sm:$0xff]   ;;  %v5786_v35 = vld [vmem:[#allocation17 + $0x70] sm:$0xff]  }
 0x25f   :  { %5328 = vmatprep.subr.bf16.mxu0 %v5768_v9  ;;  %v5787_v36 = vld [vmem:[#allocation17 + $0xa0] sm:$0xff]   ;;  %v5788_v37 = vld [vmem:[#allocation17 + $0x30] sm:$0xff]   ;;  %v5789_v38 = vld [vmem:[#allocation17 + $0x78] sm:$0xff]  }
 0x260   :  { %4948 = vmatpush3.bf16.msra.mxu1 %v5779_v22  ;;  %v5790_v39 = vld [vmem:[#allocation17 + $0xa8] sm:$0xff]   ;;  %v5791_v40 = vld [vmem:[#allocation17 + $0x38] sm:$0xff]   ;;  %v5792_v41 = vld [vmem:[#allocation17 + $0xb0] sm:$0xff]  }
 0x261   :  { %4949 = vmatprep.subr.bf16.mxu1 %v5780_v29  ;;  %v5793_v42 = vld [vmem:[#allocation23] sm:$0xff]   ;;  %v5794_v43 = vld [vmem:[#allocation17 + $0xb8] sm:$0xff]   ;;  %v5795_v6 = vld [vmem:[#allocation23 + $0x8] sm:$0xff]  }
 0x262   :  { %5329 = vmatpush3.bf16.msra.mxu0 %v5768_v9  ;;  %v4599_v44 = vld [vmem:[#allocation15] ss:$0 sm:$0xff]  ;;  %v5796_v7 = vld [vmem:[#allocation23 + $0x10] sm:$0xff]   ;;  %v5798_v18 = vld [vmem:[#allocation23 + $0x20] sm:$0xff]  }
 0x263   :  { %5330 = vmatprep.subr.bf16.mxu0 %v5769_v14  ;;  %v5797_v17 = vld [vmem:[#allocation23 + $0x18] sm:$0xff]   ;;  %v5799_v19 = vld [vmem:[#allocation23 + $0x28] sm:$0xff]   ;;  %v5800_v20 = vld [vmem:[#allocation23 + $0x30] sm:$0xff]  }
 0x264   :  { %4950 = vmatpush3.bf16.msra.mxu1 %v5782_v31  ;;  %v5802_v22 = vld [vmem:[#allocation20 + $0x40] sm:$0xff]   ;;  %v5806_v26 = vld [vmem:[#allocation20 + $0x8] sm:$0xff]   ;;  %v5807_v27 = vld [vmem:[#allocation20 + $0x50] sm:$0xff]  }
 0x265   :  { %4951 = vmatprep.subr.bf16.mxu1 %v5783_v32  ;;  %v5809_v29 = vld [vmem:[#allocation20 + $0x10] sm:$0xff]   ;;  %v5812_v32 = vld [vmem:[#allocation20 + $0x18] sm:$0xff]  }
 0x266   :  { %5331 = vmatpush3.bf16.msra.mxu0 %v5769_v14  ;;  %v5811_v31 = vld [vmem:[#allocation20 + $0x90] sm:$0xff]  }
 0x267   :  { %5340 = vmatprep.subr.bf16.mxu0 %v5775_v21 }
 0x268   :  { %4952 = vmatpush3.bf16.msra.mxu1 %v5785_v34  ;;  %v5814_v34 = vld [vmem:[#allocation20 + $0x98] sm:$0xff]  }
 0x269   :  { %5333 = vmatmul.mubr.msk.bf16.vlgmr.msra.gmra.mrb[0].mxu0 %vm547_vm0, %v489_v23  ;;  %4953 = vmatprep.subr.bf16.mxu1 %v5786_v35  ;;  %v5803_v23 = vld [vmem:[#allocation20] sm:$0xff]  }
 0x26a   :  { %5336 = vmatprep.mubr.msk.bf16.mxu0 %vm547_vm0, %v490_v25  ;;  %5341 = vmatpush3.bf16.msra.mxu0 %v5775_v21  ;;  %v5801_v21 = vld [vmem:[#allocation23 + $0x38] sm:$0xff]  }
 0x26b   :  { %5342 = vmatprep.subr.bf16.mxu0 %v5778_v24  ;;  %v5805_v25 = vld [vmem:[#allocation20 + $0x80] sm:$0xff]  }
 0x26c   :  { %4954 = vmatpush3.bf16.msra.mxu1 %v5788_v37  ;;  %v5815_v35 = vld [vmem:[#allocation20 + $0x20] sm:$0xff]  }
 0x26d   :  { %4955 = vmatprep.subr.bf16.mxu1 %v5789_v38  ;;  %v5817_v37 = vld [vmem:[#allocation20 + $0xa0] sm:$0xff]   ;;  %v5818_v38 = vld [vmem:[#allocation20 + $0x28] sm:$0xff]  }
 0x26e   :  { %5343 = vmatpush3.bf16.msra.mxu0 %v5778_v24  ;;  %v5804_v24 = vld [vmem:[#allocation20 + $0x48] sm:$0xff]  }
 0x26f   :  { %5344 = vmatprep.subr.bf16.mxu0 %v5781_v30 }
 0x270   :  { %4956 = vmatpush3.bf16.msra.mxu1 %v5791_v40  ;;  %v5820_v40 = vld [vmem:[#allocation20 + $0xa8] sm:$0xff]  }
 0x271   :  { %5337 = vmatmul.mubr.msk.bf16.gmra.mrb[4].mxu0 %vm547_vm0, %v491_v28  ;;  %5360 = vmatprep.subr.bf16.mxu1 %v5793_v42  ;;  %v5808_v28 = vld [vmem:[#allocation20 + $0x88] sm:$0xff]  }
 0x272   :  { %5345 = vmatpush3.bf16.msra.mxu0 %v5781_v30  ;;  %v5810_v30 = vld [vmem:[#allocation20 + $0x58] sm:$0xff]  }
 0x273   :  { %5346 = vmatprep.subr.bf16.mxu0 %v5784_v33 }
 0x276   :  { %5347 = vmatpush3.bf16.msra.mxu0 %v5784_v33  ;;  %v5813_v33 = vld [vmem:[#allocation20 + $0x60] sm:$0xff]  }
 0x277   :  { %5348 = vmatprep.subr.bf16.mxu0 %v5787_v36 }
 0x27a   :  { %5349 = vmatpush3.bf16.msra.mxu0 %v5787_v36  ;;  %v5816_v36 = vld [vmem:[#allocation20 + $0x68] sm:$0xff]  }
 0x27b   :  { %5350 = vmatprep.subr.bf16.mxu0 %v5790_v39 }
 0x27e   :  { %5351 = vmatpush3.bf16.msra.mxu0 %v5790_v39  ;;  %v5819_v39 = vld [vmem:[#allocation20 + $0x70] sm:$0xff]  }
 0x27f   :  { %5352 = vmatprep.subr.bf16.mxu0 %v5792_v41 }
 0x282   :  { %5353 = vmatpush3.bf16.msra.mxu0 %v5792_v41  ;;  %v5821_v41 = vld [vmem:[#allocation20 + $0x30] sm:$0xff]  }
 0x283   :  { %5354 = vmatprep.subr.bf16.mxu0 %v5794_v43 }
 0x286   :  { %5355 = vmatpush3.bf16.msra.mxu0 %v5794_v43  ;;  %v5823_v43 = vld [vmem:[#allocation20 + $0xb0] sm:$0xff]  }
 0x287   :  { %4989 = vmatprep.subr.bf16.mxu0 %v5802_v22 }
 0x33c   :  { %v5334_v45 = vpop.f32.mrb[0].mxu0 }
 0x33d   :  { %v603_v46 = vadd.f32 %v5334_v45, %v4599_v44  ;;  %v594_v47 = vpop.f32.mrb[1].mxu0  ;;  %v5825_v45 = vld [vmem:[#allocation20 + $0xb8] sm:$0xff]  }
 0x33e   :  { %v595_v48 = vadd.f32 %v4599_v44, %v594_v47  ;;  %v5335_v49 = vpop.f32.mrb[2].mxu0 }
 0x33f   :  { %628 = vst [vmem:[#allocation2 + $0x18] sm:$0xff] %v603_v46  ;;  %v606_v50 = vadd.f32 %v5335_v49, %v4599_v44  ;;  %v597_v51 = vpop.f32.mrb[3].mxu0  ;;  %v7191_v46 = vld [vmem:[#allocation2 + $0x50] sm:$0xff] }
 0x340   :  { %626 = vst [vmem:[#allocation2 + $0x8] sm:$0xff] %v595_v48  ;;  %v598_v52 = vadd.f32 %v4599_v44, %v597_v51 }
 0x341   :  { %629 = vst [vmem:[#allocation2 + $0x20] sm:$0xff] %v606_v50 }
 0x342   :  { %627 = vst [vmem:[#allocation2 + $0x10] sm:$0xff] %v598_v52 }
 0x344   :  { %v5338_v53 = vpop.f32.mrb[4].mxu0 }
 0x345   :  { %v619_v54 = vadd.f32 %v5338_v53, %v4599_v44  ;;  %v610_v55 = vpop.f32.mrb[5].mxu0  ;;  %v4610_v53 = vld [vmem:[#allocation18] ss:$0 sm:$0xff] }
 0x346   :  { %v611_v56 = vadd.f32 %v4599_v44, %v610_v55  ;;  %v5339_v57 = vpop.f32.mrb[6].mxu0 }
 0x347   :  { %633 = vst [vmem:[#allocation2 + $0x40] sm:$0xff] %v619_v54  ;;  %v622_v58 = vadd.f32 %v5339_v57, %v4599_v44  ;;  %v613_v59 = vpop.f32.mrb[7].mxu0 }
 0x348   :  { %631 = vst [vmem:[#allocation2 + $0x30] sm:$0xff] %v611_v56  ;;  %v614_v60 = vadd.f32 %v4599_v44, %v613_v59  ;;  %v649_v61 = vld [vmem:[#allocation2 + $0x18] ss:$2 sm:$0xff]  ;;  %v659_v62 = vld [vmem:[#allocation2 + $0x19] ss:$2 sm:$0xff] }
 0x349   :  { %634 = vst [vmem:[#allocation2 + $0x48] sm:$0xff] %v622_v58  ;;  %v647_v63 = vld [vmem:[#allocation2 + $0x8] ss:$2 sm:$0xff]  ;;  %v657_v0 = vld [vmem:[#allocation2 + $0x9] ss:$2 sm:$0xff] }
 0x34a   :  { %v637_v1 = vld [vmem:[#allocation2 + $0x7] ss:$2 sm:$0xff]  ;;  %632 = vst [vmem:[#allocation2 + $0x38] sm:$0xff] %v614_v60  ;;  %v654_v2 = vpack.c.bf16 %v649_v61, %v647_v63  ;;  %v664_v3 = vpack.c.bf16 %v659_v62, %v657_v0  ;;  %v639_v4 = vld [vmem:[#allocation2 + $0x17] ss:$2 sm:$0xff] }
 0x34b   :  { %v644_v5 = vpack.c.bf16 %v639_v4, %v637_v1  ;;  %v5824_v44 = vld [vmem:[#allocation20 + $0x38] sm:$0xff]  }
 0x34c   :  { %897 = vmatprep.mubr.bf16.mxu1 %v654_v2  ;;  %5356 = vmatprep.mubr.bf16.mxu0 %v664_v3 }
 0x34d   :  { %898 = vmatmul.mubr.bf16.vlgmr.msra.gmra.mrb[0].mxu1 %v644_v5 }
 0x34e   :  { %5361 = vmatpush3.bf16.msra.mxu1 %v5793_v42  ;;  %v5822_v42 = vld [vmem:[#allocation20 + $0x78] sm:$0xff]  }
 0x34f   :  { %5362 = vmatprep.subr.bf16.mxu1 %v5795_v6 }
 0x350   :  { %v653_v8 = vld [vmem:[#allocation2 + $0x40] ss:$2 sm:$0xff]  ;;  %v663_v9 = vld [vmem:[#allocation2 + $0x41] ss:$2 sm:$0xff] }
 0x351   :  { %v651_v10 = vld [vmem:[#allocation2 + $0x30] ss:$2 sm:$0xff]  ;;  %v661_v11 = vld [vmem:[#allocation2 + $0x31] ss:$2 sm:$0xff] }
 0x352   :  { %v641_v12 = vld [vmem:[#allocation2 + $0x2f] ss:$2 sm:$0xff]  ;;  %5363 = vmatpush3.bf16.msra.mxu1 %v5795_v6  ;;  %v655_v13 = vpack.c.bf16 %v653_v8, %v651_v10  ;;  %v665_v14 = vpack.c.bf16 %v663_v9, %v661_v11  ;;  %v643_v15 = vld [vmem:[#allocation2 + $0x3f] ss:$2 sm:$0xff] }
 0x353   :  { %5364 = vmatprep.subr.bf16.mxu1 %v5796_v7  ;;  %v645_v16 = vpack.c.bf16 %v643_v15, %v641_v12 }
 0x354   :  { %905 = vmatprep.mubr.bf16.mxu1 %v655_v13  ;;  %5357 = vmatmul.mubr.bf16.vlgmr.msra.gmra.mrb[8].mxu0 %v665_v14 }
 0x355   :  { %906 = vmatmul.mubr.bf16.gmra.mrb[4].mxu1 %v645_v16  ;;  %4990 = vmatpush3.bf16.msra.mxu0 %v5803_v23 }
 0x356   :  { %5365 = vmatpush3.bf16.msra.mxu1 %v5796_v7  ;;  %5376 = vmatprep.mubr.bf16.mxu1 %v654_v2 }
 0x357   :  { %5366 = vmatprep.subr.bf16.mxu1 %v5797_v17  ;;  %4991 = vmatprep.subr.bf16.mxu0 %v5804_v24 }
 0x359   :  { %4992 = vmatpush3.bf16.msra.mxu0 %v5806_v26 }
 0x35a   :  { %5367 = vmatpush3.bf16.msra.mxu1 %v5797_v17  ;;  %4993 = vmatprep.subr.bf16.mxu0 %v5807_v27 }
 0x35b   :  { %5368 = vmatprep.subr.bf16.mxu1 %v5798_v18 }
 0x35d   :  { %4994 = vmatpush3.bf16.msra.mxu0 %v5809_v29 }
 0x35e   :  { %5369 = vmatpush3.bf16.msra.mxu1 %v5798_v18  ;;  %4995 = vmatprep.subr.bf16.mxu0 %v5810_v30 }
 0x35f   :  { %5370 = vmatprep.subr.bf16.mxu1 %v5799_v19 }
 0x361   :  { %4996 = vmatpush3.bf16.msra.mxu0 %v5812_v32 }
 0x362   :  { %5371 = vmatpush3.bf16.msra.mxu1 %v5799_v19  ;;  %4997 = vmatprep.subr.bf16.mxu0 %v5813_v33 }
 0x363   :  { %5372 = vmatprep.subr.bf16.mxu1 %v5800_v20 }
 0x365   :  { %4998 = vmatpush3.bf16.msra.mxu0 %v5815_v35 }
 0x366   :  { %5373 = vmatpush3.bf16.msra.mxu1 %v5800_v20  ;;  %4999 = vmatprep.subr.bf16.mxu0 %v5816_v36 }
 0x367   :  { %5374 = vmatprep.subr.bf16.mxu1 %v5801_v21 }
 0x369   :  { %5000 = vmatpush3.bf16.msra.mxu0 %v5818_v38 }
 0x36a   :  { %5375 = vmatpush3.bf16.msra.mxu1 %v5801_v21  ;;  %5001 = vmatprep.subr.bf16.mxu0 %v5819_v39 }
 0x36b   :  { %5380 = vmatprep.subr.bf16.mxu1 %v5805_v25 }
 0x36d   :  { %5377 = vmatmul.mubr.bf16.vlgmr.msra.gmra.mrb[8].mxu1 %v655_v13  ;;  %5002 = vmatpush3.bf16.msra.mxu0 %v5821_v41 }
 0x36e   :  { %5381 = vmatpush3.bf16.msra.mxu1 %v5805_v25  ;;  %5003 = vmatprep.subr.bf16.mxu0 %v5822_v42  ;;  %v5826_v42 = vld [vmem:[#allocation26 + $0x40] sm:$0xff]  }
 0x36f   :  { %5382 = vmatprep.subr.bf16.mxu1 %v5808_v28 }
 0x371   :  { %5004 = vmatpush3.bf16.msra.mxu0 %v5824_v44  ;;  %v5828_v44 = vld [vmem:[#allocation26 + $0x80] sm:$0xff]  }
 0x372   :  { %5383 = vmatpush3.bf16.msra.mxu1 %v5808_v28  ;;  %5027 = vmatprep.subr.bf16.mxu0 %v5826_v42 }
 0x373   :  { %5384 = vmatprep.subr.bf16.mxu1 %v5811_v31 }
 0x376   :  { %5385 = vmatpush3.bf16.msra.mxu1 %v5811_v31 }
 0x377   :  { %5386 = vmatprep.subr.bf16.mxu1 %v5814_v34 }
 0x37a   :  { %5387 = vmatpush3.bf16.msra.mxu1 %v5814_v34 }
 0x37b   :  { %5388 = vmatprep.subr.bf16.mxu1 %v5817_v37 }
 0x37e   :  { %5389 = vmatpush3.bf16.msra.mxu1 %v5817_v37 }
 0x37f   :  { %5390 = vmatprep.subr.bf16.mxu1 %v5820_v40 }
 0x382   :  { %5391 = vmatpush3.bf16.msra.mxu1 %v5820_v40 }
 0x383   :  { %5392 = vmatprep.subr.bf16.mxu1 %v5823_v43 }
 0x386   :  { %5393 = vmatpush3.bf16.msra.mxu1 %v5823_v43  ;;  %v5827_v43 = vld [vmem:[#allocation26] sm:$0xff]  }
 0x387   :  { %5394 = vmatprep.subr.bf16.mxu1 %v5825_v45 }
 0x38a   :  { %5395 = vmatpush3.bf16.msra.mxu1 %v5825_v45  ;;  %v5829_v45 = vld [vmem:[#allocation26 + $0x48] sm:$0xff]  }
 0x38b   :  { %5400 = vmatprep.subr.bf16.mxu1 %v7191_v46 }
 0x420   :  { %v4957_v47 = vpop.f32.mrb[0].mxu1 }
 0x421   :  { %v4958_v48 = vpop.f32.mrb[1].mxu1 }
 0x422   :  { %v4959_v49 = vadd.f32 %v4958_v48, %v4957_v47  ;;  %v4960_v50 = vpop.f32.mrb[2].mxu1  ;;  %v5830_v47 = vld [vmem:[#allocation26 + $0x8] sm:$0xff]  }
 0x423   :  { %v4961_v51 = vpop.f32.mrb[3].mxu1  ;;  %v5831_v48 = vld [vmem:[#allocation26 + $0x88] sm:$0xff]  }
 0x424   :  { %v4962_v52 = vadd.f32 %v4961_v51, %v4960_v50  ;;  %v900_v55 = vadd.f32 %v4959_v49, %v4610_v53  ;;  %v5832_v49 = vld [vmem:[#allocation26 + $0x50] sm:$0xff]  }
 0x425   :  { %v5833_v50 = vld [vmem:[#allocation26 + $0x10] sm:$0xff]  }
 0x426   :  { %v903_v61 = vadd.f32 %v4962_v52, %v4610_v53  ;;  %v5834_v51 = vld [vmem:[#allocation26 + $0x90] sm:$0xff]   ;;  %v5835_v52 = vld [vmem:[#allocation26 + $0x58] sm:$0xff]  }
 0x427   :  { %v5358_v54 = vpop.f32.mrb[8].mxu0 }
 0x428   :  { %v4963_v56 = vpop.f32.mrb[4].mxu1  ;;  %v948_v57 = vpop.f32.mrb[9].mxu0 }
 0x429   :  { %v949_v58 = vadd.f32 %v948_v57, %v900_v55  ;;  %v4964_v59 = vpop.f32.mrb[5].mxu1  ;;  %v5359_v60 = vpop.f32.mrb[10].mxu0  ;;  %v5838_v55 = vld [vmem:[#allocation26 + $0x60] sm:$0xff]  }
 0x42a   :  { %v4965_v62 = vadd.f32 %v4964_v59, %v4963_v56  ;;  %v4966_v63 = vpop.f32.mrb[6].mxu1  ;;  %v951_v0 = vpop.f32.mrb[11].mxu0  ;;  %v5839_v56 = vld [vmem:[#allocation26 + $0x20] sm:$0xff]   ;;  %v5842_v59 = vld [vmem:[#allocation26 + $0x28] sm:$0xff]  }
 0x42b   :  { %v4635_v1 = vmul.f32 -1.442695, %v949_v58  ;;  %v952_v2 = vadd.f32 %v951_v0, %v903_v61  ;;  %v4967_v3 = vpop.f32.mrb[7].mxu1  ;;  %v5840_v57 = vld [vmem:[#allocation26 + $0xa0] sm:$0xff]   ;;  %v5844_v61 = vld [vmem:[#allocation26 + $0x70] sm:$0xff]   ;;  %v5847_v0 = vld [vmem:[#allocation26 + $0x78] sm:$0xff]  }
 0x42c   :  { %v908_v4 = vadd.f32 %v4965_v62, %v4610_v53  ;;  %v4968_v5 = vadd.f32 %v4967_v3, %v4966_v63  ;;  %v5845_v62 = vld [vmem:[#allocation26 + $0x30] sm:$0xff]  }
 0x42d   :  { %6058 = vpow2.f32 %v4635_v1  ;;  %v4636_v6 = vmul.f32 -1.442695, %v952_v2  ;;  %v5846_v63 = vld [vmem:[#allocation26 + $0xb0] sm:$0xff]   ;;  %v5848_v1 = vld [vmem:[#allocation26 + $0x38] sm:$0xff]  }
 0x42e   :  { %v957_v7 = vadd.f32 %v5358_v54, %v908_v4  ;;  %v911_v8 = vadd.f32 %v4968_v5, %v4610_v53  ;;  %v5836_v53 = vld [vmem:[#allocation26 + $0x18] sm:$0xff]  }
 0x42f   :  { %6060 = vpow2.f32 %v4636_v6  ;;  %v5837_v54 = vld [vmem:[#allocation26 + $0x98] sm:$0xff]  }
 0x430   :  { %v4637_v9 = vmul.f32 -1.442695, %v957_v7  ;;  %v960_v10 = vadd.f32 %v5359_v60, %v911_v8  ;;  %v5843_v60 = vld [vmem:[#allocation26 + $0xa8] sm:$0xff]   ;;  %v4648_v4 = vld [vmem:[#allocation21] ss:$0 sm:$0xff] }
 0x432   :  { %6062 = vpow2.f32 %v4637_v9  ;;  %v4638_v11 = vmul.f32 -1.442695, %v960_v10  ;;  %v4639_v9 = vld [vmem:[#allocation24] ss:$0 sm:$0xff] }
 0x434   :  { %6064 = vpow2.f32 %v4638_v11 }
 0x437   :  { %v6059_v12 = vpop.eup %6058 }
 0x438   :  { %v975_v13 = vadd.f32 1.0, %v6059_v12 }
 0x439   :  { %v6061_v14 = vpop.eup %6060 }
 0x43a   :  { %6066 = vrcp.f32 %v975_v13  ;;  %v976_v15 = vadd.f32 1.0, %v6061_v14 }
 0x43c   :  { %v6063_v16 = vpop.eup %6062  ;;  %6068 = vrcp.f32 %v976_v15 }
 0x43d   :  { %v977_v17 = vadd.f32 1.0, %v6063_v16 }
 0x43e   :  { %v6065_v18 = vpop.eup %6064 }
 0x43f   :  { %6070 = vrcp.f32 %v977_v17  ;;  %v978_v19 = vadd.f32 1.0, %v6065_v18 }
 0x441   :  { %6072 = vrcp.f32 %v978_v19 }
 0x444   :  { %v6067_v20 = vpop.eup %6066 }
 0x445   :  { %v987_v21 = vmul.f32 %v6067_v20, %v949_v58  ;;  %v5841_v58 = vld [vmem:[#allocation26 + $0x68] sm:$0xff]  }
 0x446   :  { %v6069_v22 = vpop.eup %6068 }
 0x447   :  { %992 = vst [vmem:[#allocation3 + $0x8] sm:$0xff] %v987_v21  ;;  %v988_v23 = vmul.f32 %v6069_v22, %v952_v2  ;;  %v5849_v2 = vld [vmem:[#allocation26 + $0xb8] sm:$0xff]  }
 0x449   :  { %v6071_v24 = vpop.eup %6070  ;;  %993 = vst [vmem:[#allocation3 + $0x10] sm:$0xff] %v988_v23  ;;  %v1128_v25 = vpack.c.bf16 %v988_v23, %v987_v21 }
 0x44a   :  { %v989_v26 = vmul.f32 %v6071_v24, %v957_v7 }
 0x44b   :  { %v6073_v27 = vpop.eup %6072  ;;  %1367 = vmatprep.mubr.bf16.mxu0 %v1128_v25 }
 0x44c   :  { %995 = vst [vmem:[#allocation3 + $0x20] sm:$0xff] %v989_v26  ;;  %v990_v28 = vmul.f32 %v6073_v27, %v960_v10 }
 0x44e   :  { %996 = vst [vmem:[#allocation3 + $0x28] sm:$0xff] %v990_v28  ;;  %v1129_v29 = vpack.c.bf16 %v990_v28, %v989_v26  ;;  %v1118_v30 = vld [vmem:[#allocation3 + $0x7] sm:$0xff] }
 0x450   :  { %v1130_v31 = vld [vmem:[#allocation3 + $0x9] sm:$0xff]  ;;  %v1131_v32 = vld [vmem:[#allocation3 + $0x11] sm:$0xff] }
 0x451   :  { %v1119_v33 = vld [vmem:[#allocation3 + $0xf] sm:$0xff]  ;;  %v1134_v34 = vpack.c.bf16 %v1131_v32, %v1130_v31 }
 0x452   :  { %v1122_v35 = vpack.c.bf16 %v1119_v33, %v1118_v30 }
 0x453   :  { %5396 = vmatprep.mubr.bf16.mxu1 %v1134_v34  ;;  %v1120_v40 = vld [vmem:[#allocation3 + $0x1f] sm:$0xff] }
 0x454   :  { %1368 = vmatmul.mubr.bf16.vlgmr.msra.gmra.mrb[12].mxu0 %v1122_v35 }
 0x455   :  { %1375 = vmatprep.mubr.bf16.mxu0 %v1129_v29  ;;  %v1132_v36 = vld [vmem:[#allocation3 + $0x21] sm:$0xff]  ;;  %v1133_v37 = vld [vmem:[#allocation3 + $0x29] sm:$0xff]  ;;  %5028 = vmatpush3.bf16.msra.mxu0 %v5827_v43 }
 0x456   :  { %v1135_v38 = vpack.c.bf16 %v1133_v37, %v1132_v36  ;;  %v1121_v39 = vld [vmem:[#allocation3 + $0x27] sm:$0xff]  ;;  %5029 = vmatprep.subr.bf16.mxu0 %v5829_v45 }
 0x457   :  { %v1123_v41 = vpack.c.bf16 %v1121_v39, %v1120_v40 }
 0x458   :  { %5397 = vmatmul.mubr.bf16.vlgmr.msra.gmra.mrb[8].mxu1 %v1135_v38 }
 0x459   :  { %5401 = vmatpush3.bf16.msra.mxu1 %v5828_v44  ;;  %5030 = vmatpush3.bf16.msra.mxu0 %v5830_v47 }
 0x45a   :  { %5402 = vmatprep.subr.bf16.mxu1 %v7191_v46  ;;  %5031 = vmatprep.subr.bf16.mxu0 %v5832_v49 }
 0x45b   :  { %5416 = vmatprep.mubr.msk.bf16.mxu1 %vm6816_vm1, %v7191_v46 }
 0x45c   :  { %1376 = vmatmul.mubr.bf16.gmra.mrb[16].mxu0 %v1123_v41 }
 0x45d   :  { %5403 = vmatpush3.bf16.msra.mxu1 %v5831_v48  ;;  %5032 = vmatpush3.bf16.msra.mxu0 %v5833_v50 }
 0x45e   :  { %5404 = vmatprep.subr.bf16.mxu1 %v7191_v46  ;;  %5033 = vmatprep.subr.bf16.mxu0 %v5835_v52 }
 0x461   :  { %5405 = vmatpush3.bf16.msra.mxu1 %v5834_v51  ;;  %5034 = vmatpush3.bf16.msra.mxu0 %v5836_v53 }
 0x462   :  { %5406 = vmatprep.subr.bf16.mxu1 %v7191_v46  ;;  %5035 = vmatprep.subr.bf16.mxu0 %v5838_v55 }
 0x465   :  { %5407 = vmatpush3.bf16.msra.mxu1 %v5837_v54  ;;  %5036 = vmatpush3.bf16.msra.mxu0 %v5839_v56 }
 0x466   :  { %5408 = vmatprep.subr.bf16.mxu1 %v7191_v46  ;;  %5037 = vmatprep.subr.bf16.mxu0 %v5841_v58 }
 0x469   :  { %5409 = vmatpush3.bf16.msra.mxu1 %v5840_v57  ;;  %5038 = vmatpush3.bf16.msra.mxu0 %v5842_v59 }
 0x46a   :  { %5410 = vmatprep.subr.bf16.mxu1 %v7191_v46  ;;  %5039 = vmatprep.subr.bf16.mxu0 %v5844_v61 }
 0x46d   :  { %5411 = vmatpush3.bf16.msra.mxu1 %v5843_v60  ;;  %5040 = vmatpush3.bf16.msra.mxu0 %v5845_v62 }
 0x46e   :  { %5412 = vmatprep.subr.bf16.mxu1 %v7191_v46  ;;  %5041 = vmatprep.subr.bf16.mxu0 %v5847_v0  ;;  %v5851_v0 = vld [vmem:[#allocation32 + $0x8] sm:$0xff]  }
 0x471   :  { %5413 = vmatpush3.bf16.msra.mxu1 %v5846_v63  ;;  %5042 = vmatpush3.bf16.msra.mxu0 %v5848_v1  ;;  %v5850_v63 = vld [vmem:[#allocation32] sm:$0xff]   ;;  %v5852_v1 = vld [vmem:[#allocation32 + $0x10] sm:$0xff]  }
 0x472   :  { %5414 = vmatprep.subr.bf16.mxu1 %v7191_v46  ;;  %5420 = vmatprep.subr.bf16.mxu0 %v7191_v46 }
 0x475   :  { %5415 = vmatpush3.bf16.msra.mxu1 %v5849_v2  ;;  %v5853_v2 = vld [vmem:[#allocation32 + $0x18] sm:$0xff]  }
 0x527   :  { %v5005_v3 = vpop.f32.mrb[12].mxu0 }
 0x528   :  { %v5006_v5 = vpop.f32.mrb[13].mxu0 }
 0x529   :  { %v5007_v6 = vadd.f32 %v5006_v5, %v5005_v3  ;;  %v5008_v7 = vpop.f32.mrb[14].mxu0  ;;  %v5854_v3 = vld [vmem:[#allocation32 + $0x20] sm:$0xff]   ;;  %v5856_v5 = vld [vmem:[#allocation32 + $0x30] sm:$0xff]  }
 0x52a   :  { %v5009_v8 = vpop.f32.mrb[15].mxu0 }
 0x52b   :  { %v1370_v10 = vadd.f32 %v5007_v6, %v4648_v4  ;;  %v5010_v11 = vadd.f32 %v5009_v8, %v5008_v7  ;;  %v5398_v12 = vpop.f32.mrb[8].mxu1  ;;  %v5857_v6 = vld [vmem:[#allocation32 + $0x38] sm:$0xff]  }
 0x52c   :  { %v1418_v14 = vpop.f32.mrb[9].mxu1  ;;  %v5858_v7 = vld [vmem:[#allocation29 + $0x40] sm:$0xff]  }
 0x52d   :  { %v1373_v13 = vadd.f32 %v5010_v11, %v4648_v4  ;;  %v5662_v15 = vadd.f32 %v4639_v9, %v1370_v10  ;;  %v5399_v16 = vpop.f32.mrb[10].mxu1  ;;  %v5859_v8 = vld [vmem:[#allocation29 + $0x80] sm:$0xff]   ;;  %5067 = vmatprep.subr.bf16.mxu1 %v5858_v7  ;;  %v5861_v10 = vld [vmem:[#allocation29 + $0x48] sm:$0xff]   ;;  %v5889_v7 = vld [vmem:[#allocation35 + $0x10] sm:$0xff]  }
 0x52e   :  { %v1421_v18 = vpop.f32.mrb[11].mxu1  ;;  %v5862_v11 = vld [vmem:[#allocation29 + $0x88] sm:$0xff]  }
 0x52f   :  { %v5663_v17 = vadd.f32 %v5662_v15, %v1418_v14  ;;  %v5666_v19 = vadd.f32 %v4639_v9, %v1373_v13  ;;  %v5011_v20 = vpop.f32.mrb[16].mxu0  ;;  %v5864_v13 = vld [vmem:[#allocation29 + $0x50] sm:$0xff]  }
 0x530   :  { %v5012_v21 = vpop.f32.mrb[17].mxu0  ;;  %v5865_v14 = vld [vmem:[#allocation29 + $0x90] sm:$0xff]  }
 0x531   :  { %v4673_v22 = vmul.f32 -1.442695, %v5663_v17  ;;  %v5667_v23 = vadd.f32 %v5666_v19, %v1421_v18  ;;  %v5013_v24 = vadd.f32 %v5012_v21, %v5011_v20  ;;  %v5014_v25 = vpop.f32.mrb[18].mxu0  ;;  %v5866_v15 = vld [vmem:[#allocation29 + $0x10] sm:$0xff]   ;;  %v5869_v18 = vld [vmem:[#allocation29 + $0x18] sm:$0xff]   ;;  %v5870_v19 = vld [vmem:[#allocation29 + $0x60] sm:$0xff]  }
 0x532   :  { %v5015_v26 = vpop.f32.mrb[19].mxu0  ;;  %v5871_v20 = vld [vmem:[#allocation29 + $0xa0] sm:$0xff]  }
 0x533   :  { %6074 = vpow2.f32 %v4673_v22  ;;  %v4674_v27 = vmul.f32 -1.442695, %v5667_v23  ;;  %v1378_v28 = vadd.f32 %v5013_v24, %v4648_v4  ;;  %v5016_v29 = vadd.f32 %v5015_v26, %v5014_v25  ;;  %v5872_v21 = vld [vmem:[#allocation29 + $0x20] sm:$0xff]   ;;  %v5873_v22 = vld [vmem:[#allocation29 + $0x68] sm:$0xff]   ;;  %v5876_v25 = vld [vmem:[#allocation29 + $0x70] sm:$0xff]  }
 0x534   :  { %v5875_v24 = vld [vmem:[#allocation29 + $0x28] sm:$0xff]   ;;  %v5877_v26 = vld [vmem:[#allocation29 + $0xb0] sm:$0xff]  }
 0x535   :  { %6076 = vpow2.f32 %v4674_v27  ;;  %v5660_v30 = vadd.f32 %v4639_v9, %v1378_v28  ;;  %v1381_v31 = vadd.f32 %v5016_v29, %v4648_v4  ;;  %v5855_v4 = vld [vmem:[#allocation32 + $0x28] sm:$0xff]   ;;  %v5879_v28 = vld [vmem:[#allocation29 + $0x78] sm:$0xff]  }
 0x536   :  { %v5878_v27 = vld [vmem:[#allocation29 + $0x30] sm:$0xff]   ;;  %v5880_v29 = vld [vmem:[#allocation29 + $0xb8] sm:$0xff]  }
 0x537   :  { %v5661_v32 = vadd.f32 %v5660_v30, %v5398_v12  ;;  %v5664_v33 = vadd.f32 %v4639_v9, %v1381_v31  ;;  %v5860_v9 = vld [vmem:[#allocation29] sm:$0xff]   ;;  %v5863_v12 = vld [vmem:[#allocation29 + $0x8] sm:$0xff]   ;;  %v5881_v30 = vld [vmem:[#allocation29 + $0x38] sm:$0xff]  }
 0x539   :  { %v4675_v34 = vmul.f32 -1.442695, %v5661_v32  ;;  %v5665_v35 = vadd.f32 %v5664_v33, %v5399_v16  ;;  %v5867_v16 = vld [vmem:[#allocation29 + $0x58] sm:$0xff]  }
 0x53b   :  { %6078 = vpow2.f32 %v4675_v34  ;;  %v4676_v36 = vmul.f32 -1.442695, %v5665_v35  ;;  %v4677_v34 = vld [vmem:[#allocation27] ss:$0 sm:$0xff] }
 0x53d   :  { %v6075_v37 = vpop.eup %6074  ;;  %6080 = vpow2.f32 %v4676_v36 }
 0x53e   :  { %v1449_v38 = vadd.f32 1.0, %v6075_v37 }
 0x53f   :  { %v6077_v39 = vpop.eup %6076 }
 0x540   :  { %6082 = vrcp.f32 %v1449_v38  ;;  %v1450_v40 = vadd.f32 1.0, %v6077_v39 }
 0x542   :  { %6084 = vrcp.f32 %v1450_v40 }
 0x545   :  { %v6079_v41 = vpop.eup %6078 }
 0x546   :  { %v1451_v42 = vadd.f32 1.0, %v6079_v41 }
 0x547   :  { %v6081_v43 = vpop.eup %6080 }
 0x548   :  { %6086 = vrcp.f32 %v1451_v42  ;;  %v1452_v44 = vadd.f32 1.0, %v6081_v43 }
 0x54a   :  { %v6083_v45 = vpop.eup %6082  ;;  %6088 = vrcp.f32 %v1452_v44 }
 0x54b   :  { %v1461_v47 = vmul.f32 %v6083_v45, %v5663_v17  ;;  %v5868_v17 = vld [vmem:[#allocation29 + $0x98] sm:$0xff]  }
 0x54c   :  { %v6085_v48 = vpop.eup %6084 }
 0x54d   :  { %1466 = vst [vmem:[#allocation4 + $0x8] sm:$0xff] %v1461_v47  ;;  %v1462_v49 = vmul.f32 %v6085_v48, %v5667_v23  ;;  %v5874_v23 = vld [vmem:[#allocation29 + $0xa8] sm:$0xff]  }
 0x54f   :  { %1467 = vst [vmem:[#allocation4 + $0x10] sm:$0xff] %v1462_v49 }
 0x552   :  { %v6087_v50 = vpop.eup %6086 }
 0x553   :  { %v1463_v51 = vmul.f32 %v6087_v50, %v5661_v32 }
 0x554   :  { %v6089_v52 = vpop.eup %6088 }
 0x555   :  { %1469 = vst [vmem:[#allocation4 + $0x20] sm:$0xff] %v1463_v51  ;;  %v1464_v53 = vmul.f32 %v6089_v52, %v5665_v35 }
 0x556   :  { %v1478_v54 = vld [vmem:[#allocation4 + $0x8] ss:$2 sm:$0xff]  ;;  %v1483_v55 = vld [vmem:[#allocation4 + $0x9] ss:$2 sm:$0xff] }
 0x557   :  { %1470 = vst [vmem:[#allocation4 + $0x28] sm:$0xff] %v1464_v53  ;;  %v1473_v56 = vld [vmem:[#allocation4 + $0x7] ss:$2 sm:$0xff] }
 0x55e   :  { %v1480_v57 = vld [vmem:[#allocation4 + $0x20] ss:$2 sm:$0xff]  ;;  %v1485_v58 = vld [vmem:[#allocation4 + $0x21] ss:$2 sm:$0xff] }
 0x55f   :  { %v1475_v59 = vld [vmem:[#allocation4 + $0x1f] ss:$2 sm:$0xff]  ;;  %v1481_v60 = vpack.c.bf16 %v1480_v57, %v1478_v54  ;;  %v1486_v61 = vpack.c.bf16 %v1485_v58, %v1483_v55 }
 0x560   :  { %v1476_v62 = vpack.c.bf16 %v1475_v59, %v1473_v56 }
 0x561   :  { %1718 = vmatprep.mubr.bf16.mxu0 %v1481_v60  ;;  %5417 = vmatmul.mubr.bf16.vlgmr.msra.gmra.mrb[12].mxu1 %v1486_v61 }
 0x562   :  { %1719 = vmatmul.mubr.bf16.vlgmr.msra.gmra.mrb[20].mxu0 %v1476_v62  ;;  %5068 = vmatpush3.bf16.msra.mxu1 %v5860_v9  ;;  %v5891_v9 = vld [vmem:[#allocation35 + $0x58] sm:$0xff]  }
 0x563   :  { %5421 = vmatpush3.bf16.msra.mxu0 %v5850_v63  ;;  %5436 = vmatprep.mubr.msk.bf16.mxu0 %vm6816_vm1, %v7191_v46 }
 0x564   :  { %5422 = vmatprep.subr.bf16.mxu0 %v7191_v46  ;;  %5069 = vmatprep.subr.bf16.mxu1 %v5861_v10  ;;  %v5892_v10 = vld [vmem:[#allocation35 + $0x18] sm:$0xff]  }
 0x566   :  { %5070 = vmatpush3.bf16.msra.mxu1 %v5863_v12  ;;  %v5894_v12 = vld [vmem:[#allocation35 + $0x60] sm:$0xff]  }
 0x567   :  { %5423 = vmatpush3.bf16.msra.mxu0 %v5851_v0  ;;  %5071 = vmatprep.subr.bf16.mxu1 %v5864_v13  ;;  %v5882_v0 = vld [vmem:[#allocation35 + $0x40] sm:$0xff]  }
 0x568   :  { %5424 = vmatprep.subr.bf16.mxu0 %v7191_v46  ;;  %v5895_v13 = vld [vmem:[#allocation35 + $0x20] sm:$0xff]  }
 0x56a   :  { %5072 = vmatpush3.bf16.msra.mxu1 %v5866_v15  ;;  %v5897_v15 = vld [vmem:[#allocation35 + $0x68] sm:$0xff]  }
 0x56b   :  { %5425 = vmatpush3.bf16.msra.mxu0 %v5852_v1  ;;  %5073 = vmatprep.subr.bf16.mxu1 %v5867_v16  ;;  %v5883_v1 = vld [vmem:[#allocation35] sm:$0xff]   ;;  %v5898_v16 = vld [vmem:[#allocation35 + $0x28] sm:$0xff]  }
 0x56c   :  { %5426 = vmatprep.subr.bf16.mxu0 %v7191_v46 }
 0x56e   :  { %5074 = vmatpush3.bf16.msra.mxu1 %v5869_v18  ;;  %v5900_v18 = vld [vmem:[#allocation35 + $0x70] sm:$0xff]  }
 0x56f   :  { %5427 = vmatpush3.bf16.msra.mxu0 %v5853_v2  ;;  %5075 = vmatprep.subr.bf16.mxu1 %v5870_v19  ;;  %v5884_v2 = vld [vmem:[#allocation35 + $0x80] sm:$0xff]   ;;  %v5901_v19 = vld [vmem:[#allocation35 + $0x30] sm:$0xff]  }
 0x570   :  { %5428 = vmatprep.subr.bf16.mxu0 %v7191_v46 }
 0x572   :  { %5076 = vmatpush3.bf16.msra.mxu1 %v5872_v21  ;;  %v5903_v21 = vld [vmem:[#allocation35 + $0x78] sm:$0xff]  }
 0x573   :  { %5429 = vmatpush3.bf16.msra.mxu0 %v5854_v3  ;;  %5077 = vmatprep.subr.bf16.mxu1 %v5873_v22  ;;  %v5885_v3 = vld [vmem:[#allocation35 + $0x48] sm:$0xff]   ;;  %v5904_v22 = vld [vmem:[#allocation35 + $0x38] sm:$0xff]  }
 0x574   :  { %5430 = vmatprep.subr.bf16.mxu0 %v7191_v46 }
 0x576   :  { %5078 = vmatpush3.bf16.msra.mxu1 %v5875_v24 }
 0x577   :  { %5431 = vmatpush3.bf16.msra.mxu0 %v5855_v4  ;;  %5079 = vmatprep.subr.bf16.mxu1 %v5876_v25  ;;  %v5886_v4 = vld [vmem:[#allocation35 + $0x8] sm:$0xff]  }
 0x578   :  { %5432 = vmatprep.subr.bf16.mxu0 %v7191_v46 }
 0x57a   :  { %5080 = vmatpush3.bf16.msra.mxu1 %v5878_v27  ;;  %v4713_v27 = vld [vmem:[#allocation30] ss:$0 sm:$0xff] }
 0x57b   :  { %5433 = vmatpush3.bf16.msra.mxu0 %v5856_v5  ;;  %5081 = vmatprep.subr.bf16.mxu1 %v5879_v28  ;;  %v5887_v5 = vld [vmem:[#allocation35 + $0x88] sm:$0xff]  }
 0x57c   :  { %5434 = vmatprep.subr.bf16.mxu0 %v7191_v46 }
 0x57e   :  { %5082 = vmatpush3.bf16.msra.mxu1 %v5881_v30 }
 0x57f   :  { %5435 = vmatpush3.bf16.msra.mxu0 %v5857_v6  ;;  %5098 = vmatprep.subr.bf16.mxu1 %v5882_v0  ;;  %v5888_v6 = vld [vmem:[#allocation35 + $0x50] sm:$0xff]  }
 0x580   :  { %5440 = vmatprep.subr.bf16.mxu0 %v7191_v46 }
 0x582   :  { %5437 = vmatmul.mubr.bf16.vlgmr.msra.gmra.mrb[24].mxu0 %v1481_v60 }
 0x583   :  { %5456 = vmatprep.mubr.msk.bf16.mxu0 %vm6816_vm1, %v7191_v46  ;;  %5441 = vmatpush3.bf16.msra.mxu0 %v5859_v8  ;;  %v5890_v8 = vld [vmem:[#allocation35 + $0x90] sm:$0xff]  }
 0x584   :  { %5442 = vmatprep.subr.bf16.mxu0 %v7191_v46 }
 0x587   :  { %5443 = vmatpush3.bf16.msra.mxu0 %v5862_v11  ;;  %v5893_v11 = vld [vmem:[#allocation35 + $0x98] sm:$0xff]  }
 0x588   :  { %5444 = vmatprep.subr.bf16.mxu0 %v7191_v46 }
 0x58b   :  { %5445 = vmatpush3.bf16.msra.mxu0 %v5865_v14  ;;  %v5896_v14 = vld [vmem:[#allocation35 + $0xa0] sm:$0xff]  }
 0x58c   :  { %5446 = vmatprep.subr.bf16.mxu0 %v7191_v46 }
 0x58f   :  { %5447 = vmatpush3.bf16.msra.mxu0 %v5868_v17  ;;  %v5899_v17 = vld [vmem:[#allocation35 + $0xa8] sm:$0xff]  }
 0x590   :  { %5448 = vmatprep.subr.bf16.mxu0 %v7191_v46 }
 0x593   :  { %5449 = vmatpush3.bf16.msra.mxu0 %v5871_v20  ;;  %v5902_v20 = vld [vmem:[#allocation35 + $0xb0] sm:$0xff]  }
 0x594   :  { %5450 = vmatprep.subr.bf16.mxu0 %v7191_v46 }
 0x597   :  { %5451 = vmatpush3.bf16.msra.mxu0 %v5874_v23  ;;  %v5905_v23 = vld [vmem:[#allocation35 + $0xb8] sm:$0xff]  }
 0x598   :  { %5452 = vmatprep.subr.bf16.mxu0 %v7191_v46 }
 0x59b   :  { %5453 = vmatpush3.bf16.msra.mxu0 %v5877_v26 }
 0x59c   :  { %5454 = vmatprep.subr.bf16.mxu0 %v7191_v46 }
 0x59f   :  { %5455 = vmatpush3.bf16.msra.mxu0 %v5880_v29 }
 0x5a0   :  { %5460 = vmatprep.subr.bf16.mxu0 %v7191_v46 }
 0x634   :  { %v1761_v31 = vpop.f32.mrb[12].mxu1 }
 0x635   :  { %v5043_v32 = vpop.f32.mrb[20].mxu0  ;;  %v5418_v33 = vpop.f32.mrb[13].mxu1 }
 0x636   :  { %v5044_v35 = vpop.f32.mrb[21].mxu0  ;;  %v1764_v36 = vpop.f32.mrb[14].mxu1 }
 0x637   :  { %v5045_v37 = vadd.f32 %v5044_v35, %v5043_v32  ;;  %v5046_v38 = vpop.f32.mrb[22].mxu0  ;;  %v5419_v39 = vpop.f32.mrb[15].mxu1  ;;  %v4704_v32 = vld [vmem:[#allocation33] ss:$0 sm:$0xff] }
 0x638   :  { %v5047_v40 = vpop.f32.mrb[23].mxu0 }
 0x639   :  { %v1721_v41 = vadd.f32 %v5045_v37, %v4677_v34  ;;  %v5048_v42 = vadd.f32 %v5047_v40, %v5046_v38 }
 0x63b   :  { %v1762_v43 = vadd.f32 %v1761_v31, %v1721_v41  ;;  %v1724_v44 = vadd.f32 %v5048_v42, %v4677_v34 }
 0x63d   :  { %v4702_v45 = vmul.f32 -1.442695, %v1762_v43  ;;  %v1765_v47 = vadd.f32 %v1764_v36, %v1724_v44 }
 0x63f   :  { %6090 = vpow2.f32 %v4702_v45  ;;  %v4703_v48 = vmul.f32 -1.442695, %v1765_v47 }
 0x641   :  { %6092 = vpow2.f32 %v4703_v48 }
 0x649   :  { %v6091_v49 = vpop.eup %6090 }
 0x64a   :  { %v1774_v50 = vadd.f32 1.0, %v6091_v49 }
 0x64b   :  { %v6093_v51 = vpop.eup %6092 }
 0x64c   :  { %6094 = vrcp.f32 %v1774_v50  ;;  %v1775_v52 = vadd.f32 1.0, %v6093_v51 }
 0x64e   :  { %6096 = vrcp.f32 %v1775_v52 }
 0x656   :  { %v6095_v53 = vpop.eup %6094 }
 0x657   :  { %v1780_v54 = vmul.f32 %v6095_v53, %v1762_v43 }
 0x658   :  { %v6097_v55 = vpop.eup %6096 }
 0x659   :  { %1783 = vst [vmem:[#allocation5 + $0x8] sm:$0xff] %v1780_v54  ;;  %v1781_v56 = vmul.f32 %v6097_v55, %v1765_v47 }
 0x65b   :  { %1785 = vst [vmem:[#allocation5 + $0x18] sm:$0xff] %v1781_v56  ;;  %v1904_v57 = vpack.c.bf16 %v1781_v56, %v1780_v54 }
 0x65d   :  { %2139 = vmatprep.mubr.bf16.mxu1 %v1904_v57 }
 0x660   :  { %v1905_v58 = vld [vmem:[#allocation5 + $0x9] sm:$0xff] }
 0x661   :  { %v1899_v60 = vld [vmem:[#allocation5 + $0x7] sm:$0xff] }
 0x662   :  { %v1906_v59 = vld [vmem:[#allocation5 + $0x19] sm:$0xff] }
 0x663   :  { %v1900_v61 = vld [vmem:[#allocation5 + $0x17] sm:$0xff]  ;;  %v1907_v62 = vpack.c.bf16 %v1906_v59, %v1905_v58 }
 0x664   :  { %v1901_v63 = vpack.c.bf16 %v1900_v61, %v1899_v60 }
 0x665   :  { %5457 = vmatmul.mubr.bf16.vlgmr.msra.gmra.mrb[24].mxu0 %v1907_v62 }
 0x666   :  { %2140 = vmatmul.mubr.bf16.vlgmr.msra.gmra.mrb[16].mxu1 %v1901_v63  ;;  %5476 = vmatprep.mubr.msk.bf16.mxu0 %vm6816_vm1, %v7191_v46 }
 0x667   :  { %5099 = vmatpush3.bf16.msra.mxu1 %v5883_v1  ;;  %5461 = vmatpush3.bf16.msra.mxu0 %v5884_v2 }
 0x668   :  { %5462 = vmatprep.subr.bf16.mxu0 %v7191_v46  ;;  %5100 = vmatprep.subr.bf16.mxu1 %v5885_v3  ;;  %v5906_v3 = vld [vmem:[#allocation39] sm:$0xff]  }
 0x66b   :  { %5101 = vmatpush3.bf16.msra.mxu1 %v5886_v4  ;;  %5463 = vmatpush3.bf16.msra.mxu0 %v5887_v5  ;;  %v5907_v5 = vld [vmem:[#allocation39 + $0x8] sm:$0xff]  }
 0x66c   :  { %5464 = vmatprep.subr.bf16.mxu0 %v7191_v46  ;;  %5102 = vmatprep.subr.bf16.mxu1 %v5888_v6  ;;  %v5908_v6 = vld [vmem:[#allocation39 + $0x10] sm:$0xff]  }
 0x66f   :  { %5103 = vmatpush3.bf16.msra.mxu1 %v5889_v7  ;;  %5465 = vmatpush3.bf16.msra.mxu0 %v5890_v8  ;;  %v5909_v7 = vld [vmem:[#allocation39 + $0x18] sm:$0xff]   ;;  %v5910_v8 = vld [vmem:[#allocation39 + $0x20] sm:$0xff]  }
 0x670   :  { %5466 = vmatprep.subr.bf16.mxu0 %v7191_v46  ;;  %5104 = vmatprep.subr.bf16.mxu1 %v5891_v9  ;;  %v5911_v9 = vld [vmem:[#allocation39 + $0x28] sm:$0xff]  }
 0x673   :  { %5105 = vmatpush3.bf16.msra.mxu1 %v5892_v10  ;;  %5467 = vmatpush3.bf16.msra.mxu0 %v5893_v11  ;;  %v5912_v10 = vld [vmem:[#allocation39 + $0x30] sm:$0xff]   ;;  %v5913_v11 = vld [vmem:[#allocation39 + $0x38] sm:$0xff]  }
 0x674   :  { %5468 = vmatprep.subr.bf16.mxu0 %v7191_v46  ;;  %5106 = vmatprep.subr.bf16.mxu1 %v5894_v12  ;;  %v5914_v12 = vld [vmem:[%s7522_s27 + $0x40] sm:$0xff]  }
 0x677   :  { %5107 = vmatpush3.bf16.msra.mxu1 %v5895_v13  ;;  %5469 = vmatpush3.bf16.msra.mxu0 %v5896_v14  ;;  %v5915_v13 = vld [vmem:[%s7522_s27 + $0x80] sm:$0xff]  }
 0x678   :  { %5470 = vmatprep.subr.bf16.mxu0 %v7191_v46  ;;  %5108 = vmatprep.subr.bf16.mxu1 %v5897_v15  ;;  %v5916_v14 = vld [vmem:[%s7522_s27] sm:$0xff]   ;;  %v5917_v15 = vld [vmem:[%s7522_s27 + $0x48] sm:$0xff]  }
 0x67b   :  { %5109 = vmatpush3.bf16.msra.mxu1 %v5898_v16  ;;  %5471 = vmatpush3.bf16.msra.mxu0 %v5899_v17  ;;  %v5918_v16 = vld [vmem:[%s7522_s27 + $0x88] sm:$0xff]  }
 0x67c   :  { %5110 = vmatprep.subr.bf16.mxu1 %v5900_v18  ;;  %5472 = vmatprep.subr.bf16.mxu0 %v7191_v46  ;;  %v5919_v17 = vld [vmem:[%s7522_s27 + $0x8] sm:$0xff]   ;;  %v5920_v18 = vld [vmem:[%s7522_s27 + $0x50] sm:$0xff]  }
 0x67f   :  { %5111 = vmatpush3.bf16.msra.mxu1 %v5901_v19  ;;  %5473 = vmatpush3.bf16.msra.mxu0 %v5902_v20  ;;  %v5921_v19 = vld [vmem:[%s7522_s27 + $0x90] sm:$0xff]  }
 0x680   :  { %5112 = vmatprep.subr.bf16.mxu1 %v5903_v21  ;;  %5474 = vmatprep.subr.bf16.mxu0 %v7191_v46  ;;  %v5922_v20 = vld [vmem:[%s7522_s27 + $0x10] sm:$0xff]   ;;  %v5923_v21 = vld [vmem:[%s7522_s27 + $0x58] sm:$0xff]  }
 0x683   :  { %5113 = vmatpush3.bf16.msra.mxu1 %v5904_v22  ;;  %5475 = vmatpush3.bf16.msra.mxu0 %v5905_v23  ;;  %v5924_v22 = vld [vmem:[%s7522_s27 + $0x98] sm:$0xff]  }
 0x684   :  { %5480 = vmatprep.subr.bf16.mxu1 %v7191_v46  ;;  %5138 = vmatprep.subr.bf16.mxu0 %v5914_v12  ;;  %v5925_v23 = vld [vmem:[%s7522_s27 + $0x18] sm:$0xff]   ;;  %v5945_v12 = vld [vmem:[%s7523_s15 + $0x10] sm:$0xff]  }
 0x738   :  { %v2182_v24 = vpop.f32.mrb[24].mxu0 }
 0x739   :  { %v5083_v25 = vpop.f32.mrb[16].mxu1  ;;  %v5458_v26 = vpop.f32.mrb[25].mxu0 }
 0x73a   :  { %v5084_v28 = vpop.f32.mrb[17].mxu1  ;;  %v2185_v30 = vpop.f32.mrb[26].mxu0  ;;  %v5928_v26 = vld [vmem:[%s7522_s27 + $0x20] sm:$0xff]  }
 0x73b   :  { %v5085_v29 = vadd.f32 %v5084_v28, %v5083_v25  ;;  %v5086_v31 = vpop.f32.mrb[18].mxu1  ;;  %v5459_v33 = vpop.f32.mrb[27].mxu0  ;;  %v5927_v25 = vld [vmem:[%s7522_s27 + $0xa0] sm:$0xff]   ;;  %v5930_v28 = vld [vmem:[%s7522_s27 + $0xa8] sm:$0xff]  }
 0x73c   :  { %v5087_v34 = vpop.f32.mrb[19].mxu1  ;;  %v5934_v33 = vld [vmem:[%s7522_s27 + $0x30] sm:$0xff]  }
 0x73d   :  { %v2142_v35 = vadd.f32 %v5085_v29, %v4713_v27  ;;  %v5088_v36 = vadd.f32 %v5087_v34, %v5086_v31  ;;  %v5931_v29 = vld [vmem:[%s7522_s27 + $0x28] sm:$0xff]   ;;  %v5933_v31 = vld [vmem:[%s7522_s27 + $0xb0] sm:$0xff]   ;;  %v5935_v34 = vld [vmem:[%s7522_s27 + $0x78] sm:$0xff]  }
 0x73f   :  { %v5668_v37 = vadd.f32 %v4704_v32, %v2142_v35  ;;  %v2145_v38 = vadd.f32 %v5088_v36, %v4713_v27  ;;  %v5929_v27 = vld [vmem:[%s7522_s27 + $0x68] sm:$0xff]   ;;  %v5936_v35 = vld [vmem:[%s7522_s27 + $0xb8] sm:$0xff]  }
 0x741   :  { %v5669_v39 = vadd.f32 %v5668_v37, %v2182_v24  ;;  %v5670_v40 = vadd.f32 %v4704_v32, %v2145_v38  ;;  %v5926_v24 = vld [vmem:[%s7522_s27 + $0x60] sm:$0xff]   ;;  %v7274_v32 = vld [vmem:[#allocation2 + $0x50] sm:$0xff] }
 0x743   :  { %v4738_v41 = vmul.f32 -1.442695, %v5669_v39  ;;  %v5671_v42 = vadd.f32 %v5670_v40, %v2185_v30  ;;  %v5932_v30 = vld [vmem:[%s7522_s27 + $0x70] sm:$0xff]  }
 0x745   :  { %6098 = vpow2.f32 %v4738_v41  ;;  %v4739_v43 = vmul.f32 -1.442695, %v5671_v42 }
 0x747   :  { %6100 = vpow2.f32 %v4739_v43 }
 0x74f   :  { %v6099_v44 = vpop.eup %6098 }
 0x750   :  { %v2197_v45 = vadd.f32 1.0, %v6099_v44 }
 0x751   :  { %v6101_v47 = vpop.eup %6100 }
 0x752   :  { %6102 = vrcp.f32 %v2197_v45  ;;  %v2198_v48 = vadd.f32 1.0, %v6101_v47 }
 0x754   :  { %6104 = vrcp.f32 %v2198_v48 }
 0x75c   :  { %v6103_v49 = vpop.eup %6102 }
 0x75d   :  { %v2203_v50 = vmul.f32 %v6103_v49, %v5669_v39  ;;  %v4740_v39 = vld [vmem:[#allocation36] ss:$0 sm:$0xff] }
 0x75e   :  { %v6105_v51 = vpop.eup %6104 }
 0x75f   :  { %2206 = vst [vmem:[#allocation6 + $0x8] sm:$0xff] %v2203_v50  ;;  %v2204_v52 = vmul.f32 %v6105_v51, %v5671_v42 }
 0x761   :  { %2208 = vst [vmem:[#allocation6 + $0x18] sm:$0xff] %v2204_v52 }
 0x766   :  { %v2221_v53 = vld [vmem:[#allocation6 + $0x8] ss:$2 sm:$0xf]  ;;  %v2230_v59 = vld [vmem:[#allocation6 + $0x9] ss:$2 sm:$0xf] }
 0x767   :  { %v2211_v63 = vld [vmem:[#allocation6 + $0x7] ss:$2 sm:$0xf] }
 0x768   :  { %v2223_v54 = vld [vmem:[#allocation6 + $0x18] ss:$2 sm:$0xf]  ;;  %v2232_v55 = vld [vmem:[#allocation6 + $0x19] ss:$2 sm:$0xf] }
 0x769   :  { %v2225_v56 = vrot.slane %v2223_v54, 4  ;;  %v2234_v57 = vrot.slane %v2232_v55, 4  ;;  %v2213_v58 = vld [vmem:[#allocation6 + $0x17] ss:$2 sm:$0xf] }
 0x76a   :  { %v2215_v60 = vrot.slane %v2213_v58, 4 }
 0x76b   :  { %v2227_v61 = vsel %vm2217_vm2, %v2221_v53, %v2225_v56  ;;  %v2236_v62 = vsel %vm2217_vm2, %v2230_v59, %v2234_v57 }
 0x76c   :  { %v2228_v0 = vpack.c.bf16 %v2227_v61, %v2227_v61  ;;  %v2237_v1 = vpack.c.bf16 %v2236_v62, %v2236_v62  ;;  %v2218_v2 = vsel %vm2217_vm2, %v2211_v63, %v2215_v60 }
 0x76d   :  { %v2219_v4 = vpack.c.bf16 %v2218_v2, %v2218_v2 }
 0x76e   :  { %2469 = vmatprep.mubr.bf16.mxu1 %v2228_v0  ;;  %5477 = vmatmul.mubr.bf16.vlgmr.msra.gmra.mrb[28].mxu0 %v2237_v1 }
 0x76f   :  { %2470 = vmatmul.mubr.bf16.vlgmr.msra.gmra.mrb[20].mxu1 %v2219_v4  ;;  %5139 = vmatpush3.bf16.msra.mxu0 %v5916_v14  ;;  %v5947_v14 = vld [vmem:[%s7523_s15 + $0x58] sm:$0xff]  }
 0x770   :  { %5481 = vmatpush3.bf16.msra.mxu1 %v5906_v3  ;;  %5496 = vmatprep.mubr.msk.bf16.mxu1 %vm6816_vm1, %v7191_v46 }
 0x771   :  { %5482 = vmatprep.subr.bf16.mxu1 %v7191_v46  ;;  %5140 = vmatprep.subr.bf16.mxu0 %v5917_v15  ;;  %v5948_v15 = vld [vmem:[%s7523_s15 + $0x18] sm:$0xff]  }
 0x773   :  { %5141 = vmatpush3.bf16.msra.mxu0 %v5919_v17  ;;  %v5950_v17 = vld [vmem:[%s7523_s15 + $0x60] sm:$0xff]  }
 0x774   :  { %5483 = vmatpush3.bf16.msra.mxu1 %v5907_v5  ;;  %5142 = vmatprep.subr.bf16.mxu0 %v5920_v18  ;;  %v5938_v5 = vld [vmem:[%s7523_s15 + $0x40] sm:$0xff]  }
 0x775   :  { %5484 = vmatprep.subr.bf16.mxu1 %v7191_v46  ;;  %v5951_v18 = vld [vmem:[%s7523_s15 + $0x20] sm:$0xff]  }
 0x777   :  { %5143 = vmatpush3.bf16.msra.mxu0 %v5922_v20  ;;  %v5953_v20 = vld [vmem:[%s7523_s15 + $0x68] sm:$0xff]  }
 0x778   :  { %5485 = vmatpush3.bf16.msra.mxu1 %v5908_v6  ;;  %5144 = vmatprep.subr.bf16.mxu0 %v5923_v21  ;;  %v5939_v6 = vld [vmem:[%s7523_s15] sm:$0xff]   ;;  %v5954_v21 = vld [vmem:[%s7523_s15 + $0x28] sm:$0xff]  }
 0x779   :  { %5486 = vmatprep.subr.bf16.mxu1 %v7191_v46 }
 0x77b   :  { %5145 = vmatpush3.bf16.msra.mxu0 %v5925_v23  ;;  %v5956_v23 = vld [vmem:[%s7523_s15 + $0x70] sm:$0xff]  }
 0x77c   :  { %5487 = vmatpush3.bf16.msra.mxu1 %v5909_v7  ;;  %5146 = vmatprep.subr.bf16.mxu0 %v5926_v24  ;;  %v5940_v7 = vld [vmem:[%s7523_s15 + $0x80] sm:$0xff]   ;;  %v5957_v24 = vld [vmem:[%s7523_s15 + $0x30] sm:$0xff]  }
 0x77d   :  { %5488 = vmatprep.subr.bf16.mxu1 %v7191_v46 }
 0x77f   :  { %5147 = vmatpush3.bf16.msra.mxu0 %v5928_v26  ;;  %v5959_v26 = vld [vmem:[%s7523_s15 + $0x78] sm:$0xff]  }
 0x780   :  { %5489 = vmatpush3.bf16.msra.mxu1 %v5910_v8  ;;  %5148 = vmatprep.subr.bf16.mxu0 %v5929_v27  ;;  %v5941_v8 = vld [vmem:[%s7523_s15 + $0x48] sm:$0xff]   ;;  %v5960_v27 = vld [vmem:[%s7523_s15 + $0x38] sm:$0xff]  }
 0x781   :  { %5490 = vmatprep.subr.bf16.mxu1 %v7191_v46 }
 0x783   :  { %5149 = vmatpush3.bf16.msra.mxu0 %v5931_v29 }
 0x784   :  { %5491 = vmatpush3.bf16.msra.mxu1 %v5911_v9  ;;  %5150 = vmatprep.subr.bf16.mxu0 %v5932_v30  ;;  %v5942_v9 = vld [vmem:[%s7523_s15 + $0x8] sm:$0xff]  }
 0x785   :  { %5492 = vmatprep.subr.bf16.mxu1 %v7191_v46 }
 0x787   :  { %5151 = vmatpush3.bf16.msra.mxu0 %v5934_v33  ;;  %v4775_v33 = vld [vmem:[#allocation38] ss:$0 sm:$0xff] }
 0x788   :  { %5493 = vmatpush3.bf16.msra.mxu1 %v5912_v10  ;;  %5152 = vmatprep.subr.bf16.mxu0 %v5935_v34  ;;  %v5943_v10 = vld [vmem:[%s7523_s15 + $0x88] sm:$0xff]  }
 0x789   :  { %5494 = vmatprep.subr.bf16.mxu1 %v7191_v46 }
 0x78c   :  { %5495 = vmatpush3.bf16.msra.mxu1 %v5913_v11  ;;  %v5944_v11 = vld [vmem:[%s7523_s15 + $0x50] sm:$0xff]  }
 0x78d   :  { %5500 = vmatprep.subr.bf16.mxu1 %v7191_v46 }
 0x78f   :  { %5497 = vmatmul.mubr.bf16.vlgmr.msra.gmra.mrb[24].mxu1 %v2228_v0 }
 0x790   :  { %5516 = vmatprep.mubr.msk.bf16.mxu1 %vm6816_vm1, %v7191_v46  ;;  %5501 = vmatpush3.bf16.msra.mxu1 %v5915_v13  ;;  %v5946_v13 = vld [vmem:[%s7523_s15 + $0x90] sm:$0xff]  }
 0x791   :  { %5502 = vmatprep.subr.bf16.mxu1 %v7191_v46 }
 0x794   :  { %5503 = vmatpush3.bf16.msra.mxu1 %v5918_v16  ;;  %v5949_v16 = vld [vmem:[%s7523_s15 + $0x98] sm:$0xff]  }
 0x795   :  { %5504 = vmatprep.subr.bf16.mxu1 %v7191_v46 }
 0x798   :  { %5505 = vmatpush3.bf16.msra.mxu1 %v5921_v19  ;;  %v5952_v19 = vld [vmem:[%s7523_s15 + $0xa0] sm:$0xff]  }
 0x799   :  { %5506 = vmatprep.subr.bf16.mxu1 %v7191_v46 }
 0x79c   :  { %5507 = vmatpush3.bf16.msra.mxu1 %v5924_v22  ;;  %v5955_v22 = vld [vmem:[%s7523_s15 + $0xa8] sm:$0xff]  }
 0x79d   :  { %5508 = vmatprep.subr.bf16.mxu1 %v7191_v46 }
 0x7a0   :  { %5509 = vmatpush3.bf16.msra.mxu1 %v5927_v25  ;;  %v5958_v25 = vld [vmem:[%s7523_s15 + $0xb0] sm:$0xff]  }
 0x7a1   :  { %5510 = vmatprep.subr.bf16.mxu1 %v7191_v46  ;;  %v5937_v46 = vld [vmem:[%s7522_s27 + $0x38] sm:$0xff]  }
 0x7a2   :  { %5153 = vmatpush3.bf16.msra.mxu0 %v5937_v46 }
 0x7a3   :  { %5169 = vmatprep.subr.bf16.mxu0 %v5938_v5  ;;  %v5967_v5 = vld [vmem:[#allocation45 + $0x28] sm:$0xff]  }
 0x7a4   :  { %5511 = vmatpush3.bf16.msra.mxu1 %v5930_v28  ;;  %v5961_v28 = vld [vmem:[%s7523_s15 + $0xb8] sm:$0xff]  }
 0x7a5   :  { %5512 = vmatprep.subr.bf16.mxu1 %v7274_v32 }
 0x7a8   :  { %5513 = vmatpush3.bf16.msra.mxu1 %v5933_v31 }
 0x7a9   :  { %5514 = vmatprep.subr.bf16.mxu1 %v7274_v32 }
 0x7ac   :  { %5515 = vmatpush3.bf16.msra.mxu1 %v5936_v35 }
 0x7ad   :  { %5520 = vmatprep.subr.bf16.mxu1 %v7274_v32 }
 0x841   :  { %v2511_v36 = vpop.f32.mrb[28].mxu0 }
 0x842   :  { %v5114_v37 = vpop.f32.mrb[20].mxu1  ;;  %v5478_v38 = vpop.f32.mrb[29].mxu0 }
 0x843   :  { %v5115_v40 = vpop.f32.mrb[21].mxu1  ;;  %v2514_v41 = vpop.f32.mrb[30].mxu0  ;;  %v4766_v38 = vld [vmem:[#allocation41] ss:$0 sm:$0xff] }
 0x844   :  { %v5116_v42 = vadd.f32 %v5115_v40, %v5114_v37  ;;  %v5117_v43 = vpop.f32.mrb[22].mxu1  ;;  %v5479_v44 = vpop.f32.mrb[31].mxu0 }
 0x845   :  { %v5118_v45 = vpop.f32.mrb[23].mxu1 }
 0x846   :  { %v2472_v47 = vadd.f32 %v5116_v42, %v4740_v39 }
 0x848   :  { %v2512_v48 = vadd.f32 %v2511_v36, %v2472_v47 }
 0x84a   :  { %v4765_v49 = vmul.f32 -1.442695, %v2512_v48 }
 0x84c   :  { %6106 = vpow2.f32 %v4765_v49 }
 0x856   :  { %v6107_v50 = vpop.eup %6106 }
 0x857   :  { %v2520_v51 = vadd.f32 1.0, %v6107_v50 }
 0x859   :  { %6108 = vrcp.f32 %v2520_v51 }
 0x863   :  { %v6109_v52 = vpop.eup %6108 }
 0x864   :  { %v2523_v53 = vmul.f32 %v6109_v52, %v2512_v48 }
 0x866   :  { %2525 = vst [vmem:[#allocation7 + $0x8] ss:$8 sps:$4 sm:$0xff] %v2523_v53  }
 0x86d   :  { %v2648_v54 = vld [vmem:[#allocation7 + $0x10] sm:$0xf]  ;;  %v2647_v57 = vld [vmem:[#allocation7 + $0x8] sm:$0xf] }
 0x86e   :  { %v2650_v55 = vrot.slane %v2648_v54, 4  ;;  %v2655_v56 = vld [vmem:[#allocation7 + $0x11] sm:$0xf]  ;;  %v2654_v61 = vld [vmem:[#allocation7 + $0x9] sm:$0xf] }
 0x86f   :  { %v2657_v58 = vrot.slane %v2655_v56, 4  ;;  %v2641_v59 = vld [vmem:[#allocation7 + $0xf] sm:$0xf]  ;;  %v2640_v1 = vld [vmem:[#allocation7 + $0x7] sm:$0xf] }
 0x870   :  { %v2652_v60 = vsel %vm2217_vm2, %v2647_v57, %v2650_v55  ;;  %v2643_v62 = vrot.slane %v2641_v59, 4 }
 0x871   :  { %v2653_v63 = vpack.c.bf16 %v2652_v60, %v2652_v60  ;;  %v2659_v0 = vsel %vm2217_vm2, %v2654_v61, %v2657_v58 }
 0x872   :  { %v2660_v2 = vpack.c.bf16 %v2659_v0, %v2659_v0  ;;  %v2645_v3 = vsel %vm2217_vm2, %v2640_v1, %v2643_v62  ;;  %v5963_v1 = vld [vmem:[#allocation45 + $0x8] sm:$0xff]  }
 0x873   :  { %2892 = vmatprep.mubr.bf16.mxu0 %v2653_v63  ;;  %v2646_v4 = vpack.c.bf16 %v2645_v3, %v2645_v3  ;;  %v5962_v63 = vld [vmem:[#allocation45] sm:$0xff]   ;;  %v5965_v3 = vld [vmem:[#allocation45 + $0x18] sm:$0xff]  }
 0x874   :  { %5517 = vmatmul.mubr.bf16.vlgmr.msra.gmra.mrb[24].mxu1 %v2660_v2  ;;  %v5964_v2 = vld [vmem:[#allocation45 + $0x10] sm:$0xff]  }
 0x875   :  { %2893 = vmatmul.mubr.bf16.vlgmr.msra.gmra.mrb[32].mxu0 %v2646_v4  ;;  %5536 = vmatprep.mubr.msk.bf16.mxu1 %vm6816_vm1, %v7274_v32  ;;  %v5966_v4 = vld [vmem:[#allocation45 + $0x20] sm:$0xff]  }
 0x876   :  { %5170 = vmatpush3.bf16.msra.mxu0 %v5939_v6  ;;  %5521 = vmatpush3.bf16.msra.mxu1 %v5940_v7  ;;  %v5968_v6 = vld [vmem:[#allocation45 + $0x30] sm:$0xff]   ;;  %v5969_v7 = vld [vmem:[#allocation45 + $0x38] sm:$0xff]  }
 0x877   :  { %5522 = vmatprep.subr.bf16.mxu1 %v7274_v32  ;;  %5171 = vmatprep.subr.bf16.mxu0 %v5941_v8  ;;  %v5970_v8 = vld [vmem:[%s7524_s4 + $0x40] sm:$0xff]  }
 0x87a   :  { %5172 = vmatpush3.bf16.msra.mxu0 %v5942_v9  ;;  %5523 = vmatpush3.bf16.msra.mxu1 %v5943_v10  ;;  %v5971_v9 = vld [vmem:[%s7524_s4 + $0x80] sm:$0xff]  }
 0x87b   :  { %5524 = vmatprep.subr.bf16.mxu1 %v7274_v32  ;;  %5173 = vmatprep.subr.bf16.mxu0 %v5944_v11  ;;  %v5972_v10 = vld [vmem:[%s7524_s4] sm:$0xff]   ;;  %v5973_v11 = vld [vmem:[%s7524_s4 + $0x48] sm:$0xff]  }
 0x87e   :  { %5174 = vmatpush3.bf16.msra.mxu0 %v5945_v12  ;;  %5525 = vmatpush3.bf16.msra.mxu1 %v5946_v13  ;;  %v5974_v12 = vld [vmem:[%s7524_s4 + $0x88] sm:$0xff]  }
 0x87f   :  { %5526 = vmatprep.subr.bf16.mxu1 %v7274_v32  ;;  %5175 = vmatprep.subr.bf16.mxu0 %v5947_v14  ;;  %v5975_v13 = vld [vmem:[%s7524_s4 + $0x8] sm:$0xff]   ;;  %v5976_v14 = vld [vmem:[%s7524_s4 + $0x50] sm:$0xff]  }
 0x882   :  { %5176 = vmatpush3.bf16.msra.mxu0 %v5948_v15  ;;  %5527 = vmatpush3.bf16.msra.mxu1 %v5949_v16  ;;  %v5977_v15 = vld [vmem:[%s7524_s4 + $0x90] sm:$0xff]  }
 0x883   :  { %5528 = vmatprep.subr.bf16.mxu1 %v7274_v32  ;;  %5177 = vmatprep.subr.bf16.mxu0 %v5950_v17  ;;  %v5978_v16 = vld [vmem:[%s7524_s4 + $0x10] sm:$0xff]   ;;  %v5979_v17 = vld [vmem:[%s7524_s4 + $0x58] sm:$0xff]  }
 0x886   :  { %5178 = vmatpush3.bf16.msra.mxu0 %v5951_v18  ;;  %5529 = vmatpush3.bf16.msra.mxu1 %v5952_v19  ;;  %v5980_v18 = vld [vmem:[%s7524_s4 + $0x98] sm:$0xff]  }
 0x887   :  { %5530 = vmatprep.subr.bf16.mxu1 %v7274_v32  ;;  %5179 = vmatprep.subr.bf16.mxu0 %v5953_v20  ;;  %v5981_v19 = vld [vmem:[%s7524_s4 + $0x18] sm:$0xff]   ;;  %v5982_v20 = vld [vmem:[%s7524_s4 + $0x60] sm:$0xff]  }
 0x88a   :  { %5180 = vmatpush3.bf16.msra.mxu0 %v5954_v21  ;;  %5531 = vmatpush3.bf16.msra.mxu1 %v5955_v22  ;;  %v5983_v21 = vld [vmem:[%s7524_s4 + $0xa0] sm:$0xff]  }
 0x88b   :  { %5181 = vmatprep.subr.bf16.mxu0 %v5956_v23  ;;  %5532 = vmatprep.subr.bf16.mxu1 %v7274_v32  ;;  %v5984_v22 = vld [vmem:[%s7524_s4 + $0x20] sm:$0xff]   ;;  %v5985_v23 = vld [vmem:[%s7524_s4 + $0x68] sm:$0xff]  }
 0x88e   :  { %5182 = vmatpush3.bf16.msra.mxu0 %v5957_v24  ;;  %5533 = vmatpush3.bf16.msra.mxu1 %v5958_v25  ;;  %v5986_v24 = vld [vmem:[%s7524_s4 + $0xa8] sm:$0xff]  }
 0x88f   :  { %5183 = vmatprep.subr.bf16.mxu0 %v5959_v26  ;;  %5534 = vmatprep.subr.bf16.mxu1 %v7274_v32  ;;  %v5987_v25 = vld [vmem:[%s7524_s4 + $0x28] sm:$0xff]   ;;  %v5988_v26 = vld [vmem:[%s7524_s4 + $0x70] sm:$0xff]  }
 0x892   :  { %5184 = vmatpush3.bf16.msra.mxu0 %v5960_v27  ;;  %5535 = vmatpush3.bf16.msra.mxu1 %v5961_v28  ;;  %v5989_v27 = vld [vmem:[%s7524_s4 + $0xb0] sm:$0xff]  }
 0x893   :  { %5540 = vmatprep.subr.bf16.mxu0 %v7274_v32  ;;  %5209 = vmatprep.subr.bf16.mxu1 %v5970_v8  ;;  %v5990_v28 = vld [vmem:[%s7524_s4 + $0x30] sm:$0xff]  }
 0x894   :  { %v6001_v8 = vld [vmem:[%s7525_s28 + $0x10] sm:$0xff]  }
 0x947   :  { %v2934_v29 = vpop.f32.mrb[24].mxu1 }
 0x948   :  { %v5154_v30 = vpop.f32.mrb[32].mxu0  ;;  %v5518_v31 = vpop.f32.mrb[25].mxu1 }
 0x949   :  { %v5155_v34 = vpop.f32.mrb[33].mxu0  ;;  %v2937_v35 = vpop.f32.mrb[26].mxu1  ;;  %v5993_v31 = vld [vmem:[%s7524_s4 + $0x38] sm:$0xff]  }
 0x94a   :  { %v5156_v46 = vadd.f32 %v5155_v34, %v5154_v30  ;;  %v5157_v36 = vpop.f32.mrb[34].mxu0  ;;  %v5519_v37 = vpop.f32.mrb[27].mxu1  ;;  %v5992_v30 = vld [vmem:[%s7524_s4 + $0xb8] sm:$0xff]  }
 0x94b   :  { %v5158_v39 = vpop.f32.mrb[35].mxu0 }
 0x94c   :  { %v2895_v40 = vadd.f32 %v5156_v46, %v4775_v33  ;;  %v4801_v46 = vld [vmem:[#allocation42] ss:$0 sm:$0xff] }
 0x94e   :  { %v5672_v41 = vadd.f32 %v4766_v38, %v2895_v40 }
 0x950   :  { %v5673_v42 = vadd.f32 %v5672_v41, %v2934_v29  ;;  %v5991_v29 = vld [vmem:[%s7524_s4 + $0x78] sm:$0xff]  }
 0x952   :  { %v4800_v43 = vmul.f32 -1.442695, %v5673_v42 }
 0x954   :  { %6110 = vpow2.f32 %v4800_v43 }
 0x95e   :  { %v6111_v44 = vpop.eup %6110 }
 0x95f   :  { %v2944_v45 = vadd.f32 1.0, %v6111_v44 }
 0x961   :  { %6112 = vrcp.f32 %v2944_v45 }
 0x96b   :  { %v6113_v47 = vpop.eup %6112 }
 0x96c   :  { %v2947_v48 = vmul.f32 %v6113_v47, %v5673_v42 }
 0x96e   :  { %2949 = vst [vmem:[#allocation8 + $0x8] ss:$8 sps:$4 sm:$0xff] %v2947_v48  }
 0x975   :  { %v2966_v49 = vld [vmem:[#allocation8 + $0x10] ss:$2 sm:$0x3]  ;;  %v2964_v51 = vld [vmem:[#allocation8 + $0x8] ss:$2 sm:$0x3] }
 0x976   :  { %v2968_v50 = vrot.slane %v2966_v49, 6  ;;  %v2975_v52 = vld [vmem:[#allocation8 + $0x11] ss:$2 sm:$0x3] }
 0x977   :  { %v2977_v54 = vrot.slane %v2975_v52, 6  ;;  %v2956_v55 = vld [vmem:[#allocation8 + $0xf] ss:$2 sm:$0x3] }
 0x978   :  { %v2970_v53 = vsel %vm2960_vm3, %v2964_v51, %v2968_v50  ;;  %v2973_v57 = vld [vmem:[#allocation8 + $0x9] ss:$2 sm:$0x3]  ;;  %v2958_v58 = vrot.slane %v2956_v55, 6 }
 0x979   :  { %v2971_v56 = vpack.c.bf16 %v2970_v53, %v2970_v53  ;;  %v2979_v59 = vsel %vm2960_vm3, %v2973_v57, %v2977_v54  ;;  %v2954_v60 = vld [vmem:[#allocation8 + $0x7] ss:$2 sm:$0x3] }
 0x97a   :  { %v2980_v61 = vpack.c.bf16 %v2979_v59, %v2979_v59  ;;  %v2961_v62 = vsel %vm2960_vm3, %v2954_v60, %v2958_v58 }
 0x97b   :  { %3212 = vmatprep.mubr.bf16.mxu0 %v2971_v56  ;;  %v2962_v0 = vpack.c.bf16 %v2961_v62, %v2961_v62 }
 0x97c   :  { %5537 = vmatmul.mubr.bf16.vlgmr.msra.gmra.mrb[28].mxu1 %v2980_v61 }
 0x97d   :  { %3213 = vmatmul.mubr.bf16.vlgmr.msra.gmra.mrb[36].mxu0 %v2962_v0  ;;  %5210 = vmatpush3.bf16.msra.mxu1 %v5972_v10  ;;  %v6003_v10 = vld [vmem:[%s7525_s28 + $0x58] sm:$0xff]  }
 0x97e   :  { %5541 = vmatpush3.bf16.msra.mxu0 %v5962_v63  ;;  %5556 = vmatprep.mubr.msk.bf16.mxu0 %vm6816_vm1, %v7274_v32 }
 0x97f   :  { %5542 = vmatprep.subr.bf16.mxu0 %v7274_v32  ;;  %5211 = vmatprep.subr.bf16.mxu1 %v5973_v11  ;;  %v6004_v11 = vld [vmem:[%s7525_s28 + $0x18] sm:$0xff]  }
 0x981   :  { %5212 = vmatpush3.bf16.msra.mxu1 %v5975_v13  ;;  %v6006_v13 = vld [vmem:[%s7525_s28 + $0x60] sm:$0xff]  }
 0x982   :  { %5543 = vmatpush3.bf16.msra.mxu0 %v5963_v1  ;;  %5213 = vmatprep.subr.bf16.mxu1 %v5976_v14  ;;  %v5994_v1 = vld [vmem:[%s7525_s28 + $0x40] sm:$0xff]  }
 0x983   :  { %5544 = vmatprep.subr.bf16.mxu0 %v7274_v32  ;;  %v6007_v14 = vld [vmem:[%s7525_s28 + $0x20] sm:$0xff]  }
 0x985   :  { %5214 = vmatpush3.bf16.msra.mxu1 %v5978_v16  ;;  %v6009_v16 = vld [vmem:[%s7525_s28 + $0x68] sm:$0xff]  }
 0x986   :  { %5545 = vmatpush3.bf16.msra.mxu0 %v5964_v2  ;;  %5215 = vmatprep.subr.bf16.mxu1 %v5979_v17  ;;  %v5995_v2 = vld [vmem:[%s7525_s28] sm:$0xff]   ;;  %v6010_v17 = vld [vmem:[%s7525_s28 + $0x28] sm:$0xff]  }
 0x987   :  { %5546 = vmatprep.subr.bf16.mxu0 %v7274_v32 }
 0x989   :  { %5216 = vmatpush3.bf16.msra.mxu1 %v5981_v19  ;;  %v6012_v19 = vld [vmem:[%s7525_s28 + $0x70] sm:$0xff]  }
 0x98a   :  { %5547 = vmatpush3.bf16.msra.mxu0 %v5965_v3  ;;  %5217 = vmatprep.subr.bf16.mxu1 %v5982_v20  ;;  %v5996_v3 = vld [vmem:[%s7525_s28 + $0x80] sm:$0xff]   ;;  %v6013_v20 = vld [vmem:[%s7525_s28 + $0x30] sm:$0xff]  }
 0x98b   :  { %5548 = vmatprep.subr.bf16.mxu0 %v7274_v32 }
 0x98d   :  { %5218 = vmatpush3.bf16.msra.mxu1 %v5984_v22  ;;  %v6015_v22 = vld [vmem:[%s7525_s28 + $0x78] sm:$0xff]  }
 0x98e   :  { %5549 = vmatpush3.bf16.msra.mxu0 %v5966_v4  ;;  %5219 = vmatprep.subr.bf16.mxu1 %v5985_v23  ;;  %v5997_v4 = vld [vmem:[%s7525_s28 + $0x48] sm:$0xff]   ;;  %v6016_v23 = vld [vmem:[%s7525_s28 + $0x38] sm:$0xff]  }
 0x98f   :  { %5550 = vmatprep.subr.bf16.mxu0 %v7274_v32 }
 0x991   :  { %5220 = vmatpush3.bf16.msra.mxu1 %v5987_v25 }
 0x992   :  { %5551 = vmatpush3.bf16.msra.mxu0 %v5967_v5  ;;  %5221 = vmatprep.subr.bf16.mxu1 %v5988_v26  ;;  %v5998_v5 = vld [vmem:[%s7525_s28 + $0x8] sm:$0xff]  }
 0x993   :  { %5552 = vmatprep.subr.bf16.mxu0 %v7274_v32 }
 0x995   :  { %5222 = vmatpush3.bf16.msra.mxu1 %v5990_v28  ;;  %v4836_v28 = vld [vmem:[#allocation44] ss:$0 sm:$0xff] }
 0x996   :  { %5553 = vmatpush3.bf16.msra.mxu0 %v5968_v6  ;;  %5223 = vmatprep.subr.bf16.mxu1 %v5991_v29  ;;  %v5999_v6 = vld [vmem:[%s7525_s28 + $0x88] sm:$0xff]  }
 0x997   :  { %5554 = vmatprep.subr.bf16.mxu0 %v7274_v32 }
 0x999   :  { %5224 = vmatpush3.bf16.msra.mxu1 %v5993_v31 }
 0x99a   :  { %5555 = vmatpush3.bf16.msra.mxu0 %v5969_v7  ;;  %5240 = vmatprep.subr.bf16.mxu1 %v5994_v1  ;;  %v6000_v7 = vld [vmem:[%s7525_s28 + $0x50] sm:$0xff]   ;;  %v6023_v1 = vld [vmem:[#allocation51 + $0x28] sm:$0xff]  }
 0x99b   :  { %5560 = vmatprep.subr.bf16.mxu0 %v7274_v32 }
 0x99d   :  { %5557 = vmatmul.mubr.bf16.vlgmr.msra.gmra.mrb[40].mxu0 %v2971_v56 }
 0x99e   :  { %5576 = vmatprep.mubr.msk.bf16.mxu0 %vm6816_vm1, %v7274_v32  ;;  %5561 = vmatpush3.bf16.msra.mxu0 %v5971_v9  ;;  %v6002_v9 = vld [vmem:[%s7525_s28 + $0x90] sm:$0xff]  }
 0x99f   :  { %5562 = vmatprep.subr.bf16.mxu0 %v7274_v32 }
 0x9a2   :  { %5563 = vmatpush3.bf16.msra.mxu0 %v5974_v12  ;;  %v6005_v12 = vld [vmem:[%s7525_s28 + $0x98] sm:$0xff]  }
 0x9a3   :  { %5564 = vmatprep.subr.bf16.mxu0 %v7274_v32 }
 0x9a6   :  { %5565 = vmatpush3.bf16.msra.mxu0 %v5977_v15  ;;  %v6008_v15 = vld [vmem:[%s7525_s28 + $0xa0] sm:$0xff]  }
 0x9a7   :  { %5566 = vmatprep.subr.bf16.mxu0 %v7274_v32 }
 0x9aa   :  { %5567 = vmatpush3.bf16.msra.mxu0 %v5980_v18  ;;  %v6011_v18 = vld [vmem:[%s7525_s28 + $0xa8] sm:$0xff]  }
 0x9ab   :  { %5568 = vmatprep.subr.bf16.mxu0 %v7274_v32 }
 0x9ae   :  { %5569 = vmatpush3.bf16.msra.mxu0 %v5983_v21  ;;  %v6014_v21 = vld [vmem:[%s7525_s28 + $0xb0] sm:$0xff]  }
 0x9af   :  { %5570 = vmatprep.subr.bf16.mxu0 %v7274_v32 }
 0x9b2   :  { %5571 = vmatpush3.bf16.msra.mxu0 %v5986_v24  ;;  %v6017_v24 = vld [vmem:[%s7525_s28 + $0xb8] sm:$0xff]  }
 0x9b3   :  { %5572 = vmatprep.subr.bf16.mxu0 %v7274_v32 }
 0x9b6   :  { %5573 = vmatpush3.bf16.msra.mxu0 %v5989_v27 }
 0x9b7   :  { %5574 = vmatprep.subr.bf16.mxu0 %v7274_v32 }
 0x9ba   :  { %5575 = vmatpush3.bf16.msra.mxu0 %v5992_v30 }
 0x9bb   :  { %5580 = vmatprep.subr.bf16.mxu0 %v7274_v32 }
 0xa4f   :  { %v3254_v33 = vpop.f32.mrb[28].mxu1 }
 0xa50   :  { %v5185_v34 = vpop.f32.mrb[36].mxu0  ;;  %v5538_v35 = vpop.f32.mrb[29].mxu1 }
 0xa51   :  { %v5186_v36 = vpop.f32.mrb[37].mxu0  ;;  %v3257_v37 = vpop.f32.mrb[30].mxu1  ;;  %v4827_v35 = vld [vmem:[#allocation47] ss:$0 sm:$0xff] }
 0xa52   :  { %v5187_v38 = vadd.f32 %v5186_v36, %v5185_v34  ;;  %v5188_v39 = vpop.f32.mrb[38].mxu0  ;;  %v5539_v40 = vpop.f32.mrb[31].mxu1 }
 0xa53   :  { %v5189_v41 = vpop.f32.mrb[39].mxu0 }
 0xa54   :  { %v3215_v42 = vadd.f32 %v5187_v38, %v4801_v46 }
 0xa56   :  { %v3255_v43 = vadd.f32 %v3254_v33, %v3215_v42 }
 0xa58   :  { %v4826_v44 = vmul.f32 -1.442695, %v3255_v43 }
 0xa5a   :  { %6114 = vpow2.f32 %v4826_v44  ;;  %v3697_v44 = vld [vmem:[#allocation10 + $0xf] sm:$0x1] }
 0xa64   :  { %v6115_v45 = vpop.eup %6114 }
 0xa65   :  { %v3263_v47 = vadd.f32 1.0, %v6115_v45  ;;  %v3699_v45 = vrot.slane %v3697_v44, 7 }
 0xa67   :  { %6116 = vrcp.f32 %v3263_v47  ;;  %v3696_v47 = vld [vmem:[#allocation10 + $0x7] sm:$0x1] }
 0xa71   :  { %v6117_v48 = vpop.eup %6116 }
 0xa72   :  { %v3266_v49 = vmul.f32 %v6117_v48, %v3255_v43 }
 0xa74   :  { %3268 = vst [vmem:[#allocation9 + $0x8] sm:$0x3] %v3266_v49  ;;  %3270 = vst [vmem:[#allocation9 + $0xe] sm:$0xc] %v3266_v49  ;;  %v3702_v49 = vsel %vm3701_vm4, %v3696_v47, %v3699_v45 }
 0xa7b   :  { %v3391_v50 = vld [vmem:[#allocation9 + $0x10] sm:$0x3]  ;;  %v3390_v53 = vld [vmem:[#allocation9 + $0x8] sm:$0x3] }
 0xa7c   :  { %v3393_v51 = vrot.slane %v3391_v50, 6  ;;  %v3398_v52 = vld [vmem:[#allocation9 + $0x11] sm:$0x3]  ;;  %v3384_v55 = vld [vmem:[#allocation9 + $0xf] sm:$0x3] }
 0xa7d   :  { %v3400_v54 = vrot.slane %v3398_v52, 6  ;;  %v3397_v57 = vld [vmem:[#allocation9 + $0x9] sm:$0x3]  ;;  %v3386_v58 = vrot.slane %v3384_v55, 6  ;;  %v3383_v61 = vld [vmem:[#allocation9 + $0x7] sm:$0x3] }
 0xa7e   :  { %v3395_v56 = vsel %vm2960_vm3, %v3390_v53, %v3393_v51 }
 0xa7f   :  { %v3396_v59 = vpack.c.bf16 %v3395_v56, %v3395_v56  ;;  %v3402_v60 = vsel %vm2960_vm3, %v3397_v57, %v3400_v54  ;;  %v3388_v63 = vsel %vm2960_vm3, %v3383_v61, %v3386_v58  ;;  %v3703_v56 = vpack.c.bf16 %v3702_v49, %v3702_v49  ;;  %v6019_v61 = vld [vmem:[#allocation51 + $0x8] sm:$0xff]  }
 0xa80   :  { %v3403_v62 = vpack.c.bf16 %v3402_v60, %v3402_v60  ;;  %v3389_v0 = vpack.c.bf16 %v3388_v63, %v3388_v63  ;;  %v6021_v63 = vld [vmem:[#allocation51 + $0x18] sm:$0xff]  }
 0xa81   :  { %3635 = vmatprep.mubr.bf16.mxu1 %v3396_v59  ;;  %v6018_v59 = vld [vmem:[#allocation51] sm:$0xff]  }
 0xa82   :  { %5577 = vmatmul.mubr.bf16.vlgmr.msra.gmra.mrb[40].mxu0 %v3403_v62  ;;  %3636 = vmatmul.mubr.bf16.vlgmr.msra.gmra.mrb[32].mxu1 %v3389_v0  ;;  %v6020_v62 = vld [vmem:[#allocation51 + $0x10] sm:$0xff]   ;;  %v6022_v0 = vld [vmem:[#allocation51 + $0x20] sm:$0xff]  }
 0xa83   :  { %5596 = vmatprep.mubr.msk.bf16.mxu0 %vm6816_vm1, %v7274_v32  ;;  %5241 = vmatpush3.bf16.msra.mxu1 %v5995_v2  ;;  %v6024_v2 = vld [vmem:[#allocation51 + $0x30] sm:$0xff]  }
 0xa84   :  { %5581 = vmatpush3.bf16.msra.mxu0 %v5996_v3  ;;  %5242 = vmatprep.subr.bf16.mxu1 %v5997_v4  ;;  %v6025_v3 = vld [vmem:[#allocation51 + $0x38] sm:$0xff]   ;;  %v6026_v4 = vld [vmem:[%s7526_s1 + $0x80] sm:$0xff]  }
 0xa85   :  { %5582 = vmatprep.subr.bf16.mxu0 %v7274_v32 }
 0xa87   :  { %5243 = vmatpush3.bf16.msra.mxu1 %v5998_v5  ;;  %v6027_v5 = vld [vmem:[%s7526_s1 + $0x88] sm:$0xff]  }
 0xa88   :  { %5583 = vmatpush3.bf16.msra.mxu0 %v5999_v6  ;;  %5244 = vmatprep.subr.bf16.mxu1 %v6000_v7  ;;  %v6028_v6 = vld [vmem:[%s7526_s1 + $0x90] sm:$0xff]   ;;  %v6029_v7 = vld [vmem:[%s7526_s1 + $0x98] sm:$0xff]  }
 0xa89   :  { %5584 = vmatprep.subr.bf16.mxu0 %v7274_v32 }
 0xa8b   :  { %5245 = vmatpush3.bf16.msra.mxu1 %v6001_v8  ;;  %v6030_v8 = vld [vmem:[%s7526_s1 + $0xa0] sm:$0xff]  }
 0xa8c   :  { %5585 = vmatpush3.bf16.msra.mxu0 %v6002_v9  ;;  %5246 = vmatprep.subr.bf16.mxu1 %v6003_v10  ;;  %v6031_v9 = vld [vmem:[%s7526_s1 + $0xa8] sm:$0xff]  }
 0xa8d   :  { %5586 = vmatprep.subr.bf16.mxu0 %v7274_v32  ;;  %v4135_v10 = vld [vmem:[#allocation11 + $0x11] sm:$0x1] }
 0xa8f   :  { %5247 = vmatpush3.bf16.msra.mxu1 %v6004_v11  ;;  %v6032_v11 = vld [vmem:[%s7526_s1 + $0xb0] sm:$0xff]  }
 0xa90   :  { %5587 = vmatpush3.bf16.msra.mxu0 %v6005_v12  ;;  %5248 = vmatprep.subr.bf16.mxu1 %v6006_v13  ;;  %v4137_v12 = vrot.slane %v4135_v10, 7  ;;  %v4134_v13 = vld [vmem:[#allocation11 + $0x9] sm:$0x1] }
 0xa91   :  { %5588 = vmatprep.subr.bf16.mxu0 %v7274_v32 }
 0xa93   :  { %5249 = vmatpush3.bf16.msra.mxu1 %v6007_v14  ;;  %v6033_v14 = vld [vmem:[%s7526_s1 + $0xb8] sm:$0xff]  }
 0xa94   :  { %5589 = vmatpush3.bf16.msra.mxu0 %v6008_v15  ;;  %5250 = vmatprep.subr.bf16.mxu1 %v6009_v16  ;;  %v4139_v15 = vsel %vm3701_vm4, %v4134_v13, %v4137_v12 }
 0xa95   :  { %5590 = vmatprep.subr.bf16.mxu0 %v7274_v32  ;;  %v4140_v16 = vpack.c.bf16 %v4139_v15, %v4139_v15  ;;  %v4888_v15 = vld [vmem:[#allocation53] ss:$0 sm:$0xff] }
 0xa97   :  { %5251 = vmatpush3.bf16.msra.mxu1 %v6010_v17  ;;  %v6034_v17 = vld [vmem:[%s7526_s1 + $0x40] sm:$0xff]  }
 0xa98   :  { %5591 = vmatpush3.bf16.msra.mxu0 %v6011_v18  ;;  %5252 = vmatprep.subr.bf16.mxu1 %v6012_v19  ;;  %v6035_v18 = vld [vmem:[%s7526_s1] sm:$0xff]   ;;  %v6036_v19 = vld [vmem:[%s7526_s1 + $0x48] sm:$0xff]  }
 0xa99   :  { %5592 = vmatprep.subr.bf16.mxu0 %v7274_v32 }
 0xa9b   :  { %5253 = vmatpush3.bf16.msra.mxu1 %v6013_v20  ;;  %v6037_v20 = vld [vmem:[%s7526_s1 + $0x8] sm:$0xff]  }
 0xa9c   :  { %5593 = vmatpush3.bf16.msra.mxu0 %v6014_v21  ;;  %5254 = vmatprep.subr.bf16.mxu1 %v6015_v22  ;;  %v6038_v21 = vld [vmem:[%s7526_s1 + $0x50] sm:$0xff]  }
 0xa9d   :  { %5594 = vmatprep.subr.bf16.mxu0 %v7274_v32  ;;  %v6039_v22 = vld [vmem:[%s7526_s1 + $0x10] sm:$0xff]  }
 0xa9f   :  { %5255 = vmatpush3.bf16.msra.mxu1 %v6016_v23  ;;  %v6040_v23 = vld [vmem:[%s7526_s1 + $0x58] sm:$0xff]  }
 0xaa0   :  { %5595 = vmatpush3.bf16.msra.mxu0 %v6017_v24  ;;  %5600 = vmatprep.subr.bf16.mxu1 %v7274_v32  ;;  %v6041_v24 = vld [vmem:[%s7526_s1 + $0x18] sm:$0xff]  }
 0xaa1   :  { %5280 = vmatprep.subr.bf16.mxu0 %v6034_v17 }
 0xb55   :  { %v3677_v25 = vpop.f32.mrb[40].mxu0  ;;  %v5225_v26 = vpop.f32.mrb[32].mxu1 }
 0xb56   :  { %v5578_v27 = vpop.f32.mrb[41].mxu0  ;;  %v5226_v29 = vpop.f32.mrb[33].mxu1 }
 0xb57   :  { %v3680_v30 = vpop.f32.mrb[42].mxu0  ;;  %v5227_v31 = vadd.f32 %v5226_v29, %v5225_v26  ;;  %v5228_v33 = vpop.f32.mrb[34].mxu1  ;;  %v6043_v26 = vld [vmem:[%s7526_s1 + $0x20] sm:$0xff]   ;;  %v6044_v27 = vld [vmem:[%s7526_s1 + $0x68] sm:$0xff]   ;;  %v6046_v29 = vld [vmem:[%s7526_s1 + $0x70] sm:$0xff]  }
 0xb58   :  { %v5579_v34 = vpop.f32.mrb[43].mxu0  ;;  %v5229_v46 = vpop.f32.mrb[35].mxu1  ;;  %v6047_v30 = vld [vmem:[%s7526_s1 + $0x30] sm:$0xff]   ;;  %v6049_v33 = vld [vmem:[%s7526_s1 + $0x38] sm:$0xff]  }
 0xb59   :  { %v3638_v36 = vadd.f32 %v5227_v31, %v4836_v28  ;;  %v6045_v28 = vld [vmem:[%s7526_s1 + $0x28] sm:$0xff]   ;;  %v6048_v31 = vld [vmem:[%s7526_s1 + $0x78] sm:$0xff]  }
 0xb5b   :  { %v5674_v37 = vadd.f32 %v4827_v35, %v3638_v36  ;;  %v4862_v36 = vld [vmem:[#allocation48] ss:$0 sm:$0xff] }
 0xb5d   :  { %v5675_v38 = vadd.f32 %v5674_v37, %v3677_v25  ;;  %v6042_v25 = vld [vmem:[%s7526_s1 + $0x60] sm:$0xff]  }
 0xb5f   :  { %v4861_v39 = vmul.f32 -1.442695, %v5675_v38 }
 0xb61   :  { %6118 = vpow2.f32 %v4861_v39 }
 0xb6b   :  { %v6119_v40 = vpop.eup %6118 }
 0xb6c   :  { %v3687_v41 = vadd.f32 1.0, %v6119_v40 }
 0xb6e   :  { %6120 = vrcp.f32 %v3687_v41 }
 0xb78   :  { %v6121_v42 = vpop.eup %6120 }
 0xb79   :  { %v3690_v43 = vmul.f32 %v6121_v42, %v5675_v38 }
 0xb7b   :  { %3692 = vst [vmem:[#allocation10 + $0x8] sm:$0x3] %v3690_v43  ;;  %3694 = vst [vmem:[#allocation10 + $0xe] sm:$0xc] %v3690_v43 }
 0xb82   :  { %v3705_v48 = vld [vmem:[#allocation10 + $0x10] sm:$0x1]  ;;  %v3712_v51 = vld [vmem:[#allocation10 + $0x11] sm:$0x1]  ;;  %v3704_v52 = vld [vmem:[#allocation10 + $0x8] sm:$0x1] }
 0xb83   :  { %v3707_v50 = vrot.slane %v3705_v48, 7  ;;  %v3714_v53 = vrot.slane %v3712_v51, 7  ;;  %v3711_v55 = vld [vmem:[#allocation10 + $0x9] sm:$0x1]  ;;  %v4121_v51 = vld [vmem:[#allocation11 + $0xf] sm:$0x1] }
 0xb85   :  { %v3709_v54 = vsel %vm3701_vm4, %v3704_v52, %v3707_v50  ;;  %v3716_v58 = vsel %vm3701_vm4, %v3711_v55, %v3714_v53  ;;  %v4123_v52 = vrot.slane %v4121_v51, 7  ;;  %v4120_v53 = vld [vmem:[#allocation11 + $0x7] sm:$0x1] }
 0xb86   :  { %v3710_v57 = vpack.c.bf16 %v3709_v54, %v3709_v54  ;;  %v3717_v60 = vpack.c.bf16 %v3716_v58, %v3716_v58 }
 0xb87   :  { %v4125_v55 = vsel %vm3701_vm4, %v4120_v53, %v4123_v52 }
 0xb88   :  { %3949 = vmatprep.mubr.bf16.mxu1 %v3710_v57  ;;  %5597 = vmatmul.mubr.bf16.vlgmr.msra.gmra.mrb[44].mxu0 %v3717_v60 }
 0xb89   :  { %3950 = vmatmul.mubr.bf16.vlgmr.msra.gmra.mrb[36].mxu1 %v3703_v56  ;;  %5281 = vmatpush3.bf16.msra.mxu0 %v6035_v18 }
 0xb8a   :  { %5601 = vmatpush3.bf16.msra.mxu1 %v6018_v59  ;;  %5616 = vmatprep.mubr.msk.bf16.mxu1 %vm6816_vm1, %v7274_v32  ;;  %v4126_v59 = vpack.c.bf16 %v4125_v55, %v4125_v55 }
 0xb8b   :  { %5602 = vmatprep.subr.bf16.mxu1 %v7274_v32  ;;  %5282 = vmatprep.subr.bf16.mxu0 %v6036_v19 }
 0xb8d   :  { %5283 = vmatpush3.bf16.msra.mxu0 %v6037_v20 }
 0xb8e   :  { %5603 = vmatpush3.bf16.msra.mxu1 %v6019_v61  ;;  %5284 = vmatprep.subr.bf16.mxu0 %v6038_v21  ;;  %v6050_v61 = vld [vmem:[%s6990_s3] sm:$0xff]  }
 0xb8f   :  { %5604 = vmatprep.subr.bf16.mxu1 %v7274_v32 }
 0xb91   :  { %5285 = vmatpush3.bf16.msra.mxu0 %v6039_v22 }
 0xb92   :  { %5605 = vmatpush3.bf16.msra.mxu1 %v6020_v62  ;;  %5286 = vmatprep.subr.bf16.mxu0 %v6040_v23  ;;  %v6051_v62 = vld [vmem:[%s6990_s3 + $0x8] sm:$0xff]  }
 0xb93   :  { %5606 = vmatprep.subr.bf16.mxu1 %v7274_v32 }
 0xb95   :  { %5287 = vmatpush3.bf16.msra.mxu0 %v6041_v24  ;;  %v4922_v24 = vld [vmem:[%s6995_s14] ss:$0 sm:$0xff] }
 0xb96   :  { %5607 = vmatpush3.bf16.msra.mxu1 %v6021_v63  ;;  %5288 = vmatprep.subr.bf16.mxu0 %v6042_v25 }
 0xb97   :  { %5608 = vmatprep.subr.bf16.mxu1 %v7274_v32 }
 0xb99   :  { %5289 = vmatpush3.bf16.msra.mxu0 %v6043_v26 }
 0xb9a   :  { %5609 = vmatpush3.bf16.msra.mxu1 %v6022_v0  ;;  %5290 = vmatprep.subr.bf16.mxu0 %v6044_v27 }
 0xb9b   :  { %5610 = vmatprep.subr.bf16.mxu1 %v7274_v32 }
 0xb9d   :  { %5291 = vmatpush3.bf16.msra.mxu0 %v6045_v28 }
 0xb9e   :  { %5611 = vmatpush3.bf16.msra.mxu1 %v6023_v1  ;;  %5292 = vmatprep.subr.bf16.mxu0 %v6046_v29 }
 0xb9f   :  { %5612 = vmatprep.subr.bf16.mxu1 %v7274_v32 }
 0xba1   :  { %5293 = vmatpush3.bf16.msra.mxu0 %v6047_v30 }
 0xba2   :  { %5613 = vmatpush3.bf16.msra.mxu1 %v6024_v2  ;;  %5294 = vmatprep.subr.bf16.mxu0 %v6048_v31 }
 0xba3   :  { %5614 = vmatprep.subr.bf16.mxu1 %v7274_v32 }
 0xba5   :  { %5295 = vmatpush3.bf16.msra.mxu0 %v6049_v33 }
 0xba6   :  { %5615 = vmatpush3.bf16.msra.mxu1 %v6025_v3  ;;  %5640 = vmatprep.subr.bf16.mxu0 %v7274_v32  ;;  %v6052_v3 = vld [vmem:[%s6990_s3 + $0x10] sm:$0xff]  }
 0xba7   :  { %5620 = vmatprep.subr.bf16.mxu1 %v7274_v32 }
 0xba9   :  { %5617 = vmatmul.mubr.bf16.vlgmr.msra.gmra.mrb[40].mxu1 %v3710_v57 }
 0xbaa   :  { %5621 = vmatpush3.bf16.msra.mxu1 %v6026_v4  ;;  %5636 = vmatprep.mubr.msk.bf16.mxu1 %vm6816_vm1, %v7274_v32  ;;  %v6053_v4 = vld [vmem:[%s6990_s3 + $0x18] sm:$0xff]  }
 0xbab   :  { %5622 = vmatprep.subr.bf16.mxu1 %v7274_v32 }
 0xbae   :  { %5623 = vmatpush3.bf16.msra.mxu1 %v6027_v5  ;;  %v6054_v5 = vld [vmem:[%s6990_s3 + $0x20] sm:$0xff]  }
 0xbaf   :  { %5624 = vmatprep.subr.bf16.mxu1 %v7274_v32 }
 0xbb2   :  { %5625 = vmatpush3.bf16.msra.mxu1 %v6028_v6  ;;  %v6055_v6 = vld [vmem:[%s6990_s3 + $0x28] sm:$0xff]  }
 0xbb3   :  { %5626 = vmatprep.subr.bf16.mxu1 %v7274_v32 }
 0xbb6   :  { %5627 = vmatpush3.bf16.msra.mxu1 %v6029_v7  ;;  %v6056_v7 = vld [vmem:[%s6990_s3 + $0x30] sm:$0xff]  }
 0xbb7   :  { %5628 = vmatprep.subr.bf16.mxu1 %v7274_v32 }
 0xbba   :  { %5629 = vmatpush3.bf16.msra.mxu1 %v6030_v8  ;;  %v6128_v8 = vld [vmem:[#allocation2 + $0x50] sm:$0xff] }
 0xbbb   :  { %5630 = vmatprep.subr.bf16.mxu1 %v7274_v32 }
 0xbbe   :  { %5631 = vmatpush3.bf16.msra.mxu1 %v6031_v9  ;;  %v6057_v9 = vld [vmem:[%s6990_s3 + $0x38] sm:$0xff]  }
 0xbbf   :  { %5632 = vmatprep.subr.bf16.mxu1 %v7274_v32 }
 0xbc2   :  { %5633 = vmatpush3.bf16.msra.mxu1 %v6032_v11  ;;  %v4897_v11 = vld [vmem:[#allocation50] ss:$0 sm:$0xff] }
 0xbc3   :  { %5634 = vmatprep.subr.bf16.mxu1 %v7274_v32 }
 0xbc6   :  { %5635 = vmatpush3.bf16.msra.mxu1 %v6033_v14 }
 0xbc9   :  { %5637 = vmatmul.mubr.bf16.vlgmr.msra.gmra.mrb[40].mxu1 %v4140_v16 }
 0xc5b   :  { %v3991_v34 = vpop.f32.mrb[44].mxu0 }
 0xc5c   :  { %v5256_v35 = vpop.f32.mrb[36].mxu1  ;;  %v5598_v46 = vpop.f32.mrb[45].mxu0 }
 0xc5d   :  { %v5257_v37 = vpop.f32.mrb[37].mxu1  ;;  %v3994_v39 = vpop.f32.mrb[46].mxu0 }
 0xc5e   :  { %v5258_v38 = vadd.f32 %v5257_v37, %v5256_v35  ;;  %v5259_v40 = vpop.f32.mrb[38].mxu1  ;;  %v5599_v41 = vpop.f32.mrb[47].mxu0 }
 0xc5f   :  { %v5260_v42 = vpop.f32.mrb[39].mxu1 }
 0xc60   :  { %v3952_v43 = vadd.f32 %v5258_v38, %v4862_v36 }
 0xc62   :  { %v3992_v44 = vadd.f32 %v3991_v34, %v3952_v43 }
 0xc64   :  { %v4887_v45 = vmul.f32 -1.442695, %v3992_v44 }
 0xc66   :  { %6122 = vpow2.f32 %v4887_v45 }
 0xc70   :  { %v6123_v47 = vpop.eup %6122 }
 0xc71   :  { %v4000_v48 = vadd.f32 1.0, %v6123_v47 }
 0xc73   :  { %6124 = vrcp.f32 %v4000_v48 }
 0xc7d   :  { %v6125_v49 = vpop.eup %6124 }
 0xc7e   :  { %v4003_v50 = vmul.f32 %v6125_v49, %v3992_v44 }
 0xc80   :  { %4005 = vst [vmem:[#allocation11 + $0x8] sm:$0x1] %v4003_v50  ;;  %4007 = vst [vmem:[#allocation11 + $0xf] sm:$0x2] %v4003_v50 }
 0xc87   :  { %v4128_v54 = vld [vmem:[#allocation11 + $0x10] sm:$0x1]  ;;  %v4127_v57 = vld [vmem:[#allocation11 + $0x8] sm:$0x1] }
 0xc88   :  { %v4130_v56 = vrot.slane %v4128_v54, 7 }
 0xc8a   :  { %v4132_v58 = vsel %vm3701_vm4, %v4127_v57, %v4130_v56 }
 0xc8b   :  { %v4133_v60 = vpack.c.bf16 %v4132_v58, %v4132_v58 }
 0xc8d   :  { %4372 = vmatprep.mubr.bf16.mxu0 %v4133_v60 }
 0xc8e   :  { %4373 = vmatmul.mubr.bf16.vlgmr.msra.gmra.mrb[48].mxu0 %v4126_v59 }
 0xc8f   :  { %5641 = vmatpush3.bf16.msra.mxu0 %v6050_v61  ;;  %5656 = vmatprep.mubr.msk.bf16.mxu0 %vm6816_vm1, %v7274_v32 }
 0xc90   :  { %5642 = vmatprep.subr.bf16.mxu0 %v7274_v32 }
 0xc93   :  { %5643 = vmatpush3.bf16.msra.mxu0 %v6051_v62 }
 0xc94   :  { %5644 = vmatprep.subr.bf16.mxu0 %v7274_v32 }
 0xc97   :  { %5645 = vmatpush3.bf16.msra.mxu0 %v6052_v3 }
 0xc98   :  { %5646 = vmatprep.subr.bf16.mxu0 %v7274_v32 }
 0xc9b   :  { %5647 = vmatpush3.bf16.msra.mxu0 %v6053_v4 }
 0xc9c   :  { %v4414_v63 = vpop.f32.mrb[40].mxu1  ;;  %5648 = vmatprep.subr.bf16.mxu0 %v7274_v32 }
 0xc9d   :  { %v5638_v0 = vpop.f32.mrb[41].mxu1 }
 0xc9e   :  { %v4417_v1 = vpop.f32.mrb[42].mxu1 }
 0xc9f   :  { %v5639_v2 = vpop.f32.mrb[43].mxu1  ;;  %5649 = vmatpush3.bf16.msra.mxu0 %v6054_v5 }
 0xca0   :  { %5650 = vmatprep.subr.bf16.mxu0 %v7274_v32 }
 0xca3   :  { %5651 = vmatpush3.bf16.msra.mxu0 %v6055_v6 }
 0xca4   :  { %5652 = vmatprep.subr.bf16.mxu0 %v6128_v8 }
 0xca7   :  { %5653 = vmatpush3.bf16.msra.mxu0 %v6056_v7 }
 0xca8   :  { %5654 = vmatprep.subr.bf16.mxu0 %v6128_v8 }
 0xcab   :  { %5655 = vmatpush3.bf16.msra.mxu0 %v6057_v9 }
 0xd61   :  { %v5296_v10 = vpop.f32.mrb[48].mxu0 }
 0xd62   :  { %v5297_v12 = vpop.f32.mrb[49].mxu0 }
 0xd63   :  { %v5298_v13 = vadd.f32 %v5297_v12, %v5296_v10  ;;  %v5299_v14 = vpop.f32.mrb[50].mxu0 }
 0xd64   :  { %v5300_v16 = vpop.f32.mrb[51].mxu0 }
 0xd65   :  { %v4375_v17 = vadd.f32 %v5298_v13, %v4897_v11 }
 0xd67   :  { %v5676_v18 = vadd.f32 %v4888_v15, %v4375_v17 }
 0xd69   :  { %v5677_v32 = vadd.f32 %v5676_v18, %v4414_v63 }
 0xd6b   :  { %4422 = vst [vmem:[#allocation12 + $0x8] sm:$0x1] %v5677_v32  ;;  %4424 = vst [vmem:[#allocation12 + $0xf] sm:$0x2] %v5677_v32 }
 0xd72   :  { %v4427_v19 = vld [vmem:[#allocation12 + $0x10] sm:$0x1]  ;;  %v4426_v21 = vld [vmem:[#allocation12 + $0x8] sm:$0x1] }
 0xd73   :  { %v4429_v20 = vrot.slane %v4427_v19, 7 }
 0xd75   :  { %v4431_v22 = vsel %vm3701_vm4, %v4426_v21, %v4429_v20 }
 0xd76   :  { %v4432_v23 = vpack.c.bf16 %v4431_v22, %v4431_v22 }
 0xd78   :  { %5657 = vmatmul.mubr.bf16.vlgmr.msra.gmra.mrb[52].mxu0 %v4432_v23 }
 0xe4b   :  { %v4538_v25 = vpop.f32.mrb[52].mxu0 }
 0xe4c   :  { %v4539_v26 = vadd.f32 %v4922_v24, %v4538_v25  ;;  %v5658_v27 = vpop.f32.mrb[53].mxu0 }
 0xe4d   :  { %v4541_v28 = vpop.f32.mrb[54].mxu0 }
 0xe4e   :  { %4545 = vst.msk [vmem:[%s7000_s17] sm:$0x3] %vm4544_vm5, %v4539_v26  ;;  %v5659_v29 = vpop.f32.mrb[55].mxu0 }
 0xe4f   :  { %4550 = vsyncpa [#allocation14], 1 }
 0xe50   :  { %4551 = vsyncpa [#allocation16], 1 }
 0xe51   :  { %4552 = vsyncpa [#allocation19], 1 }
 0xe52   :  { %4553 = vsyncpa [#allocation22], 1 }
 0xe53   :  { %4554 = vsyncpa [#allocation25], 1 }
 0xe54   :  { %4555 = vsyncpa [#allocation28], 1 }
 0xe55   :  { %4556 = vsyncpa [#allocation31], 1 }
 0xe56   :  { %4557 = vsyncpa [#allocation34], 1 }
 0xe57   :  { %4558 = vsyncpa [#allocation37], 1 }
 0xe58   :  { %4559 = vsyncpa [#allocation40], 1 }
 0xe59   :  { %4560 = vsyncpa [#allocation43], 1 }
 0xe5a   :  { %4561 = vsyncpa [#allocation46], 1 }
 0xe5b   :  { %4562 = vsyncpa [#allocation49], 1 }
 0xe5c   :  { %4563 = vsyncpa [#allocation52], 1 }

</bundles_post_ra>
